<compile_context>
chip_gen: v7x
topology: tpu7x:2x2x1
jax: 0.10.0
libtpu: 0.0.40
codegen_flags: <defaults>
</compile_context>

<pallas_src>
import jax
import jax.numpy as jnp
from jax.experimental import pallas as pl
from jax.experimental.pallas import tpu as pltpu

MAX_WORD = 50
EMB = 32          # word_embedding_size
HID = 32          # lstm_hidden_size == hidden_size
LAYERS = 3        # lstm_layers
NUM_DIR = 2       # bidirectional


def phv_kernel(lens_ref, x_ref, win0_ref, win12_ref, whh_ref, brows_ref,
               wlin_ref, blin_ref, out_ref):
    """Stacked BiLSTM (packed-seq semantics) + last-step gather + Linear.

    lens_ref  : (B, 1)            int32
    x_ref     : (B, T, E)         f32
    win0_ref  : (2E, 4H)          f32   layer-0 [W_ih_fwd.T ; W_ih_bwd.T]
    win12_ref : (2, 4H, 4H)       f32   layers 1..2 stacked input weights
    whh_ref   : (3, 2H, 4H)       f32   per-layer [W_hh_fwd.T ; W_hh_bwd.T]
    brows_ref : (3, 2B, 4H)       f32   per-layer per-row (b_ih + b_hh)
    wlin_ref  : (2H, HID)         f32
    blin_ref  : (1, HID)          f32
    out_ref   : (B, HID)          f32
    """
    B, T, _ = x_ref.shape
    H = HID
    B2 = 2 * B

    lens = lens_ref[...]                                      # (B, 1)
    lens2 = jnp.concatenate([lens, lens], axis=0)             # (2B, 1)

    # Row r < B is the forward direction, r >= B is the backward direction.
    row_id = jax.lax.broadcasted_iota(jnp.int32, (B2, 1), 0)
    is_fwd = row_id < B                                       # (2B, 1) bool

    # Block-diagonal lane mask for the recurrent lhs: fwd rows keep lanes
    # [0:H], bwd rows keep lanes [H:2H].
    row2 = jax.lax.broadcasted_iota(jnp.int32, (B2, 2 * H), 0)
    lane2 = jax.lax.broadcasted_iota(jnp.int32, (B2, 2 * H), 1)
    dmask = ((row2 < B) & (lane2 < H)) | ((row2 >= B) & (lane2 >= H))

    # Per-step packed-seq masks, pre-broadcast to H lanes (layer independent,
    # hoisted off the recurrence chain).
    valid_steps, capture_steps = [], []
    for s in range(T):
        t_s = jnp.where(is_fwd, s, T - 1 - s)                 # (2B, 1) int32
        valid_steps.append(jnp.broadcast_to(t_s < lens2, (B2, H)))
        capture_steps.append(jnp.broadcast_to(t_s == lens2 - 1, (B2, H)))

    # Layer-0 input arranged in per-direction processing order, one tile/step.
    x = x_ref[...]                                            # (B, T, E)
    in_steps = [jnp.concatenate([x[:, s, :], x[:, T - 1 - s, :]], axis=0)
                for s in range(T)]                            # T x (2B, E)

    last = jnp.zeros((B2, H), jnp.float32)                    # layer-3 h at t=len-1

    for layer in range(LAYERS):
        w_in = win0_ref[...] if layer == 0 else win12_ref[layer - 1]  # (2*IN, 4H)
        w_hh = whh_ref[layer]                                          # (2H, 4H)
        b_rows = brows_ref[layer]                                      # (2B, 4H)
        is_last = layer == LAYERS - 1

        # ---- Hoisted input projection: one matmul per layer, off the chain.
        blk = [jnp.concatenate([jnp.where(is_fwd, a, 0.0),
                                jnp.where(is_fwd, 0.0, a)], axis=-1)
               for a in in_steps]                              # T x (2B, 2*IN)
        big = jnp.concatenate(blk, axis=0)                     # (T*2B, 2*IN)
        proj = jnp.dot(big, w_in, preferred_element_type=jnp.float32)
        xp = [proj[s * B2:(s + 1) * B2, :] + b_rows for s in range(T)]

        # ---- Serial recurrence: only the block-diagonal h @ W_hh stays inside.
        h = jnp.zeros((B2, H), jnp.float32)
        c = jnp.zeros((B2, H), jnp.float32)
        hm = [None] * T
        for s in range(T):
            h_blk = jnp.where(dmask, jnp.concatenate([h, h], axis=-1), 0.0)
            gates = jnp.dot(h_blk, w_hh,
                            preferred_element_type=jnp.float32) + xp[s]
            sg = jax.nn.sigmoid(gates)                         # i, f, -, o lanes
            g_t = jnp.tanh(gates[:, 2 * H:3 * H])              # g gate only
            c_new = sg[:, H:2 * H] * c + sg[:, :H] * g_t
            h_new = sg[:, 3 * H:] * jnp.tanh(c_new)
            v = valid_steps[s]
            h = jnp.where(v, h_new, h)
            c = jnp.where(v, c_new, c)
            if is_last:
                last = jnp.where(capture_steps[s], h_new, last)
            else:
                hm[s] = jnp.where(v, h_new, 0.0)               # zero padded steps

        if not is_last:
            # Next layer's processing-order input, assembled from live values
            # (no VMEM scratch round-trip).
            in_steps = [jnp.concatenate(
                [jnp.concatenate([hm[s][:B], hm[T - 1 - s][:B]], axis=0),
                 jnp.concatenate([hm[T - 1 - s][B:], hm[s][B:]], axis=0)],
                axis=-1) for s in range(T)]                    # T x (2B, 2H)

    # Gathered value at t = len-1: [forward h | backward h] per batch row.
    last_cat = jnp.concatenate([last[:B], last[B:]], axis=-1)  # (B, 2H)
    out_ref[...] = (jnp.dot(last_cat, wlin_ref[...],
                            preferred_element_type=jnp.float32) + blin_ref[...])


def init_params(key):
    """Deterministic params matching the module's shapes, packed per-direction
    for the fused kernel layout."""
    keys = iter(jax.random.split(key, 64))
    emb = jax.random.normal(next(keys), (MAX_WORD, EMB), jnp.float32)  # nn.Embedding ~ N(0,1)
    bound = HID ** -0.5
    w_in_layers, w_hh_layers, b_layers = [], [], []
    for layer in range(LAYERS):
        in_dim = EMB if layer == 0 else 2 * HID
        w_in_dirs, w_hh_dirs, b_dirs = [], [], []
        for _d in range(NUM_DIR):
            w_ih = jax.random.uniform(next(keys), (4 * HID, in_dim), jnp.float32, -bound, bound)
            w_hh = jax.random.uniform(next(keys), (4 * HID, HID), jnp.float32, -bound, bound)
            b_ih = jax.random.uniform(next(keys), (4 * HID,), jnp.float32, -bound, bound)
            b_hh = jax.random.uniform(next(keys), (4 * HID,), jnp.float32, -bound, bound)
            w_in_dirs.append(w_ih.T)                    # (in, 4H)
            w_hh_dirs.append(w_hh.T)                    # (H, 4H)
            b_dirs.append(b_ih + b_hh)                  # (4H,)
        w_in_layers.append(jnp.concatenate(w_in_dirs, axis=0))   # (2*in, 4H)
        w_hh_layers.append(jnp.concatenate(w_hh_dirs, axis=0))   # (2H, 4H)
        b_layers.append(jnp.stack(b_dirs))                       # (2, 4H)
    w_in0 = w_in_layers[0]                              # (2E, 4H)
    w_in12 = jnp.stack(w_in_layers[1:])                 # (2, 4H, 4H)
    w_hh = jnp.stack(w_hh_layers)                       # (3, 2H, 4H)
    b = jnp.stack(b_layers)                             # (3, 2, 4H)
    bound_l = (2 * HID) ** -0.5
    w_lin = jax.random.uniform(next(keys), (HID, 2 * HID), jnp.float32, -bound_l, bound_l)
    b_lin = jax.random.uniform(next(keys), (HID,), jnp.float32, -bound_l, bound_l)
    return emb, w_in0, w_in12, w_hh, b, w_lin.T, b_lin[None, :]


@jax.jit
def phv_embedding_forward(tokens, seq_len, emb, w_in0, w_in12, w_hh, b, wlin, blin):
    B, T = tokens.shape
    # Glue: embedding row gather stays in the JAX wrapper (tiny, data-dependent).
    x = jnp.take(emb, tokens, axis=0)                   # (B, T, E)
    lens = seq_len.astype(jnp.int32).reshape(B, 1)
    # Per-direction bias expanded to per-row form (fwd rows then bwd rows).
    b_rows = jnp.repeat(b, B, axis=1)                   # (3, 2B, 4H)
    return pl.pallas_call(
        phv_kernel,
        out_shape=jax.ShapeDtypeStruct((B, HID), jnp.float32),
        in_specs=[pl.BlockSpec(memory_space=pltpu.MemorySpace.VMEM)] * 8,
        out_specs=pl.BlockSpec(memory_space=pltpu.MemorySpace.VMEM),
    )(lens, x, w_in0, w_in12, w_hh, b_rows, wlin, blin)


def phv_reference(tokens, seq_len, emb, w_in0, w_in12, w_hh, b, wlin, blin):
    """Pure-JAX reference with identical packed-LSTM semantics (independent
    per-direction loops, no direction fusion)."""
    B, T = tokens.shape
    H = HID
    x = jnp.take(emb, tokens, axis=0)
    lens = seq_len.astype(jnp.int32).reshape(B, 1)
    layer_in = x
    for layer in range(LAYERS):
        in_dim = EMB if layer == 0 else 2 * H
        w_in_big = w_in0 if layer == 0 else w_in12[layer - 1]   # (2*in, 4H)
        w_hh_big = w_hh[layer]                                  # (2H, 4H)
        b_big = b[layer]                                        # (2, 4H)
        dir_outs = []
        for d in range(NUM_DIR):
            w_in = w_in_big[d * in_dim:(d + 1) * in_dim, :]
            w_hh_d = w_hh_big[d * H:(d + 1) * H, :]
            bb = b_big[d][None, :]
            h = jnp.zeros((B, H), jnp.float32)
            c = jnp.zeros((B, H), jnp.float32)
            outs = [None] * T
            order = range(T) if d == 0 else range(T - 1, -1, -1)
            for t in order:
                gates = (jnp.dot(layer_in[:, t, :], w_in,
                                 preferred_element_type=jnp.float32)
                         + jnp.dot(h, w_hh_d, preferred_element_type=jnp.float32)
                         + bb)
                i_g = jax.nn.sigmoid(gates[:, :H])
                f_g = jax.nn.sigmoid(gates[:, H:2 * H])
                g_g = jnp.tanh(gates[:, 2 * H:3 * H])
                o_g = jax.nn.sigmoid(gates[:, 3 * H:])
                c_new = f_g * c + i_g * g_g
                h_new = o_g * jnp.tanh(c_new)
                m = (lens > t).astype(jnp.float32)
                h = m * h_new + (1.0 - m) * h
                c = m * c_new + (1.0 - m) * c
                outs[t] = h * m
            dir_outs.append(jnp.stack(outs, axis=1))
        layer_in = jnp.concatenate(dir_outs, axis=-1)
    onehot = (jnp.arange(T)[None, :] == (lens - 1)).astype(jnp.float32)
    last = jnp.sum(layer_in * onehot[:, :, None], axis=1)
    return jnp.dot(last, wlin, preferred_element_type=jnp.float32) + blin


if __name__ == "__main__":
    key = jax.random.PRNGKey(0)
    k_tok, k_par = jax.random.split(key)
    B, T = 2, 8
    tokens = jax.random.randint(k_tok, (B, T), 0, MAX_WORD, dtype=jnp.int32)
    seq_len = jnp.array([8, 5], dtype=jnp.int32)   # variable lengths (enforce_sorted=False)
    params = init_params(k_par)

    out = phv_embedding_forward(tokens, seq_len, *params)
    out = jax.block_until_ready(out)

    ref = phv_reference(tokens, seq_len, *params)
    assert out.shape == (B, HID), out.shape
    assert jnp.allclose(out, ref, atol=1e-3, rtol=1e-3), (out, ref)
    print("KERNEL_OK")
</pallas_src>

<mosaic_0001>
module attributes {stable_mosaic.version = 11 : i64} {
  func.func @phv_kernel(%arg0: memref<2x1xi32, #tpu.memory_space<vmem>>, %arg1: memref<2x8x32xf32, #tpu.memory_space<vmem>>, %arg2: memref<64x128xf32, #tpu.memory_space<vmem>>, %arg3: memref<2x128x128xf32, #tpu.memory_space<vmem>>, %arg4: memref<3x64x128xf32, #tpu.memory_space<vmem>>, %arg5: memref<3x4x128xf32, #tpu.memory_space<vmem>>, %arg6: memref<64x32xf32, #tpu.memory_space<vmem>>, %arg7: memref<1x32xf32, #tpu.memory_space<vmem>>, %arg8: memref<2x32xf32, #tpu.memory_space<vmem>>) attributes {dimension_semantics = [], scalar_prefetch = 0 : i64, scratch_operands = 0 : i64, tpu.core_type = #tpu.core_type<tc>} {
    %c0 = arith.constant 0 : index
    %c0_0 = arith.constant 0 : index
    %0 = vector.load %arg0[%c0, %c0_0] : memref<2x1xi32, #tpu.memory_space<vmem>>, vector<2x1xi32>
    %1 = tpu.concatenate %0, %0 in 0 : vector<2x1xi32>, vector<2x1xi32> -> vector<4x1xi32>
    %2 = tpu.iota {dimensions = array<i32: 0>} : vector<4x1xi32>
    %c2_i32 = arith.constant 2 : i32
    %3 = vector.broadcast %c2_i32 : i32 to vector<4x1xi32>
    %4 = arith.cmpi slt, %2, %3 : vector<4x1xi32>
    %5 = tpu.iota {dimensions = array<i32: 0>} : vector<4x64xi32>
    %6 = tpu.iota {dimensions = array<i32: 1>} : vector<4x64xi32>
    %c2_i32_1 = arith.constant 2 : i32
    %7 = vector.broadcast %c2_i32_1 : i32 to vector<4x64xi32>
    %8 = arith.cmpi slt, %5, %7 : vector<4x64xi32>
    %c32_i32 = arith.constant 32 : i32
    %9 = vector.broadcast %c32_i32 : i32 to vector<4x64xi32>
    %10 = arith.cmpi slt, %6, %9 : vector<4x64xi32>
    %11 = arith.andi %8, %10 : vector<4x64xi1>
    %c2_i32_2 = arith.constant 2 : i32
    %12 = vector.broadcast %c2_i32_2 : i32 to vector<4x64xi32>
    %13 = arith.cmpi sge, %5, %12 : vector<4x64xi32>
    %c32_i32_3 = arith.constant 32 : i32
    %14 = vector.broadcast %c32_i32_3 : i32 to vector<4x64xi32>
    %15 = arith.cmpi sge, %6, %14 : vector<4x64xi32>
    %16 = arith.andi %13, %15 : vector<4x64xi1>
    %17 = arith.ori %11, %16 : vector<4x64xi1>
    %c0_i32 = arith.constant 0 : i32
    %c7_i32 = arith.constant 7 : i32
    %18 = vector.broadcast %c0_i32 : i32 to vector<4x1xi32>
    %19 = vector.broadcast %c7_i32 : i32 to vector<4x1xi32>
    %20 = arith.select %4, %18, %19 : vector<4x1xi1>, vector<4x1xi32>
    %21 = arith.cmpi slt, %20, %1 : vector<4x1xi32>
    %22 = vector.shape_cast %21 : vector<4x1xi1> to vector<4x1xi1>
    %23 = vector.broadcast %22 : vector<4x1xi1> to vector<4x32xi1>
    %c1_i32 = arith.constant 1 : i32
    %24 = vector.broadcast %c1_i32 : i32 to vector<4x1xi32>
    %25 = arith.subi %1, %24 : vector<4x1xi32>
    %26 = arith.cmpi eq, %20, %25 : vector<4x1xi32>
    %27 = vector.shape_cast %26 : vector<4x1xi1> to vector<4x1xi1>
    %28 = vector.broadcast %27 : vector<4x1xi1> to vector<4x32xi1>
    %c1_i32_4 = arith.constant 1 : i32
    %c6_i32 = arith.constant 6 : i32
    %29 = vector.broadcast %c1_i32_4 : i32 to vector<4x1xi32>
    %30 = vector.broadcast %c6_i32 : i32 to vector<4x1xi32>
    %31 = arith.select %4, %29, %30 : vector<4x1xi1>, vector<4x1xi32>
    %32 = arith.cmpi slt, %31, %1 : vector<4x1xi32>
    %33 = vector.shape_cast %32 : vector<4x1xi1> to vector<4x1xi1>
    %34 = vector.broadcast %33 : vector<4x1xi1> to vector<4x32xi1>
    %c1_i32_5 = arith.constant 1 : i32
    %35 = vector.broadcast %c1_i32_5 : i32 to vector<4x1xi32>
    %36 = arith.subi %1, %35 : vector<4x1xi32>
    %37 = arith.cmpi eq, %31, %36 : vector<4x1xi32>
    %38 = vector.shape_cast %37 : vector<4x1xi1> to vector<4x1xi1>
    %39 = vector.broadcast %38 : vector<4x1xi1> to vector<4x32xi1>
    %c2_i32_6 = arith.constant 2 : i32
    %c5_i32 = arith.constant 5 : i32
    %40 = vector.broadcast %c2_i32_6 : i32 to vector<4x1xi32>
    %41 = vector.broadcast %c5_i32 : i32 to vector<4x1xi32>
    %42 = arith.select %4, %40, %41 : vector<4x1xi1>, vector<4x1xi32>
    %43 = arith.cmpi slt, %42, %1 : vector<4x1xi32>
    %44 = vector.shape_cast %43 : vector<4x1xi1> to vector<4x1xi1>
    %45 = vector.broadcast %44 : vector<4x1xi1> to vector<4x32xi1>
    %c1_i32_7 = arith.constant 1 : i32
    %46 = vector.broadcast %c1_i32_7 : i32 to vector<4x1xi32>
    %47 = arith.subi %1, %46 : vector<4x1xi32>
    %48 = arith.cmpi eq, %42, %47 : vector<4x1xi32>
    %49 = vector.shape_cast %48 : vector<4x1xi1> to vector<4x1xi1>
    %50 = vector.broadcast %49 : vector<4x1xi1> to vector<4x32xi1>
    %c3_i32 = arith.constant 3 : i32
    %c4_i32 = arith.constant 4 : i32
    %51 = vector.broadcast %c3_i32 : i32 to vector<4x1xi32>
    %52 = vector.broadcast %c4_i32 : i32 to vector<4x1xi32>
    %53 = arith.select %4, %51, %52 : vector<4x1xi1>, vector<4x1xi32>
    %54 = arith.cmpi slt, %53, %1 : vector<4x1xi32>
    %55 = vector.shape_cast %54 : vector<4x1xi1> to vector<4x1xi1>
    %56 = vector.broadcast %55 : vector<4x1xi1> to vector<4x32xi1>
    %c1_i32_8 = arith.constant 1 : i32
    %57 = vector.broadcast %c1_i32_8 : i32 to vector<4x1xi32>
    %58 = arith.subi %1, %57 : vector<4x1xi32>
    %59 = arith.cmpi eq, %53, %58 : vector<4x1xi32>
    %60 = vector.shape_cast %59 : vector<4x1xi1> to vector<4x1xi1>
    %61 = vector.broadcast %60 : vector<4x1xi1> to vector<4x32xi1>
    %c4_i32_9 = arith.constant 4 : i32
    %c3_i32_10 = arith.constant 3 : i32
    %62 = vector.broadcast %c4_i32_9 : i32 to vector<4x1xi32>
    %63 = vector.broadcast %c3_i32_10 : i32 to vector<4x1xi32>
    %64 = arith.select %4, %62, %63 : vector<4x1xi1>, vector<4x1xi32>
    %65 = arith.cmpi slt, %64, %1 : vector<4x1xi32>
    %66 = vector.shape_cast %65 : vector<4x1xi1> to vector<4x1xi1>
    %67 = vector.broadcast %66 : vector<4x1xi1> to vector<4x32xi1>
    %c1_i32_11 = arith.constant 1 : i32
    %68 = vector.broadcast %c1_i32_11 : i32 to vector<4x1xi32>
    %69 = arith.subi %1, %68 : vector<4x1xi32>
    %70 = arith.cmpi eq, %64, %69 : vector<4x1xi32>
    %71 = vector.shape_cast %70 : vector<4x1xi1> to vector<4x1xi1>
    %72 = vector.broadcast %71 : vector<4x1xi1> to vector<4x32xi1>
    %c5_i32_12 = arith.constant 5 : i32
    %c2_i32_13 = arith.constant 2 : i32
    %73 = vector.broadcast %c5_i32_12 : i32 to vector<4x1xi32>
    %74 = vector.broadcast %c2_i32_13 : i32 to vector<4x1xi32>
    %75 = arith.select %4, %73, %74 : vector<4x1xi1>, vector<4x1xi32>
    %76 = arith.cmpi slt, %75, %1 : vector<4x1xi32>
    %77 = vector.shape_cast %76 : vector<4x1xi1> to vector<4x1xi1>
    %78 = vector.broadcast %77 : vector<4x1xi1> to vector<4x32xi1>
    %c1_i32_14 = arith.constant 1 : i32
    %79 = vector.broadcast %c1_i32_14 : i32 to vector<4x1xi32>
    %80 = arith.subi %1, %79 : vector<4x1xi32>
    %81 = arith.cmpi eq, %75, %80 : vector<4x1xi32>
    %82 = vector.shape_cast %81 : vector<4x1xi1> to vector<4x1xi1>
    %83 = vector.broadcast %82 : vector<4x1xi1> to vector<4x32xi1>
    %c6_i32_15 = arith.constant 6 : i32
    %c1_i32_16 = arith.constant 1 : i32
    %84 = vector.broadcast %c6_i32_15 : i32 to vector<4x1xi32>
    %85 = vector.broadcast %c1_i32_16 : i32 to vector<4x1xi32>
    %86 = arith.select %4, %84, %85 : vector<4x1xi1>, vector<4x1xi32>
    %87 = arith.cmpi slt, %86, %1 : vector<4x1xi32>
    %88 = vector.shape_cast %87 : vector<4x1xi1> to vector<4x1xi1>
    %89 = vector.broadcast %88 : vector<4x1xi1> to vector<4x32xi1>
    %c1_i32_17 = arith.constant 1 : i32
    %90 = vector.broadcast %c1_i32_17 : i32 to vector<4x1xi32>
    %91 = arith.subi %1, %90 : vector<4x1xi32>
    %92 = arith.cmpi eq, %86, %91 : vector<4x1xi32>
    %93 = vector.shape_cast %92 : vector<4x1xi1> to vector<4x1xi1>
    %94 = vector.broadcast %93 : vector<4x1xi1> to vector<4x32xi1>
    %c7_i32_18 = arith.constant 7 : i32
    %c0_i32_19 = arith.constant 0 : i32
    %95 = vector.broadcast %c7_i32_18 : i32 to vector<4x1xi32>
    %96 = vector.broadcast %c0_i32_19 : i32 to vector<4x1xi32>
    %97 = arith.select %4, %95, %96 : vector<4x1xi1>, vector<4x1xi32>
    %98 = arith.cmpi slt, %97, %1 : vector<4x1xi32>
    %99 = vector.shape_cast %98 : vector<4x1xi1> to vector<4x1xi1>
    %100 = vector.broadcast %99 : vector<4x1xi1> to vector<4x32xi1>
    %c1_i32_20 = arith.constant 1 : i32
    %101 = vector.broadcast %c1_i32_20 : i32 to vector<4x1xi32>
    %102 = arith.subi %1, %101 : vector<4x1xi32>
    %103 = arith.cmpi eq, %97, %102 : vector<4x1xi32>
    %104 = vector.shape_cast %103 : vector<4x1xi1> to vector<4x1xi1>
    %105 = vector.broadcast %104 : vector<4x1xi1> to vector<4x32xi1>
    %c0_21 = arith.constant 0 : index
    %c0_22 = arith.constant 0 : index
    %c0_23 = arith.constant 0 : index
    %106 = vector.load %arg1[%c0_21, %c0_22, %c0_23] : memref<2x8x32xf32, #tpu.memory_space<vmem>>, vector<2x8x32xf32>
    %107 = vector.extract_strided_slice %106 {offsets = [0, 0, 0], sizes = [2, 1, 32], strides = [1, 1, 1]} : vector<2x8x32xf32> to vector<2x1x32xf32>
    %108 = vector.shape_cast %107 : vector<2x1x32xf32> to vector<2x32xf32>
    %109 = vector.extract_strided_slice %106 {offsets = [0, 7, 0], sizes = [2, 1, 32], strides = [1, 1, 1]} : vector<2x8x32xf32> to vector<2x1x32xf32>
    %110 = vector.shape_cast %109 : vector<2x1x32xf32> to vector<2x32xf32>
    %111 = tpu.concatenate %108, %110 in 0 : vector<2x32xf32>, vector<2x32xf32> -> vector<4x32xf32>
    %112 = vector.extract_strided_slice %106 {offsets = [0, 1, 0], sizes = [2, 1, 32], strides = [1, 1, 1]} : vector<2x8x32xf32> to vector<2x1x32xf32>
    %113 = vector.shape_cast %112 : vector<2x1x32xf32> to vector<2x32xf32>
    %114 = vector.extract_strided_slice %106 {offsets = [0, 6, 0], sizes = [2, 1, 32], strides = [1, 1, 1]} : vector<2x8x32xf32> to vector<2x1x32xf32>
    %115 = vector.shape_cast %114 : vector<2x1x32xf32> to vector<2x32xf32>
    %116 = tpu.concatenate %113, %115 in 0 : vector<2x32xf32>, vector<2x32xf32> -> vector<4x32xf32>
    %117 = vector.extract_strided_slice %106 {offsets = [0, 2, 0], sizes = [2, 1, 32], strides = [1, 1, 1]} : vector<2x8x32xf32> to vector<2x1x32xf32>
    %118 = vector.shape_cast %117 : vector<2x1x32xf32> to vector<2x32xf32>
    %119 = vector.extract_strided_slice %106 {offsets = [0, 5, 0], sizes = [2, 1, 32], strides = [1, 1, 1]} : vector<2x8x32xf32> to vector<2x1x32xf32>
    %120 = vector.shape_cast %119 : vector<2x1x32xf32> to vector<2x32xf32>
    %121 = tpu.concatenate %118, %120 in 0 : vector<2x32xf32>, vector<2x32xf32> -> vector<4x32xf32>
    %122 = vector.extract_strided_slice %106 {offsets = [0, 3, 0], sizes = [2, 1, 32], strides = [1, 1, 1]} : vector<2x8x32xf32> to vector<2x1x32xf32>
    %123 = vector.shape_cast %122 : vector<2x1x32xf32> to vector<2x32xf32>
    %124 = vector.extract_strided_slice %106 {offsets = [0, 4, 0], sizes = [2, 1, 32], strides = [1, 1, 1]} : vector<2x8x32xf32> to vector<2x1x32xf32>
    %125 = vector.shape_cast %124 : vector<2x1x32xf32> to vector<2x32xf32>
    %126 = tpu.concatenate %123, %125 in 0 : vector<2x32xf32>, vector<2x32xf32> -> vector<4x32xf32>
    %127 = vector.extract_strided_slice %106 {offsets = [0, 4, 0], sizes = [2, 1, 32], strides = [1, 1, 1]} : vector<2x8x32xf32> to vector<2x1x32xf32>
    %128 = vector.shape_cast %127 : vector<2x1x32xf32> to vector<2x32xf32>
    %129 = vector.extract_strided_slice %106 {offsets = [0, 3, 0], sizes = [2, 1, 32], strides = [1, 1, 1]} : vector<2x8x32xf32> to vector<2x1x32xf32>
    %130 = vector.shape_cast %129 : vector<2x1x32xf32> to vector<2x32xf32>
    %131 = tpu.concatenate %128, %130 in 0 : vector<2x32xf32>, vector<2x32xf32> -> vector<4x32xf32>
    %132 = vector.extract_strided_slice %106 {offsets = [0, 5, 0], sizes = [2, 1, 32], strides = [1, 1, 1]} : vector<2x8x32xf32> to vector<2x1x32xf32>
    %133 = vector.shape_cast %132 : vector<2x1x32xf32> to vector<2x32xf32>
    %134 = vector.extract_strided_slice %106 {offsets = [0, 2, 0], sizes = [2, 1, 32], strides = [1, 1, 1]} : vector<2x8x32xf32> to vector<2x1x32xf32>
    %135 = vector.shape_cast %134 : vector<2x1x32xf32> to vector<2x32xf32>
    %136 = tpu.concatenate %133, %135 in 0 : vector<2x32xf32>, vector<2x32xf32> -> vector<4x32xf32>
    %137 = vector.extract_strided_slice %106 {offsets = [0, 6, 0], sizes = [2, 1, 32], strides = [1, 1, 1]} : vector<2x8x32xf32> to vector<2x1x32xf32>
    %138 = vector.shape_cast %137 : vector<2x1x32xf32> to vector<2x32xf32>
    %139 = vector.extract_strided_slice %106 {offsets = [0, 1, 0], sizes = [2, 1, 32], strides = [1, 1, 1]} : vector<2x8x32xf32> to vector<2x1x32xf32>
    %140 = vector.shape_cast %139 : vector<2x1x32xf32> to vector<2x32xf32>
    %141 = tpu.concatenate %138, %140 in 0 : vector<2x32xf32>, vector<2x32xf32> -> vector<4x32xf32>
    %142 = vector.extract_strided_slice %106 {offsets = [0, 7, 0], sizes = [2, 1, 32], strides = [1, 1, 1]} : vector<2x8x32xf32> to vector<2x1x32xf32>
    %143 = vector.shape_cast %142 : vector<2x1x32xf32> to vector<2x32xf32>
    %144 = vector.extract_strided_slice %106 {offsets = [0, 0, 0], sizes = [2, 1, 32], strides = [1, 1, 1]} : vector<2x8x32xf32> to vector<2x1x32xf32>
    %145 = vector.shape_cast %144 : vector<2x1x32xf32> to vector<2x32xf32>
    %146 = tpu.concatenate %143, %145 in 0 : vector<2x32xf32>, vector<2x32xf32> -> vector<4x32xf32>
    %cst = arith.constant 0.000000e+00 : f32
    %147 = vector.broadcast %cst : f32 to vector<4x32xf32>
    %c0_24 = arith.constant 0 : index
    %c0_25 = arith.constant 0 : index
    %148 = vector.load %arg2[%c0_24, %c0_25] : memref<64x128xf32, #tpu.memory_space<vmem>>, vector<64x128xf32>
    %c0_26 = arith.constant 0 : index
    %c0_27 = arith.constant 0 : index
    %c0_28 = arith.constant 0 : index
    %149 = vector.load %arg4[%c0_26, %c0_27, %c0_28] : memref<3x64x128xf32, #tpu.memory_space<vmem>>, vector<1x64x128xf32>
    %150 = vector.shape_cast %149 : vector<1x64x128xf32> to vector<64x128xf32>
    %c0_29 = arith.constant 0 : index
    %c0_30 = arith.constant 0 : index
    %c0_31 = arith.constant 0 : index
    %151 = vector.load %arg5[%c0_29, %c0_30, %c0_31] : memref<3x4x128xf32, #tpu.memory_space<vmem>>, vector<1x4x128xf32>
    %152 = vector.shape_cast %151 : vector<1x4x128xf32> to vector<4x128xf32>
    %cst_32 = arith.constant 0.000000e+00 : f32
    %153 = vector.shape_cast %4 : vector<4x1xi1> to vector<4x1xi1>
    %154 = vector.broadcast %153 : vector<4x1xi1> to vector<4x32xi1>
    %155 = vector.broadcast %cst_32 : f32 to vector<4x32xf32>
    %156 = arith.select %154, %111, %155 : vector<4x32xi1>, vector<4x32xf32>
    %cst_33 = arith.constant 0.000000e+00 : f32
    %157 = vector.shape_cast %4 : vector<4x1xi1> to vector<4x1xi1>
    %158 = vector.broadcast %157 : vector<4x1xi1> to vector<4x32xi1>
    %159 = vector.broadcast %cst_33 : f32 to vector<4x32xf32>
    %160 = arith.select %158, %159, %111 : vector<4x32xi1>, vector<4x32xf32>
    %161 = tpu.concatenate %156, %160 in 1 : vector<4x32xf32>, vector<4x32xf32> -> vector<4x64xf32>
    %cst_34 = arith.constant 0.000000e+00 : f32
    %162 = vector.shape_cast %4 : vector<4x1xi1> to vector<4x1xi1>
    %163 = vector.broadcast %162 : vector<4x1xi1> to vector<4x32xi1>
    %164 = vector.broadcast %cst_34 : f32 to vector<4x32xf32>
    %165 = arith.select %163, %116, %164 : vector<4x32xi1>, vector<4x32xf32>
    %cst_35 = arith.constant 0.000000e+00 : f32
    %166 = vector.shape_cast %4 : vector<4x1xi1> to vector<4x1xi1>
    %167 = vector.broadcast %166 : vector<4x1xi1> to vector<4x32xi1>
    %168 = vector.broadcast %cst_35 : f32 to vector<4x32xf32>
    %169 = arith.select %167, %168, %116 : vector<4x32xi1>, vector<4x32xf32>
    %170 = tpu.concatenate %165, %169 in 1 : vector<4x32xf32>, vector<4x32xf32> -> vector<4x64xf32>
    %cst_36 = arith.constant 0.000000e+00 : f32
    %171 = vector.shape_cast %4 : vector<4x1xi1> to vector<4x1xi1>
    %172 = vector.broadcast %171 : vector<4x1xi1> to vector<4x32xi1>
    %173 = vector.broadcast %cst_36 : f32 to vector<4x32xf32>
    %174 = arith.select %172, %121, %173 : vector<4x32xi1>, vector<4x32xf32>
    %cst_37 = arith.constant 0.000000e+00 : f32
    %175 = vector.shape_cast %4 : vector<4x1xi1> to vector<4x1xi1>
    %176 = vector.broadcast %175 : vector<4x1xi1> to vector<4x32xi1>
    %177 = vector.broadcast %cst_37 : f32 to vector<4x32xf32>
    %178 = arith.select %176, %177, %121 : vector<4x32xi1>, vector<4x32xf32>
    %179 = tpu.concatenate %174, %178 in 1 : vector<4x32xf32>, vector<4x32xf32> -> vector<4x64xf32>
    %cst_38 = arith.constant 0.000000e+00 : f32
    %180 = vector.shape_cast %4 : vector<4x1xi1> to vector<4x1xi1>
    %181 = vector.broadcast %180 : vector<4x1xi1> to vector<4x32xi1>
    %182 = vector.broadcast %cst_38 : f32 to vector<4x32xf32>
    %183 = arith.select %181, %126, %182 : vector<4x32xi1>, vector<4x32xf32>
    %cst_39 = arith.constant 0.000000e+00 : f32
    %184 = vector.shape_cast %4 : vector<4x1xi1> to vector<4x1xi1>
    %185 = vector.broadcast %184 : vector<4x1xi1> to vector<4x32xi1>
    %186 = vector.broadcast %cst_39 : f32 to vector<4x32xf32>
    %187 = arith.select %185, %186, %126 : vector<4x32xi1>, vector<4x32xf32>
    %188 = tpu.concatenate %183, %187 in 1 : vector<4x32xf32>, vector<4x32xf32> -> vector<4x64xf32>
    %cst_40 = arith.constant 0.000000e+00 : f32
    %189 = vector.shape_cast %4 : vector<4x1xi1> to vector<4x1xi1>
    %190 = vector.broadcast %189 : vector<4x1xi1> to vector<4x32xi1>
    %191 = vector.broadcast %cst_40 : f32 to vector<4x32xf32>
    %192 = arith.select %190, %131, %191 : vector<4x32xi1>, vector<4x32xf32>
    %cst_41 = arith.constant 0.000000e+00 : f32
    %193 = vector.shape_cast %4 : vector<4x1xi1> to vector<4x1xi1>
    %194 = vector.broadcast %193 : vector<4x1xi1> to vector<4x32xi1>
    %195 = vector.broadcast %cst_41 : f32 to vector<4x32xf32>
    %196 = arith.select %194, %195, %131 : vector<4x32xi1>, vector<4x32xf32>
    %197 = tpu.concatenate %192, %196 in 1 : vector<4x32xf32>, vector<4x32xf32> -> vector<4x64xf32>
    %cst_42 = arith.constant 0.000000e+00 : f32
    %198 = vector.shape_cast %4 : vector<4x1xi1> to vector<4x1xi1>
    %199 = vector.broadcast %198 : vector<4x1xi1> to vector<4x32xi1>
    %200 = vector.broadcast %cst_42 : f32 to vector<4x32xf32>
    %201 = arith.select %199, %136, %200 : vector<4x32xi1>, vector<4x32xf32>
    %cst_43 = arith.constant 0.000000e+00 : f32
    %202 = vector.shape_cast %4 : vector<4x1xi1> to vector<4x1xi1>
    %203 = vector.broadcast %202 : vector<4x1xi1> to vector<4x32xi1>
    %204 = vector.broadcast %cst_43 : f32 to vector<4x32xf32>
    %205 = arith.select %203, %204, %136 : vector<4x32xi1>, vector<4x32xf32>
    %206 = tpu.concatenate %201, %205 in 1 : vector<4x32xf32>, vector<4x32xf32> -> vector<4x64xf32>
    %cst_44 = arith.constant 0.000000e+00 : f32
    %207 = vector.shape_cast %4 : vector<4x1xi1> to vector<4x1xi1>
    %208 = vector.broadcast %207 : vector<4x1xi1> to vector<4x32xi1>
    %209 = vector.broadcast %cst_44 : f32 to vector<4x32xf32>
    %210 = arith.select %208, %141, %209 : vector<4x32xi1>, vector<4x32xf32>
    %cst_45 = arith.constant 0.000000e+00 : f32
    %211 = vector.shape_cast %4 : vector<4x1xi1> to vector<4x1xi1>
    %212 = vector.broadcast %211 : vector<4x1xi1> to vector<4x32xi1>
    %213 = vector.broadcast %cst_45 : f32 to vector<4x32xf32>
    %214 = arith.select %212, %213, %141 : vector<4x32xi1>, vector<4x32xf32>
    %215 = tpu.concatenate %210, %214 in 1 : vector<4x32xf32>, vector<4x32xf32> -> vector<4x64xf32>
    %cst_46 = arith.constant 0.000000e+00 : f32
    %216 = vector.shape_cast %4 : vector<4x1xi1> to vector<4x1xi1>
    %217 = vector.broadcast %216 : vector<4x1xi1> to vector<4x32xi1>
    %218 = vector.broadcast %cst_46 : f32 to vector<4x32xf32>
    %219 = arith.select %217, %146, %218 : vector<4x32xi1>, vector<4x32xf32>
    %cst_47 = arith.constant 0.000000e+00 : f32
    %220 = vector.shape_cast %4 : vector<4x1xi1> to vector<4x1xi1>
    %221 = vector.broadcast %220 : vector<4x1xi1> to vector<4x32xi1>
    %222 = vector.broadcast %cst_47 : f32 to vector<4x32xf32>
    %223 = arith.select %221, %222, %146 : vector<4x32xi1>, vector<4x32xf32>
    %224 = tpu.concatenate %219, %223 in 1 : vector<4x32xf32>, vector<4x32xf32> -> vector<4x64xf32>
    %225 = tpu.concatenate %161, %170, %179, %188, %197, %206, %215, %224 in 0 : vector<4x64xf32>, vector<4x64xf32>, vector<4x64xf32>, vector<4x64xf32>, vector<4x64xf32>, vector<4x64xf32>, vector<4x64xf32>, vector<4x64xf32> -> vector<32x64xf32>
    %cst_48 = arith.constant dense<0.000000e+00> : vector<32x128xf32>
    %226 = tpu.matmul %225, %148, %cst_48 {dimension_numbers = #tpu.dot_dimension_numbers<[1], [0], [0], [1], [0, 0, 1, 1], [], []>} : vector<32x64xf32>, vector<64x128xf32>, vector<32x128xf32> -> vector<32x128xf32>
    %227 = vector.extract_strided_slice %226 {offsets = [0, 0], sizes = [4, 128], strides = [1, 1]} : vector<32x128xf32> to vector<4x128xf32>
    %228 = arith.addf %227, %152 : vector<4x128xf32>
    %229 = vector.extract_strided_slice %226 {offsets = [4, 0], sizes = [4, 128], strides = [1, 1]} : vector<32x128xf32> to vector<4x128xf32>
    %230 = arith.addf %229, %152 : vector<4x128xf32>
    %231 = vector.extract_strided_slice %226 {offsets = [8, 0], sizes = [4, 128], strides = [1, 1]} : vector<32x128xf32> to vector<4x128xf32>
    %232 = arith.addf %231, %152 : vector<4x128xf32>
    %233 = vector.extract_strided_slice %226 {offsets = [12, 0], sizes = [4, 128], strides = [1, 1]} : vector<32x128xf32> to vector<4x128xf32>
    %234 = arith.addf %233, %152 : vector<4x128xf32>
    %235 = vector.extract_strided_slice %226 {offsets = [16, 0], sizes = [4, 128], strides = [1, 1]} : vector<32x128xf32> to vector<4x128xf32>
    %236 = arith.addf %235, %152 : vector<4x128xf32>
    %237 = vector.extract_strided_slice %226 {offsets = [20, 0], sizes = [4, 128], strides = [1, 1]} : vector<32x128xf32> to vector<4x128xf32>
    %238 = arith.addf %237, %152 : vector<4x128xf32>
    %239 = vector.extract_strided_slice %226 {offsets = [24, 0], sizes = [4, 128], strides = [1, 1]} : vector<32x128xf32> to vector<4x128xf32>
    %240 = arith.addf %239, %152 : vector<4x128xf32>
    %241 = vector.extract_strided_slice %226 {offsets = [28, 0], sizes = [4, 128], strides = [1, 1]} : vector<32x128xf32> to vector<4x128xf32>
    %242 = arith.addf %241, %152 : vector<4x128xf32>
    %cst_49 = arith.constant 0.000000e+00 : f32
    %243 = vector.broadcast %cst_49 : f32 to vector<4x32xf32>
    %cst_50 = arith.constant 0.000000e+00 : f32
    %244 = vector.broadcast %cst_50 : f32 to vector<4x32xf32>
    %245 = tpu.concatenate %243, %243 in 1 : vector<4x32xf32>, vector<4x32xf32> -> vector<4x64xf32>
    %cst_51 = arith.constant 0.000000e+00 : f32
    %246 = vector.broadcast %cst_51 : f32 to vector<4x64xf32>
    %247 = arith.select %17, %245, %246 : vector<4x64xi1>, vector<4x64xf32>
    %cst_52 = arith.constant dense<0.000000e+00> : vector<4x128xf32>
    %248 = tpu.matmul %247, %150, %cst_52 {dimension_numbers = #tpu.dot_dimension_numbers<[1], [0], [0], [1], [0, 0, 1, 1], [], []>} : vector<4x64xf32>, vector<64x128xf32>, vector<4x128xf32> -> vector<4x128xf32>
    %249 = arith.addf %248, %228 : vector<4x128xf32>
    %250 = arith.negf %249 : vector<4x128xf32>
    %251 = math.exp %250 : vector<4x128xf32>
    %cst_53 = arith.constant 1.000000e+00 : f32
    %252 = vector.broadcast %cst_53 : f32 to vector<4x128xf32>
    %253 = arith.addf %252, %251 : vector<4x128xf32>
    %254 = arith.divf %252, %253 : vector<4x128xf32>
    %255 = vector.extract_strided_slice %249 {offsets = [0, 64], sizes = [4, 32], strides = [1, 1]} : vector<4x128xf32> to vector<4x32xf32>
    %256 = math.tanh %255 : vector<4x32xf32>
    %257 = vector.extract_strided_slice %254 {offsets = [0, 32], sizes = [4, 32], strides = [1, 1]} : vector<4x128xf32> to vector<4x32xf32>
    %258 = arith.mulf %257, %244 : vector<4x32xf32>
    %259 = vector.extract_strided_slice %254 {offsets = [0, 0], sizes = [4, 32], strides = [1, 1]} : vector<4x128xf32> to vector<4x32xf32>
    %260 = arith.mulf %259, %256 : vector<4x32xf32>
    %261 = arith.addf %258, %260 : vector<4x32xf32>
    %262 = vector.extract_strided_slice %254 {offsets = [0, 96], sizes = [4, 32], strides = [1, 1]} : vector<4x128xf32> to vector<4x32xf32>
    %263 = math.tanh %261 : vector<4x32xf32>
    %264 = arith.mulf %262, %263 : vector<4x32xf32>
    %265 = arith.select %23, %264, %243 : vector<4x32xi1>, vector<4x32xf32>
    %266 = arith.select %23, %261, %244 : vector<4x32xi1>, vector<4x32xf32>
    %cst_54 = arith.constant 0.000000e+00 : f32
    %267 = vector.broadcast %cst_54 : f32 to vector<4x32xf32>
    %268 = arith.select %23, %264, %267 : vector<4x32xi1>, vector<4x32xf32>
    %269 = tpu.concatenate %265, %265 in 1 : vector<4x32xf32>, vector<4x32xf32> -> vector<4x64xf32>
    %cst_55 = arith.constant 0.000000e+00 : f32
    %270 = vector.broadcast %cst_55 : f32 to vector<4x64xf32>
    %271 = arith.select %17, %269, %270 : vector<4x64xi1>, vector<4x64xf32>
    %cst_56 = arith.constant dense<0.000000e+00> : vector<4x128xf32>
    %272 = tpu.matmul %271, %150, %cst_56 {dimension_numbers = #tpu.dot_dimension_numbers<[1], [0], [0], [1], [0, 0, 1, 1], [], []>} : vector<4x64xf32>, vector<64x128xf32>, vector<4x128xf32> -> vector<4x128xf32>
    %273 = arith.addf %272, %230 : vector<4x128xf32>
    %274 = arith.negf %273 : vector<4x128xf32>
    %275 = math.exp %274 : vector<4x128xf32>
    %cst_57 = arith.constant 1.000000e+00 : f32
    %276 = vector.broadcast %cst_57 : f32 to vector<4x128xf32>
    %277 = arith.addf %276, %275 : vector<4x128xf32>
    %278 = arith.divf %276, %277 : vector<4x128xf32>
    %279 = vector.extract_strided_slice %273 {offsets = [0, 64], sizes = [4, 32], strides = [1, 1]} : vector<4x128xf32> to vector<4x32xf32>
    %280 = math.tanh %279 : vector<4x32xf32>
    %281 = vector.extract_strided_slice %278 {offsets = [0, 32], sizes = [4, 32], strides = [1, 1]} : vector<4x128xf32> to vector<4x32xf32>
    %282 = arith.mulf %281, %266 : vector<4x32xf32>
    %283 = vector.extract_strided_slice %278 {offsets = [0, 0], sizes = [4, 32], strides = [1, 1]} : vector<4x128xf32> to vector<4x32xf32>
    %284 = arith.mulf %283, %280 : vector<4x32xf32>
    %285 = arith.addf %282, %284 : vector<4x32xf32>
    %286 = vector.extract_strided_slice %278 {offsets = [0, 96], sizes = [4, 32], strides = [1, 1]} : vector<4x128xf32> to vector<4x32xf32>
    %287 = math.tanh %285 : vector<4x32xf32>
    %288 = arith.mulf %286, %287 : vector<4x32xf32>
    %289 = arith.select %34, %288, %265 : vector<4x32xi1>, vector<4x32xf32>
    %290 = arith.select %34, %285, %266 : vector<4x32xi1>, vector<4x32xf32>
    %cst_58 = arith.constant 0.000000e+00 : f32
    %291 = vector.broadcast %cst_58 : f32 to vector<4x32xf32>
    %292 = arith.select %34, %288, %291 : vector<4x32xi1>, vector<4x32xf32>
    %293 = tpu.concatenate %289, %289 in 1 : vector<4x32xf32>, vector<4x32xf32> -> vector<4x64xf32>
    %cst_59 = arith.constant 0.000000e+00 : f32
    %294 = vector.broadcast %cst_59 : f32 to vector<4x64xf32>
    %295 = arith.select %17, %293, %294 : vector<4x64xi1>, vector<4x64xf32>
    %cst_60 = arith.constant dense<0.000000e+00> : vector<4x128xf32>
    %296 = tpu.matmul %295, %150, %cst_60 {dimension_numbers = #tpu.dot_dimension_numbers<[1], [0], [0], [1], [0, 0, 1, 1], [], []>} : vector<4x64xf32>, vector<64x128xf32>, vector<4x128xf32> -> vector<4x128xf32>
    %297 = arith.addf %296, %232 : vector<4x128xf32>
    %298 = arith.negf %297 : vector<4x128xf32>
    %299 = math.exp %298 : vector<4x128xf32>
    %cst_61 = arith.constant 1.000000e+00 : f32
    %300 = vector.broadcast %cst_61 : f32 to vector<4x128xf32>
    %301 = arith.addf %300, %299 : vector<4x128xf32>
    %302 = arith.divf %300, %301 : vector<4x128xf32>
    %303 = vector.extract_strided_slice %297 {offsets = [0, 64], sizes = [4, 32], strides = [1, 1]} : vector<4x128xf32> to vector<4x32xf32>
    %304 = math.tanh %303 : vector<4x32xf32>
    %305 = vector.extract_strided_slice %302 {offsets = [0, 32], sizes = [4, 32], strides = [1, 1]} : vector<4x128xf32> to vector<4x32xf32>
    %306 = arith.mulf %305, %290 : vector<4x32xf32>
    %307 = vector.extract_strided_slice %302 {offsets = [0, 0], sizes = [4, 32], strides = [1, 1]} : vector<4x128xf32> to vector<4x32xf32>
    %308 = arith.mulf %307, %304 : vector<4x32xf32>
    %309 = arith.addf %306, %308 : vector<4x32xf32>
    %310 = vector.extract_strided_slice %302 {offsets = [0, 96], sizes = [4, 32], strides = [1, 1]} : vector<4x128xf32> to vector<4x32xf32>
    %311 = math.tanh %309 : vector<4x32xf32>
    %312 = arith.mulf %310, %311 : vector<4x32xf32>
    %313 = arith.select %45, %312, %289 : vector<4x32xi1>, vector<4x32xf32>
    %314 = arith.select %45, %309, %290 : vector<4x32xi1>, vector<4x32xf32>
    %cst_62 = arith.constant 0.000000e+00 : f32
    %315 = vector.broadcast %cst_62 : f32 to vector<4x32xf32>
    %316 = arith.select %45, %312, %315 : vector<4x32xi1>, vector<4x32xf32>
    %317 = tpu.concatenate %313, %313 in 1 : vector<4x32xf32>, vector<4x32xf32> -> vector<4x64xf32>
    %cst_63 = arith.constant 0.000000e+00 : f32
    %318 = vector.broadcast %cst_63 : f32 to vector<4x64xf32>
    %319 = arith.select %17, %317, %318 : vector<4x64xi1>, vector<4x64xf32>
    %cst_64 = arith.constant dense<0.000000e+00> : vector<4x128xf32>
    %320 = tpu.matmul %319, %150, %cst_64 {dimension_numbers = #tpu.dot_dimension_numbers<[1], [0], [0], [1], [0, 0, 1, 1], [], []>} : vector<4x64xf32>, vector<64x128xf32>, vector<4x128xf32> -> vector<4x128xf32>
    %321 = arith.addf %320, %234 : vector<4x128xf32>
    %322 = arith.negf %321 : vector<4x128xf32>
    %323 = math.exp %322 : vector<4x128xf32>
    %cst_65 = arith.constant 1.000000e+00 : f32
    %324 = vector.broadcast %cst_65 : f32 to vector<4x128xf32>
    %325 = arith.addf %324, %323 : vector<4x128xf32>
    %326 = arith.divf %324, %325 : vector<4x128xf32>
    %327 = vector.extract_strided_slice %321 {offsets = [0, 64], sizes = [4, 32], strides = [1, 1]} : vector<4x128xf32> to vector<4x32xf32>
    %328 = math.tanh %327 : vector<4x32xf32>
    %329 = vector.extract_strided_slice %326 {offsets = [0, 32], sizes = [4, 32], strides = [1, 1]} : vector<4x128xf32> to vector<4x32xf32>
    %330 = arith.mulf %329, %314 : vector<4x32xf32>
    %331 = vector.extract_strided_slice %326 {offsets = [0, 0], sizes = [4, 32], strides = [1, 1]} : vector<4x128xf32> to vector<4x32xf32>
    %332 = arith.mulf %331, %328 : vector<4x32xf32>
    %333 = arith.addf %330, %332 : vector<4x32xf32>
    %334 = vector.extract_strided_slice %326 {offsets = [0, 96], sizes = [4, 32], strides = [1, 1]} : vector<4x128xf32> to vector<4x32xf32>
    %335 = math.tanh %333 : vector<4x32xf32>
    %336 = arith.mulf %334, %335 : vector<4x32xf32>
    %337 = arith.select %56, %336, %313 : vector<4x32xi1>, vector<4x32xf32>
    %338 = arith.select %56, %333, %314 : vector<4x32xi1>, vector<4x32xf32>
    %cst_66 = arith.constant 0.000000e+00 : f32
    %339 = vector.broadcast %cst_66 : f32 to vector<4x32xf32>
    %340 = arith.select %56, %336, %339 : vector<4x32xi1>, vector<4x32xf32>
    %341 = tpu.concatenate %337, %337 in 1 : vector<4x32xf32>, vector<4x32xf32> -> vector<4x64xf32>
    %cst_67 = arith.constant 0.000000e+00 : f32
    %342 = vector.broadcast %cst_67 : f32 to vector<4x64xf32>
    %343 = arith.select %17, %341, %342 : vector<4x64xi1>, vector<4x64xf32>
    %cst_68 = arith.constant dense<0.000000e+00> : vector<4x128xf32>
    %344 = tpu.matmul %343, %150, %cst_68 {dimension_numbers = #tpu.dot_dimension_numbers<[1], [0], [0], [1], [0, 0, 1, 1], [], []>} : vector<4x64xf32>, vector<64x128xf32>, vector<4x128xf32> -> vector<4x128xf32>
    %345 = arith.addf %344, %236 : vector<4x128xf32>
    %346 = arith.negf %345 : vector<4x128xf32>
    %347 = math.exp %346 : vector<4x128xf32>
    %cst_69 = arith.constant 1.000000e+00 : f32
    %348 = vector.broadcast %cst_69 : f32 to vector<4x128xf32>
    %349 = arith.addf %348, %347 : vector<4x128xf32>
    %350 = arith.divf %348, %349 : vector<4x128xf32>
    %351 = vector.extract_strided_slice %345 {offsets = [0, 64], sizes = [4, 32], strides = [1, 1]} : vector<4x128xf32> to vector<4x32xf32>
    %352 = math.tanh %351 : vector<4x32xf32>
    %353 = vector.extract_strided_slice %350 {offsets = [0, 32], sizes = [4, 32], strides = [1, 1]} : vector<4x128xf32> to vector<4x32xf32>
    %354 = arith.mulf %353, %338 : vector<4x32xf32>
    %355 = vector.extract_strided_slice %350 {offsets = [0, 0], sizes = [4, 32], strides = [1, 1]} : vector<4x128xf32> to vector<4x32xf32>
    %356 = arith.mulf %355, %352 : vector<4x32xf32>
    %357 = arith.addf %354, %356 : vector<4x32xf32>
    %358 = vector.extract_strided_slice %350 {offsets = [0, 96], sizes = [4, 32], strides = [1, 1]} : vector<4x128xf32> to vector<4x32xf32>
    %359 = math.tanh %357 : vector<4x32xf32>
    %360 = arith.mulf %358, %359 : vector<4x32xf32>
    %361 = arith.select %67, %360, %337 : vector<4x32xi1>, vector<4x32xf32>
    %362 = arith.select %67, %357, %338 : vector<4x32xi1>, vector<4x32xf32>
    %cst_70 = arith.constant 0.000000e+00 : f32
    %363 = vector.broadcast %cst_70 : f32 to vector<4x32xf32>
    %364 = arith.select %67, %360, %363 : vector<4x32xi1>, vector<4x32xf32>
    %365 = tpu.concatenate %361, %361 in 1 : vector<4x32xf32>, vector<4x32xf32> -> vector<4x64xf32>
    %cst_71 = arith.constant 0.000000e+00 : f32
    %366 = vector.broadcast %cst_71 : f32 to vector<4x64xf32>
    %367 = arith.select %17, %365, %366 : vector<4x64xi1>, vector<4x64xf32>
    %cst_72 = arith.constant dense<0.000000e+00> : vector<4x128xf32>
    %368 = tpu.matmul %367, %150, %cst_72 {dimension_numbers = #tpu.dot_dimension_numbers<[1], [0], [0], [1], [0, 0, 1, 1], [], []>} : vector<4x64xf32>, vector<64x128xf32>, vector<4x128xf32> -> vector<4x128xf32>
    %369 = arith.addf %368, %238 : vector<4x128xf32>
    %370 = arith.negf %369 : vector<4x128xf32>
    %371 = math.exp %370 : vector<4x128xf32>
    %cst_73 = arith.constant 1.000000e+00 : f32
    %372 = vector.broadcast %cst_73 : f32 to vector<4x128xf32>
    %373 = arith.addf %372, %371 : vector<4x128xf32>
    %374 = arith.divf %372, %373 : vector<4x128xf32>
    %375 = vector.extract_strided_slice %369 {offsets = [0, 64], sizes = [4, 32], strides = [1, 1]} : vector<4x128xf32> to vector<4x32xf32>
    %376 = math.tanh %375 : vector<4x32xf32>
    %377 = vector.extract_strided_slice %374 {offsets = [0, 32], sizes = [4, 32], strides = [1, 1]} : vector<4x128xf32> to vector<4x32xf32>
    %378 = arith.mulf %377, %362 : vector<4x32xf32>
    %379 = vector.extract_strided_slice %374 {offsets = [0, 0], sizes = [4, 32], strides = [1, 1]} : vector<4x128xf32> to vector<4x32xf32>
    %380 = arith.mulf %379, %376 : vector<4x32xf32>
    %381 = arith.addf %378, %380 : vector<4x32xf32>
    %382 = vector.extract_strided_slice %374 {offsets = [0, 96], sizes = [4, 32], strides = [1, 1]} : vector<4x128xf32> to vector<4x32xf32>
    %383 = math.tanh %381 : vector<4x32xf32>
    %384 = arith.mulf %382, %383 : vector<4x32xf32>
    %385 = arith.select %78, %384, %361 : vector<4x32xi1>, vector<4x32xf32>
    %386 = arith.select %78, %381, %362 : vector<4x32xi1>, vector<4x32xf32>
    %cst_74 = arith.constant 0.000000e+00 : f32
    %387 = vector.broadcast %cst_74 : f32 to vector<4x32xf32>
    %388 = arith.select %78, %384, %387 : vector<4x32xi1>, vector<4x32xf32>
    %389 = tpu.concatenate %385, %385 in 1 : vector<4x32xf32>, vector<4x32xf32> -> vector<4x64xf32>
    %cst_75 = arith.constant 0.000000e+00 : f32
    %390 = vector.broadcast %cst_75 : f32 to vector<4x64xf32>
    %391 = arith.select %17, %389, %390 : vector<4x64xi1>, vector<4x64xf32>
    %cst_76 = arith.constant dense<0.000000e+00> : vector<4x128xf32>
    %392 = tpu.matmul %391, %150, %cst_76 {dimension_numbers = #tpu.dot_dimension_numbers<[1], [0], [0], [1], [0, 0, 1, 1], [], []>} : vector<4x64xf32>, vector<64x128xf32>, vector<4x128xf32> -> vector<4x128xf32>
    %393 = arith.addf %392, %240 : vector<4x128xf32>
    %394 = arith.negf %393 : vector<4x128xf32>
    %395 = math.exp %394 : vector<4x128xf32>
    %cst_77 = arith.constant 1.000000e+00 : f32
    %396 = vector.broadcast %cst_77 : f32 to vector<4x128xf32>
    %397 = arith.addf %396, %395 : vector<4x128xf32>
    %398 = arith.divf %396, %397 : vector<4x128xf32>
    %399 = vector.extract_strided_slice %393 {offsets = [0, 64], sizes = [4, 32], strides = [1, 1]} : vector<4x128xf32> to vector<4x32xf32>
    %400 = math.tanh %399 : vector<4x32xf32>
    %401 = vector.extract_strided_slice %398 {offsets = [0, 32], sizes = [4, 32], strides = [1, 1]} : vector<4x128xf32> to vector<4x32xf32>
    %402 = arith.mulf %401, %386 : vector<4x32xf32>
    %403 = vector.extract_strided_slice %398 {offsets = [0, 0], sizes = [4, 32], strides = [1, 1]} : vector<4x128xf32> to vector<4x32xf32>
    %404 = arith.mulf %403, %400 : vector<4x32xf32>
    %405 = arith.addf %402, %404 : vector<4x32xf32>
    %406 = vector.extract_strided_slice %398 {offsets = [0, 96], sizes = [4, 32], strides = [1, 1]} : vector<4x128xf32> to vector<4x32xf32>
    %407 = math.tanh %405 : vector<4x32xf32>
    %408 = arith.mulf %406, %407 : vector<4x32xf32>
    %409 = arith.select %89, %408, %385 : vector<4x32xi1>, vector<4x32xf32>
    %410 = arith.select %89, %405, %386 : vector<4x32xi1>, vector<4x32xf32>
    %cst_78 = arith.constant 0.000000e+00 : f32
    %411 = vector.broadcast %cst_78 : f32 to vector<4x32xf32>
    %412 = arith.select %89, %408, %411 : vector<4x32xi1>, vector<4x32xf32>
    %413 = tpu.concatenate %409, %409 in 1 : vector<4x32xf32>, vector<4x32xf32> -> vector<4x64xf32>
    %cst_79 = arith.constant 0.000000e+00 : f32
    %414 = vector.broadcast %cst_79 : f32 to vector<4x64xf32>
    %415 = arith.select %17, %413, %414 : vector<4x64xi1>, vector<4x64xf32>
    %cst_80 = arith.constant dense<0.000000e+00> : vector<4x128xf32>
    %416 = tpu.matmul %415, %150, %cst_80 {dimension_numbers = #tpu.dot_dimension_numbers<[1], [0], [0], [1], [0, 0, 1, 1], [], []>} : vector<4x64xf32>, vector<64x128xf32>, vector<4x128xf32> -> vector<4x128xf32>
    %417 = arith.addf %416, %242 : vector<4x128xf32>
    %418 = arith.negf %417 : vector<4x128xf32>
    %419 = math.exp %418 : vector<4x128xf32>
    %cst_81 = arith.constant 1.000000e+00 : f32
    %420 = vector.broadcast %cst_81 : f32 to vector<4x128xf32>
    %421 = arith.addf %420, %419 : vector<4x128xf32>
    %422 = arith.divf %420, %421 : vector<4x128xf32>
    %423 = vector.extract_strided_slice %417 {offsets = [0, 64], sizes = [4, 32], strides = [1, 1]} : vector<4x128xf32> to vector<4x32xf32>
    %424 = math.tanh %423 : vector<4x32xf32>
    %425 = vector.extract_strided_slice %422 {offsets = [0, 32], sizes = [4, 32], strides = [1, 1]} : vector<4x128xf32> to vector<4x32xf32>
    %426 = arith.mulf %425, %410 : vector<4x32xf32>
    %427 = vector.extract_strided_slice %422 {offsets = [0, 0], sizes = [4, 32], strides = [1, 1]} : vector<4x128xf32> to vector<4x32xf32>
    %428 = arith.mulf %427, %424 : vector<4x32xf32>
    %429 = arith.addf %426, %428 : vector<4x32xf32>
    %430 = vector.extract_strided_slice %422 {offsets = [0, 96], sizes = [4, 32], strides = [1, 1]} : vector<4x128xf32> to vector<4x32xf32>
    %431 = math.tanh %429 : vector<4x32xf32>
    %432 = arith.mulf %430, %431 : vector<4x32xf32>
    %cst_82 = arith.constant 0.000000e+00 : f32
    %433 = vector.broadcast %cst_82 : f32 to vector<4x32xf32>
    %434 = arith.select %100, %432, %433 : vector<4x32xi1>, vector<4x32xf32>
    %435 = vector.extract_strided_slice %268 {offsets = [0, 0], sizes = [2, 32], strides = [1, 1]} : vector<4x32xf32> to vector<2x32xf32>
    %436 = vector.extract_strided_slice %434 {offsets = [0, 0], sizes = [2, 32], strides = [1, 1]} : vector<4x32xf32> to vector<2x32xf32>
    %437 = tpu.concatenate %435, %436 in 0 : vector<2x32xf32>, vector<2x32xf32> -> vector<4x32xf32>
    %438 = vector.extract_strided_slice %434 {offsets = [2, 0], sizes = [2, 32], strides = [1, 1]} : vector<4x32xf32> to vector<2x32xf32>
    %439 = vector.extract_strided_slice %268 {offsets = [2, 0], sizes = [2, 32], strides = [1, 1]} : vector<4x32xf32> to vector<2x32xf32>
    %440 = tpu.concatenate %438, %439 in 0 : vector<2x32xf32>, vector<2x32xf32> -> vector<4x32xf32>
    %441 = tpu.concatenate %437, %440 in 1 : vector<4x32xf32>, vector<4x32xf32> -> vector<4x64xf32>
    %442 = vector.extract_strided_slice %292 {offsets = [0, 0], sizes = [2, 32], strides = [1, 1]} : vector<4x32xf32> to vector<2x32xf32>
    %443 = vector.extract_strided_slice %412 {offsets = [0, 0], sizes = [2, 32], strides = [1, 1]} : vector<4x32xf32> to vector<2x32xf32>
    %444 = tpu.concatenate %442, %443 in 0 : vector<2x32xf32>, vector<2x32xf32> -> vector<4x32xf32>
    %445 = vector.extract_strided_slice %412 {offsets = [2, 0], sizes = [2, 32], strides = [1, 1]} : vector<4x32xf32> to vector<2x32xf32>
    %446 = vector.extract_strided_slice %292 {offsets = [2, 0], sizes = [2, 32], strides = [1, 1]} : vector<4x32xf32> to vector<2x32xf32>
    %447 = tpu.concatenate %445, %446 in 0 : vector<2x32xf32>, vector<2x32xf32> -> vector<4x32xf32>
    %448 = tpu.concatenate %444, %447 in 1 : vector<4x32xf32>, vector<4x32xf32> -> vector<4x64xf32>
    %449 = vector.extract_strided_slice %316 {offsets = [0, 0], sizes = [2, 32], strides = [1, 1]} : vector<4x32xf32> to vector<2x32xf32>
    %450 = vector.extract_strided_slice %388 {offsets = [0, 0], sizes = [2, 32], strides = [1, 1]} : vector<4x32xf32> to vector<2x32xf32>
    %451 = tpu.concatenate %449, %450 in 0 : vector<2x32xf32>, vector<2x32xf32> -> vector<4x32xf32>
    %452 = vector.extract_strided_slice %388 {offsets = [2, 0], sizes = [2, 32], strides = [1, 1]} : vector<4x32xf32> to vector<2x32xf32>
    %453 = vector.extract_strided_slice %316 {offsets = [2, 0], sizes = [2, 32], strides = [1, 1]} : vector<4x32xf32> to vector<2x32xf32>
    %454 = tpu.concatenate %452, %453 in 0 : vector<2x32xf32>, vector<2x32xf32> -> vector<4x32xf32>
    %455 = tpu.concatenate %451, %454 in 1 : vector<4x32xf32>, vector<4x32xf32> -> vector<4x64xf32>
    %456 = vector.extract_strided_slice %340 {offsets = [0, 0], sizes = [2, 32], strides = [1, 1]} : vector<4x32xf32> to vector<2x32xf32>
    %457 = vector.extract_strided_slice %364 {offsets = [0, 0], sizes = [2, 32], strides = [1, 1]} : vector<4x32xf32> to vector<2x32xf32>
    %458 = tpu.concatenate %456, %457 in 0 : vector<2x32xf32>, vector<2x32xf32> -> vector<4x32xf32>
    %459 = vector.extract_strided_slice %364 {offsets = [2, 0], sizes = [2, 32], strides = [1, 1]} : vector<4x32xf32> to vector<2x32xf32>
    %460 = vector.extract_strided_slice %340 {offsets = [2, 0], sizes = [2, 32], strides = [1, 1]} : vector<4x32xf32> to vector<2x32xf32>
    %461 = tpu.concatenate %459, %460 in 0 : vector<2x32xf32>, vector<2x32xf32> -> vector<4x32xf32>
    %462 = tpu.concatenate %458, %461 in 1 : vector<4x32xf32>, vector<4x32xf32> -> vector<4x64xf32>
    %463 = vector.extract_strided_slice %364 {offsets = [0, 0], sizes = [2, 32], strides = [1, 1]} : vector<4x32xf32> to vector<2x32xf32>
    %464 = vector.extract_strided_slice %340 {offsets = [0, 0], sizes = [2, 32], strides = [1, 1]} : vector<4x32xf32> to vector<2x32xf32>
    %465 = tpu.concatenate %463, %464 in 0 : vector<2x32xf32>, vector<2x32xf32> -> vector<4x32xf32>
    %466 = vector.extract_strided_slice %340 {offsets = [2, 0], sizes = [2, 32], strides = [1, 1]} : vector<4x32xf32> to vector<2x32xf32>
    %467 = vector.extract_strided_slice %364 {offsets = [2, 0], sizes = [2, 32], strides = [1, 1]} : vector<4x32xf32> to vector<2x32xf32>
    %468 = tpu.concatenate %466, %467 in 0 : vector<2x32xf32>, vector<2x32xf32> -> vector<4x32xf32>
    %469 = tpu.concatenate %465, %468 in 1 : vector<4x32xf32>, vector<4x32xf32> -> vector<4x64xf32>
    %470 = vector.extract_strided_slice %388 {offsets = [0, 0], sizes = [2, 32], strides = [1, 1]} : vector<4x32xf32> to vector<2x32xf32>
    %471 = vector.extract_strided_slice %316 {offsets = [0, 0], sizes = [2, 32], strides = [1, 1]} : vector<4x32xf32> to vector<2x32xf32>
    %472 = tpu.concatenate %470, %471 in 0 : vector<2x32xf32>, vector<2x32xf32> -> vector<4x32xf32>
    %473 = vector.extract_strided_slice %316 {offsets = [2, 0], sizes = [2, 32], strides = [1, 1]} : vector<4x32xf32> to vector<2x32xf32>
    %474 = vector.extract_strided_slice %388 {offsets = [2, 0], sizes = [2, 32], strides = [1, 1]} : vector<4x32xf32> to vector<2x32xf32>
    %475 = tpu.concatenate %473, %474 in 0 : vector<2x32xf32>, vector<2x32xf32> -> vector<4x32xf32>
    %476 = tpu.concatenate %472, %475 in 1 : vector<4x32xf32>, vector<4x32xf32> -> vector<4x64xf32>
    %477 = vector.extract_strided_slice %412 {offsets = [0, 0], sizes = [2, 32], strides = [1, 1]} : vector<4x32xf32> to vector<2x32xf32>
    %478 = vector.extract_strided_slice %292 {offsets = [0, 0], sizes = [2, 32], strides = [1, 1]} : vector<4x32xf32> to vector<2x32xf32>
    %479 = tpu.concatenate %477, %478 in 0 : vector<2x32xf32>, vector<2x32xf32> -> vector<4x32xf32>
    %480 = vector.extract_strided_slice %292 {offsets = [2, 0], sizes = [2, 32], strides = [1, 1]} : vector<4x32xf32> to vector<2x32xf32>
    %481 = vector.extract_strided_slice %412 {offsets = [2, 0], sizes = [2, 32], strides = [1, 1]} : vector<4x32xf32> to vector<2x32xf32>
    %482 = tpu.concatenate %480, %481 in 0 : vector<2x32xf32>, vector<2x32xf32> -> vector<4x32xf32>
    %483 = tpu.concatenate %479, %482 in 1 : vector<4x32xf32>, vector<4x32xf32> -> vector<4x64xf32>
    %484 = vector.extract_strided_slice %434 {offsets = [0, 0], sizes = [2, 32], strides = [1, 1]} : vector<4x32xf32> to vector<2x32xf32>
    %485 = vector.extract_strided_slice %268 {offsets = [0, 0], sizes = [2, 32], strides = [1, 1]} : vector<4x32xf32> to vector<2x32xf32>
    %486 = tpu.concatenate %484, %485 in 0 : vector<2x32xf32>, vector<2x32xf32> -> vector<4x32xf32>
    %487 = vector.extract_strided_slice %268 {offsets = [2, 0], sizes = [2, 32], strides = [1, 1]} : vector<4x32xf32> to vector<2x32xf32>
    %488 = vector.extract_strided_slice %434 {offsets = [2, 0], sizes = [2, 32], strides = [1, 1]} : vector<4x32xf32> to vector<2x32xf32>
    %489 = tpu.concatenate %487, %488 in 0 : vector<2x32xf32>, vector<2x32xf32> -> vector<4x32xf32>
    %490 = tpu.concatenate %486, %489 in 1 : vector<4x32xf32>, vector<4x32xf32> -> vector<4x64xf32>
    %c0_83 = arith.constant 0 : index
    %c0_84 = arith.constant 0 : index
    %c0_85 = arith.constant 0 : index
    %491 = vector.load %arg3[%c0_83, %c0_84, %c0_85] : memref<2x128x128xf32, #tpu.memory_space<vmem>>, vector<1x128x128xf32>
    %492 = vector.shape_cast %491 : vector<1x128x128xf32> to vector<128x128xf32>
    %c1 = arith.constant 1 : index
    %c0_86 = arith.constant 0 : index
    %c0_87 = arith.constant 0 : index
    %493 = vector.load %arg4[%c1, %c0_86, %c0_87] : memref<3x64x128xf32, #tpu.memory_space<vmem>>, vector<1x64x128xf32>
    %494 = vector.shape_cast %493 : vector<1x64x128xf32> to vector<64x128xf32>
    %c1_88 = arith.constant 1 : index
    %c0_89 = arith.constant 0 : index
    %c0_90 = arith.constant 0 : index
    %495 = vector.load %arg5[%c1_88, %c0_89, %c0_90] : memref<3x4x128xf32, #tpu.memory_space<vmem>>, vector<1x4x128xf32>
    %496 = vector.shape_cast %495 : vector<1x4x128xf32> to vector<4x128xf32>
    %cst_91 = arith.constant 0.000000e+00 : f32
    %497 = vector.shape_cast %4 : vector<4x1xi1> to vector<4x1xi1>
    %498 = vector.broadcast %497 : vector<4x1xi1> to vector<4x64xi1>
    %499 = vector.broadcast %cst_91 : f32 to vector<4x64xf32>
    %500 = arith.select %498, %441, %499 : vector<4x64xi1>, vector<4x64xf32>
    %cst_92 = arith.constant 0.000000e+00 : f32
    %501 = vector.shape_cast %4 : vector<4x1xi1> to vector<4x1xi1>
    %502 = vector.broadcast %501 : vector<4x1xi1> to vector<4x64xi1>
    %503 = vector.broadcast %cst_92 : f32 to vector<4x64xf32>
    %504 = arith.select %502, %503, %441 : vector<4x64xi1>, vector<4x64xf32>
    %505 = tpu.concatenate %500, %504 in 1 : vector<4x64xf32>, vector<4x64xf32> -> vector<4x128xf32>
    %cst_93 = arith.constant 0.000000e+00 : f32
    %506 = vector.shape_cast %4 : vector<4x1xi1> to vector<4x1xi1>
    %507 = vector.broadcast %506 : vector<4x1xi1> to vector<4x64xi1>
    %508 = vector.broadcast %cst_93 : f32 to vector<4x64xf32>
    %509 = arith.select %507, %448, %508 : vector<4x64xi1>, vector<4x64xf32>
    %cst_94 = arith.constant 0.000000e+00 : f32
    %510 = vector.shape_cast %4 : vector<4x1xi1> to vector<4x1xi1>
    %511 = vector.broadcast %510 : vector<4x1xi1> to vector<4x64xi1>
    %512 = vector.broadcast %cst_94 : f32 to vector<4x64xf32>
    %513 = arith.select %511, %512, %448 : vector<4x64xi1>, vector<4x64xf32>
    %514 = tpu.concatenate %509, %513 in 1 : vector<4x64xf32>, vector<4x64xf32> -> vector<4x128xf32>
    %cst_95 = arith.constant 0.000000e+00 : f32
    %515 = vector.shape_cast %4 : vector<4x1xi1> to vector<4x1xi1>
    %516 = vector.broadcast %515 : vector<4x1xi1> to vector<4x64xi1>
    %517 = vector.broadcast %cst_95 : f32 to vector<4x64xf32>
    %518 = arith.select %516, %455, %517 : vector<4x64xi1>, vector<4x64xf32>
    %cst_96 = arith.constant 0.000000e+00 : f32
    %519 = vector.shape_cast %4 : vector<4x1xi1> to vector<4x1xi1>
    %520 = vector.broadcast %519 : vector<4x1xi1> to vector<4x64xi1>
    %521 = vector.broadcast %cst_96 : f32 to vector<4x64xf32>
    %522 = arith.select %520, %521, %455 : vector<4x64xi1>, vector<4x64xf32>
    %523 = tpu.concatenate %518, %522 in 1 : vector<4x64xf32>, vector<4x64xf32> -> vector<4x128xf32>
    %cst_97 = arith.constant 0.000000e+00 : f32
    %524 = vector.shape_cast %4 : vector<4x1xi1> to vector<4x1xi1>
    %525 = vector.broadcast %524 : vector<4x1xi1> to vector<4x64xi1>
    %526 = vector.broadcast %cst_97 : f32 to vector<4x64xf32>
    %527 = arith.select %525, %462, %526 : vector<4x64xi1>, vector<4x64xf32>
    %cst_98 = arith.constant 0.000000e+00 : f32
    %528 = vector.shape_cast %4 : vector<4x1xi1> to vector<4x1xi1>
    %529 = vector.broadcast %528 : vector<4x1xi1> to vector<4x64xi1>
    %530 = vector.broadcast %cst_98 : f32 to vector<4x64xf32>
    %531 = arith.select %529, %530, %462 : vector<4x64xi1>, vector<4x64xf32>
    %532 = tpu.concatenate %527, %531 in 1 : vector<4x64xf32>, vector<4x64xf32> -> vector<4x128xf32>
    %cst_99 = arith.constant 0.000000e+00 : f32
    %533 = vector.shape_cast %4 : vector<4x1xi1> to vector<4x1xi1>
    %534 = vector.broadcast %533 : vector<4x1xi1> to vector<4x64xi1>
    %535 = vector.broadcast %cst_99 : f32 to vector<4x64xf32>
    %536 = arith.select %534, %469, %535 : vector<4x64xi1>, vector<4x64xf32>
    %cst_100 = arith.constant 0.000000e+00 : f32
    %537 = vector.shape_cast %4 : vector<4x1xi1> to vector<4x1xi1>
    %538 = vector.broadcast %537 : vector<4x1xi1> to vector<4x64xi1>
    %539 = vector.broadcast %cst_100 : f32 to vector<4x64xf32>
    %540 = arith.select %538, %539, %469 : vector<4x64xi1>, vector<4x64xf32>
    %541 = tpu.concatenate %536, %540 in 1 : vector<4x64xf32>, vector<4x64xf32> -> vector<4x128xf32>
    %cst_101 = arith.constant 0.000000e+00 : f32
    %542 = vector.shape_cast %4 : vector<4x1xi1> to vector<4x1xi1>
    %543 = vector.broadcast %542 : vector<4x1xi1> to vector<4x64xi1>
    %544 = vector.broadcast %cst_101 : f32 to vector<4x64xf32>
    %545 = arith.select %543, %476, %544 : vector<4x64xi1>, vector<4x64xf32>
    %cst_102 = arith.constant 0.000000e+00 : f32
    %546 = vector.shape_cast %4 : vector<4x1xi1> to vector<4x1xi1>
    %547 = vector.broadcast %546 : vector<4x1xi1> to vector<4x64xi1>
    %548 = vector.broadcast %cst_102 : f32 to vector<4x64xf32>
    %549 = arith.select %547, %548, %476 : vector<4x64xi1>, vector<4x64xf32>
    %550 = tpu.concatenate %545, %549 in 1 : vector<4x64xf32>, vector<4x64xf32> -> vector<4x128xf32>
    %cst_103 = arith.constant 0.000000e+00 : f32
    %551 = vector.shape_cast %4 : vector<4x1xi1> to vector<4x1xi1>
    %552 = vector.broadcast %551 : vector<4x1xi1> to vector<4x64xi1>
    %553 = vector.broadcast %cst_103 : f32 to vector<4x64xf32>
    %554 = arith.select %552, %483, %553 : vector<4x64xi1>, vector<4x64xf32>
    %cst_104 = arith.constant 0.000000e+00 : f32
    %555 = vector.shape_cast %4 : vector<4x1xi1> to vector<4x1xi1>
    %556 = vector.broadcast %555 : vector<4x1xi1> to vector<4x64xi1>
    %557 = vector.broadcast %cst_104 : f32 to vector<4x64xf32>
    %558 = arith.select %556, %557, %483 : vector<4x64xi1>, vector<4x64xf32>
    %559 = tpu.concatenate %554, %558 in 1 : vector<4x64xf32>, vector<4x64xf32> -> vector<4x128xf32>
    %cst_105 = arith.constant 0.000000e+00 : f32
    %560 = vector.shape_cast %4 : vector<4x1xi1> to vector<4x1xi1>
    %561 = vector.broadcast %560 : vector<4x1xi1> to vector<4x64xi1>
    %562 = vector.broadcast %cst_105 : f32 to vector<4x64xf32>
    %563 = arith.select %561, %490, %562 : vector<4x64xi1>, vector<4x64xf32>
    %cst_106 = arith.constant 0.000000e+00 : f32
    %564 = vector.shape_cast %4 : vector<4x1xi1> to vector<4x1xi1>
    %565 = vector.broadcast %564 : vector<4x1xi1> to vector<4x64xi1>
    %566 = vector.broadcast %cst_106 : f32 to vector<4x64xf32>
    %567 = arith.select %565, %566, %490 : vector<4x64xi1>, vector<4x64xf32>
    %568 = tpu.concatenate %563, %567 in 1 : vector<4x64xf32>, vector<4x64xf32> -> vector<4x128xf32>
    %569 = tpu.concatenate %505, %514, %523, %532, %541, %550, %559, %568 in 0 : vector<4x128xf32>, vector<4x128xf32>, vector<4x128xf32>, vector<4x128xf32>, vector<4x128xf32>, vector<4x128xf32>, vector<4x128xf32>, vector<4x128xf32> -> vector<32x128xf32>
    %cst_107 = arith.constant dense<0.000000e+00> : vector<32x128xf32>
    %570 = tpu.matmul %569, %492, %cst_107 {dimension_numbers = #tpu.dot_dimension_numbers<[1], [0], [0], [1], [0, 0, 1, 1], [], []>} : vector<32x128xf32>, vector<128x128xf32>, vector<32x128xf32> -> vector<32x128xf32>
    %571 = vector.extract_strided_slice %570 {offsets = [0, 0], sizes = [4, 128], strides = [1, 1]} : vector<32x128xf32> to vector<4x128xf32>
    %572 = arith.addf %571, %496 : vector<4x128xf32>
    %573 = vector.extract_strided_slice %570 {offsets = [4, 0], sizes = [4, 128], strides = [1, 1]} : vector<32x128xf32> to vector<4x128xf32>
    %574 = arith.addf %573, %496 : vector<4x128xf32>
    %575 = vector.extract_strided_slice %570 {offsets = [8, 0], sizes = [4, 128], strides = [1, 1]} : vector<32x128xf32> to vector<4x128xf32>
    %576 = arith.addf %575, %496 : vector<4x128xf32>
    %577 = vector.extract_strided_slice %570 {offsets = [12, 0], sizes = [4, 128], strides = [1, 1]} : vector<32x128xf32> to vector<4x128xf32>
    %578 = arith.addf %577, %496 : vector<4x128xf32>
    %579 = vector.extract_strided_slice %570 {offsets = [16, 0], sizes = [4, 128], strides = [1, 1]} : vector<32x128xf32> to vector<4x128xf32>
    %580 = arith.addf %579, %496 : vector<4x128xf32>
    %581 = vector.extract_strided_slice %570 {offsets = [20, 0], sizes = [4, 128], strides = [1, 1]} : vector<32x128xf32> to vector<4x128xf32>
    %582 = arith.addf %581, %496 : vector<4x128xf32>
    %583 = vector.extract_strided_slice %570 {offsets = [24, 0], sizes = [4, 128], strides = [1, 1]} : vector<32x128xf32> to vector<4x128xf32>
    %584 = arith.addf %583, %496 : vector<4x128xf32>
    %585 = vector.extract_strided_slice %570 {offsets = [28, 0], sizes = [4, 128], strides = [1, 1]} : vector<32x128xf32> to vector<4x128xf32>
    %586 = arith.addf %585, %496 : vector<4x128xf32>
    %cst_108 = arith.constant 0.000000e+00 : f32
    %587 = vector.broadcast %cst_108 : f32 to vector<4x32xf32>
    %cst_109 = arith.constant 0.000000e+00 : f32
    %588 = vector.broadcast %cst_109 : f32 to vector<4x32xf32>
    %589 = tpu.concatenate %587, %587 in 1 : vector<4x32xf32>, vector<4x32xf32> -> vector<4x64xf32>
    %cst_110 = arith.constant 0.000000e+00 : f32
    %590 = vector.broadcast %cst_110 : f32 to vector<4x64xf32>
    %591 = arith.select %17, %589, %590 : vector<4x64xi1>, vector<4x64xf32>
    %cst_111 = arith.constant dense<0.000000e+00> : vector<4x128xf32>
    %592 = tpu.matmul %591, %494, %cst_111 {dimension_numbers = #tpu.dot_dimension_numbers<[1], [0], [0], [1], [0, 0, 1, 1], [], []>} : vector<4x64xf32>, vector<64x128xf32>, vector<4x128xf32> -> vector<4x128xf32>
    %593 = arith.addf %592, %572 : vector<4x128xf32>
    %594 = arith.negf %593 : vector<4x128xf32>
    %595 = math.exp %594 : vector<4x128xf32>
    %cst_112 = arith.constant 1.000000e+00 : f32
    %596 = vector.broadcast %cst_112 : f32 to vector<4x128xf32>
    %597 = arith.addf %596, %595 : vector<4x128xf32>
    %598 = arith.divf %596, %597 : vector<4x128xf32>
    %599 = vector.extract_strided_slice %593 {offsets = [0, 64], sizes = [4, 32], strides = [1, 1]} : vector<4x128xf32> to vector<4x32xf32>
    %600 = math.tanh %599 : vector<4x32xf32>
    %601 = vector.extract_strided_slice %598 {offsets = [0, 32], sizes = [4, 32], strides = [1, 1]} : vector<4x128xf32> to vector<4x32xf32>
    %602 = arith.mulf %601, %588 : vector<4x32xf32>
    %603 = vector.extract_strided_slice %598 {offsets = [0, 0], sizes = [4, 32], strides = [1, 1]} : vector<4x128xf32> to vector<4x32xf32>
    %604 = arith.mulf %603, %600 : vector<4x32xf32>
    %605 = arith.addf %602, %604 : vector<4x32xf32>
    %606 = vector.extract_strided_slice %598 {offsets = [0, 96], sizes = [4, 32], strides = [1, 1]} : vector<4x128xf32> to vector<4x32xf32>
    %607 = math.tanh %605 : vector<4x32xf32>
    %608 = arith.mulf %606, %607 : vector<4x32xf32>
    %609 = arith.select %23, %608, %587 : vector<4x32xi1>, vector<4x32xf32>
    %610 = arith.select %23, %605, %588 : vector<4x32xi1>, vector<4x32xf32>
    %cst_113 = arith.constant 0.000000e+00 : f32
    %611 = vector.broadcast %cst_113 : f32 to vector<4x32xf32>
    %612 = arith.select %23, %608, %611 : vector<4x32xi1>, vector<4x32xf32>
    %613 = tpu.concatenate %609, %609 in 1 : vector<4x32xf32>, vector<4x32xf32> -> vector<4x64xf32>
    %cst_114 = arith.constant 0.000000e+00 : f32
    %614 = vector.broadcast %cst_114 : f32 to vector<4x64xf32>
    %615 = arith.select %17, %613, %614 : vector<4x64xi1>, vector<4x64xf32>
    %cst_115 = arith.constant dense<0.000000e+00> : vector<4x128xf32>
    %616 = tpu.matmul %615, %494, %cst_115 {dimension_numbers = #tpu.dot_dimension_numbers<[1], [0], [0], [1], [0, 0, 1, 1], [], []>} : vector<4x64xf32>, vector<64x128xf32>, vector<4x128xf32> -> vector<4x128xf32>
    %617 = arith.addf %616, %574 : vector<4x128xf32>
    %618 = arith.negf %617 : vector<4x128xf32>
    %619 = math.exp %618 : vector<4x128xf32>
    %cst_116 = arith.constant 1.000000e+00 : f32
    %620 = vector.broadcast %cst_116 : f32 to vector<4x128xf32>
    %621 = arith.addf %620, %619 : vector<4x128xf32>
    %622 = arith.divf %620, %621 : vector<4x128xf32>
    %623 = vector.extract_strided_slice %617 {offsets = [0, 64], sizes = [4, 32], strides = [1, 1]} : vector<4x128xf32> to vector<4x32xf32>
    %624 = math.tanh %623 : vector<4x32xf32>
    %625 = vector.extract_strided_slice %622 {offsets = [0, 32], sizes = [4, 32], strides = [1, 1]} : vector<4x128xf32> to vector<4x32xf32>
    %626 = arith.mulf %625, %610 : vector<4x32xf32>
    %627 = vector.extract_strided_slice %622 {offsets = [0, 0], sizes = [4, 32], strides = [1, 1]} : vector<4x128xf32> to vector<4x32xf32>
    %628 = arith.mulf %627, %624 : vector<4x32xf32>
    %629 = arith.addf %626, %628 : vector<4x32xf32>
    %630 = vector.extract_strided_slice %622 {offsets = [0, 96], sizes = [4, 32], strides = [1, 1]} : vector<4x128xf32> to vector<4x32xf32>
    %631 = math.tanh %629 : vector<4x32xf32>
    %632 = arith.mulf %630, %631 : vector<4x32xf32>
    %633 = arith.select %34, %632, %609 : vector<4x32xi1>, vector<4x32xf32>
    %634 = arith.select %34, %629, %610 : vector<4x32xi1>, vector<4x32xf32>
    %cst_117 = arith.constant 0.000000e+00 : f32
    %635 = vector.broadcast %cst_117 : f32 to vector<4x32xf32>
    %636 = arith.select %34, %632, %635 : vector<4x32xi1>, vector<4x32xf32>
    %637 = tpu.concatenate %633, %633 in 1 : vector<4x32xf32>, vector<4x32xf32> -> vector<4x64xf32>
    %cst_118 = arith.constant 0.000000e+00 : f32
    %638 = vector.broadcast %cst_118 : f32 to vector<4x64xf32>
    %639 = arith.select %17, %637, %638 : vector<4x64xi1>, vector<4x64xf32>
    %cst_119 = arith.constant dense<0.000000e+00> : vector<4x128xf32>
    %640 = tpu.matmul %639, %494, %cst_119 {dimension_numbers = #tpu.dot_dimension_numbers<[1], [0], [0], [1], [0, 0, 1, 1], [], []>} : vector<4x64xf32>, vector<64x128xf32>, vector<4x128xf32> -> vector<4x128xf32>
    %641 = arith.addf %640, %576 : vector<4x128xf32>
    %642 = arith.negf %641 : vector<4x128xf32>
    %643 = math.exp %642 : vector<4x128xf32>
    %cst_120 = arith.constant 1.000000e+00 : f32
    %644 = vector.broadcast %cst_120 : f32 to vector<4x128xf32>
    %645 = arith.addf %644, %643 : vector<4x128xf32>
    %646 = arith.divf %644, %645 : vector<4x128xf32>
    %647 = vector.extract_strided_slice %641 {offsets = [0, 64], sizes = [4, 32], strides = [1, 1]} : vector<4x128xf32> to vector<4x32xf32>
    %648 = math.tanh %647 : vector<4x32xf32>
    %649 = vector.extract_strided_slice %646 {offsets = [0, 32], sizes = [4, 32], strides = [1, 1]} : vector<4x128xf32> to vector<4x32xf32>
    %650 = arith.mulf %649, %634 : vector<4x32xf32>
    %651 = vector.extract_strided_slice %646 {offsets = [0, 0], sizes = [4, 32], strides = [1, 1]} : vector<4x128xf32> to vector<4x32xf32>
    %652 = arith.mulf %651, %648 : vector<4x32xf32>
    %653 = arith.addf %650, %652 : vector<4x32xf32>
    %654 = vector.extract_strided_slice %646 {offsets = [0, 96], sizes = [4, 32], strides = [1, 1]} : vector<4x128xf32> to vector<4x32xf32>
    %655 = math.tanh %653 : vector<4x32xf32>
    %656 = arith.mulf %654, %655 : vector<4x32xf32>
    %657 = arith.select %45, %656, %633 : vector<4x32xi1>, vector<4x32xf32>
    %658 = arith.select %45, %653, %634 : vector<4x32xi1>, vector<4x32xf32>
    %cst_121 = arith.constant 0.000000e+00 : f32
    %659 = vector.broadcast %cst_121 : f32 to vector<4x32xf32>
    %660 = arith.select %45, %656, %659 : vector<4x32xi1>, vector<4x32xf32>
    %661 = tpu.concatenate %657, %657 in 1 : vector<4x32xf32>, vector<4x32xf32> -> vector<4x64xf32>
    %cst_122 = arith.constant 0.000000e+00 : f32
    %662 = vector.broadcast %cst_122 : f32 to vector<4x64xf32>
    %663 = arith.select %17, %661, %662 : vector<4x64xi1>, vector<4x64xf32>
    %cst_123 = arith.constant dense<0.000000e+00> : vector<4x128xf32>
    %664 = tpu.matmul %663, %494, %cst_123 {dimension_numbers = #tpu.dot_dimension_numbers<[1], [0], [0], [1], [0, 0, 1, 1], [], []>} : vector<4x64xf32>, vector<64x128xf32>, vector<4x128xf32> -> vector<4x128xf32>
    %665 = arith.addf %664, %578 : vector<4x128xf32>
    %666 = arith.negf %665 : vector<4x128xf32>
    %667 = math.exp %666 : vector<4x128xf32>
    %cst_124 = arith.constant 1.000000e+00 : f32
    %668 = vector.broadcast %cst_124 : f32 to vector<4x128xf32>
    %669 = arith.addf %668, %667 : vector<4x128xf32>
    %670 = arith.divf %668, %669 : vector<4x128xf32>
    %671 = vector.extract_strided_slice %665 {offsets = [0, 64], sizes = [4, 32], strides = [1, 1]} : vector<4x128xf32> to vector<4x32xf32>
    %672 = math.tanh %671 : vector<4x32xf32>
    %673 = vector.extract_strided_slice %670 {offsets = [0, 32], sizes = [4, 32], strides = [1, 1]} : vector<4x128xf32> to vector<4x32xf32>
    %674 = arith.mulf %673, %658 : vector<4x32xf32>
    %675 = vector.extract_strided_slice %670 {offsets = [0, 0], sizes = [4, 32], strides = [1, 1]} : vector<4x128xf32> to vector<4x32xf32>
    %676 = arith.mulf %675, %672 : vector<4x32xf32>
    %677 = arith.addf %674, %676 : vector<4x32xf32>
    %678 = vector.extract_strided_slice %670 {offsets = [0, 96], sizes = [4, 32], strides = [1, 1]} : vector<4x128xf32> to vector<4x32xf32>
    %679 = math.tanh %677 : vector<4x32xf32>
    %680 = arith.mulf %678, %679 : vector<4x32xf32>
    %681 = arith.select %56, %680, %657 : vector<4x32xi1>, vector<4x32xf32>
    %682 = arith.select %56, %677, %658 : vector<4x32xi1>, vector<4x32xf32>
    %cst_125 = arith.constant 0.000000e+00 : f32
    %683 = vector.broadcast %cst_125 : f32 to vector<4x32xf32>
    %684 = arith.select %56, %680, %683 : vector<4x32xi1>, vector<4x32xf32>
    %685 = tpu.concatenate %681, %681 in 1 : vector<4x32xf32>, vector<4x32xf32> -> vector<4x64xf32>
    %cst_126 = arith.constant 0.000000e+00 : f32
    %686 = vector.broadcast %cst_126 : f32 to vector<4x64xf32>
    %687 = arith.select %17, %685, %686 : vector<4x64xi1>, vector<4x64xf32>
    %cst_127 = arith.constant dense<0.000000e+00> : vector<4x128xf32>
    %688 = tpu.matmul %687, %494, %cst_127 {dimension_numbers = #tpu.dot_dimension_numbers<[1], [0], [0], [1], [0, 0, 1, 1], [], []>} : vector<4x64xf32>, vector<64x128xf32>, vector<4x128xf32> -> vector<4x128xf32>
    %689 = arith.addf %688, %580 : vector<4x128xf32>
    %690 = arith.negf %689 : vector<4x128xf32>
    %691 = math.exp %690 : vector<4x128xf32>
    %cst_128 = arith.constant 1.000000e+00 : f32
    %692 = vector.broadcast %cst_128 : f32 to vector<4x128xf32>
    %693 = arith.addf %692, %691 : vector<4x128xf32>
    %694 = arith.divf %692, %693 : vector<4x128xf32>
    %695 = vector.extract_strided_slice %689 {offsets = [0, 64], sizes = [4, 32], strides = [1, 1]} : vector<4x128xf32> to vector<4x32xf32>
    %696 = math.tanh %695 : vector<4x32xf32>
    %697 = vector.extract_strided_slice %694 {offsets = [0, 32], sizes = [4, 32], strides = [1, 1]} : vector<4x128xf32> to vector<4x32xf32>
    %698 = arith.mulf %697, %682 : vector<4x32xf32>
    %699 = vector.extract_strided_slice %694 {offsets = [0, 0], sizes = [4, 32], strides = [1, 1]} : vector<4x128xf32> to vector<4x32xf32>
    %700 = arith.mulf %699, %696 : vector<4x32xf32>
    %701 = arith.addf %698, %700 : vector<4x32xf32>
    %702 = vector.extract_strided_slice %694 {offsets = [0, 96], sizes = [4, 32], strides = [1, 1]} : vector<4x128xf32> to vector<4x32xf32>
    %703 = math.tanh %701 : vector<4x32xf32>
    %704 = arith.mulf %702, %703 : vector<4x32xf32>
    %705 = arith.select %67, %704, %681 : vector<4x32xi1>, vector<4x32xf32>
    %706 = arith.select %67, %701, %682 : vector<4x32xi1>, vector<4x32xf32>
    %cst_129 = arith.constant 0.000000e+00 : f32
    %707 = vector.broadcast %cst_129 : f32 to vector<4x32xf32>
    %708 = arith.select %67, %704, %707 : vector<4x32xi1>, vector<4x32xf32>
    %709 = tpu.concatenate %705, %705 in 1 : vector<4x32xf32>, vector<4x32xf32> -> vector<4x64xf32>
    %cst_130 = arith.constant 0.000000e+00 : f32
    %710 = vector.broadcast %cst_130 : f32 to vector<4x64xf32>
    %711 = arith.select %17, %709, %710 : vector<4x64xi1>, vector<4x64xf32>
    %cst_131 = arith.constant dense<0.000000e+00> : vector<4x128xf32>
    %712 = tpu.matmul %711, %494, %cst_131 {dimension_numbers = #tpu.dot_dimension_numbers<[1], [0], [0], [1], [0, 0, 1, 1], [], []>} : vector<4x64xf32>, vector<64x128xf32>, vector<4x128xf32> -> vector<4x128xf32>
    %713 = arith.addf %712, %582 : vector<4x128xf32>
    %714 = arith.negf %713 : vector<4x128xf32>
    %715 = math.exp %714 : vector<4x128xf32>
    %cst_132 = arith.constant 1.000000e+00 : f32
    %716 = vector.broadcast %cst_132 : f32 to vector<4x128xf32>
    %717 = arith.addf %716, %715 : vector<4x128xf32>
    %718 = arith.divf %716, %717 : vector<4x128xf32>
    %719 = vector.extract_strided_slice %713 {offsets = [0, 64], sizes = [4, 32], strides = [1, 1]} : vector<4x128xf32> to vector<4x32xf32>
    %720 = math.tanh %719 : vector<4x32xf32>
    %721 = vector.extract_strided_slice %718 {offsets = [0, 32], sizes = [4, 32], strides = [1, 1]} : vector<4x128xf32> to vector<4x32xf32>
    %722 = arith.mulf %721, %706 : vector<4x32xf32>
    %723 = vector.extract_strided_slice %718 {offsets = [0, 0], sizes = [4, 32], strides = [1, 1]} : vector<4x128xf32> to vector<4x32xf32>
    %724 = arith.mulf %723, %720 : vector<4x32xf32>
    %725 = arith.addf %722, %724 : vector<4x32xf32>
    %726 = vector.extract_strided_slice %718 {offsets = [0, 96], sizes = [4, 32], strides = [1, 1]} : vector<4x128xf32> to vector<4x32xf32>
    %727 = math.tanh %725 : vector<4x32xf32>
    %728 = arith.mulf %726, %727 : vector<4x32xf32>
    %729 = arith.select %78, %728, %705 : vector<4x32xi1>, vector<4x32xf32>
    %730 = arith.select %78, %725, %706 : vector<4x32xi1>, vector<4x32xf32>
    %cst_133 = arith.constant 0.000000e+00 : f32
    %731 = vector.broadcast %cst_133 : f32 to vector<4x32xf32>
    %732 = arith.select %78, %728, %731 : vector<4x32xi1>, vector<4x32xf32>
    %733 = tpu.concatenate %729, %729 in 1 : vector<4x32xf32>, vector<4x32xf32> -> vector<4x64xf32>
    %cst_134 = arith.constant 0.000000e+00 : f32
    %734 = vector.broadcast %cst_134 : f32 to vector<4x64xf32>
    %735 = arith.select %17, %733, %734 : vector<4x64xi1>, vector<4x64xf32>
    %cst_135 = arith.constant dense<0.000000e+00> : vector<4x128xf32>
    %736 = tpu.matmul %735, %494, %cst_135 {dimension_numbers = #tpu.dot_dimension_numbers<[1], [0], [0], [1], [0, 0, 1, 1], [], []>} : vector<4x64xf32>, vector<64x128xf32>, vector<4x128xf32> -> vector<4x128xf32>
    %737 = arith.addf %736, %584 : vector<4x128xf32>
    %738 = arith.negf %737 : vector<4x128xf32>
    %739 = math.exp %738 : vector<4x128xf32>
    %cst_136 = arith.constant 1.000000e+00 : f32
    %740 = vector.broadcast %cst_136 : f32 to vector<4x128xf32>
    %741 = arith.addf %740, %739 : vector<4x128xf32>
    %742 = arith.divf %740, %741 : vector<4x128xf32>
    %743 = vector.extract_strided_slice %737 {offsets = [0, 64], sizes = [4, 32], strides = [1, 1]} : vector<4x128xf32> to vector<4x32xf32>
    %744 = math.tanh %743 : vector<4x32xf32>
    %745 = vector.extract_strided_slice %742 {offsets = [0, 32], sizes = [4, 32], strides = [1, 1]} : vector<4x128xf32> to vector<4x32xf32>
    %746 = arith.mulf %745, %730 : vector<4x32xf32>
    %747 = vector.extract_strided_slice %742 {offsets = [0, 0], sizes = [4, 32], strides = [1, 1]} : vector<4x128xf32> to vector<4x32xf32>
    %748 = arith.mulf %747, %744 : vector<4x32xf32>
    %749 = arith.addf %746, %748 : vector<4x32xf32>
    %750 = vector.extract_strided_slice %742 {offsets = [0, 96], sizes = [4, 32], strides = [1, 1]} : vector<4x128xf32> to vector<4x32xf32>
    %751 = math.tanh %749 : vector<4x32xf32>
    %752 = arith.mulf %750, %751 : vector<4x32xf32>
    %753 = arith.select %89, %752, %729 : vector<4x32xi1>, vector<4x32xf32>
    %754 = arith.select %89, %749, %730 : vector<4x32xi1>, vector<4x32xf32>
    %cst_137 = arith.constant 0.000000e+00 : f32
    %755 = vector.broadcast %cst_137 : f32 to vector<4x32xf32>
    %756 = arith.select %89, %752, %755 : vector<4x32xi1>, vector<4x32xf32>
    %757 = tpu.concatenate %753, %753 in 1 : vector<4x32xf32>, vector<4x32xf32> -> vector<4x64xf32>
    %cst_138 = arith.constant 0.000000e+00 : f32
    %758 = vector.broadcast %cst_138 : f32 to vector<4x64xf32>
    %759 = arith.select %17, %757, %758 : vector<4x64xi1>, vector<4x64xf32>
    %cst_139 = arith.constant dense<0.000000e+00> : vector<4x128xf32>
    %760 = tpu.matmul %759, %494, %cst_139 {dimension_numbers = #tpu.dot_dimension_numbers<[1], [0], [0], [1], [0, 0, 1, 1], [], []>} : vector<4x64xf32>, vector<64x128xf32>, vector<4x128xf32> -> vector<4x128xf32>
    %761 = arith.addf %760, %586 : vector<4x128xf32>
    %762 = arith.negf %761 : vector<4x128xf32>
    %763 = math.exp %762 : vector<4x128xf32>
    %cst_140 = arith.constant 1.000000e+00 : f32
    %764 = vector.broadcast %cst_140 : f32 to vector<4x128xf32>
    %765 = arith.addf %764, %763 : vector<4x128xf32>
    %766 = arith.divf %764, %765 : vector<4x128xf32>
    %767 = vector.extract_strided_slice %761 {offsets = [0, 64], sizes = [4, 32], strides = [1, 1]} : vector<4x128xf32> to vector<4x32xf32>
    %768 = math.tanh %767 : vector<4x32xf32>
    %769 = vector.extract_strided_slice %766 {offsets = [0, 32], sizes = [4, 32], strides = [1, 1]} : vector<4x128xf32> to vector<4x32xf32>
    %770 = arith.mulf %769, %754 : vector<4x32xf32>
    %771 = vector.extract_strided_slice %766 {offsets = [0, 0], sizes = [4, 32], strides = [1, 1]} : vector<4x128xf32> to vector<4x32xf32>
    %772 = arith.mulf %771, %768 : vector<4x32xf32>
    %773 = arith.addf %770, %772 : vector<4x32xf32>
    %774 = vector.extract_strided_slice %766 {offsets = [0, 96], sizes = [4, 32], strides = [1, 1]} : vector<4x128xf32> to vector<4x32xf32>
    %775 = math.tanh %773 : vector<4x32xf32>
    %776 = arith.mulf %774, %775 : vector<4x32xf32>
    %cst_141 = arith.constant 0.000000e+00 : f32
    %777 = vector.broadcast %cst_141 : f32 to vector<4x32xf32>
    %778 = arith.select %100, %776, %777 : vector<4x32xi1>, vector<4x32xf32>
    %779 = vector.extract_strided_slice %612 {offsets = [0, 0], sizes = [2, 32], strides = [1, 1]} : vector<4x32xf32> to vector<2x32xf32>
    %780 = vector.extract_strided_slice %778 {offsets = [0, 0], sizes = [2, 32], strides = [1, 1]} : vector<4x32xf32> to vector<2x32xf32>
    %781 = tpu.concatenate %779, %780 in 0 : vector<2x32xf32>, vector<2x32xf32> -> vector<4x32xf32>
    %782 = vector.extract_strided_slice %778 {offsets = [2, 0], sizes = [2, 32], strides = [1, 1]} : vector<4x32xf32> to vector<2x32xf32>
    %783 = vector.extract_strided_slice %612 {offsets = [2, 0], sizes = [2, 32], strides = [1, 1]} : vector<4x32xf32> to vector<2x32xf32>
    %784 = tpu.concatenate %782, %783 in 0 : vector<2x32xf32>, vector<2x32xf32> -> vector<4x32xf32>
    %785 = tpu.concatenate %781, %784 in 1 : vector<4x32xf32>, vector<4x32xf32> -> vector<4x64xf32>
    %786 = vector.extract_strided_slice %636 {offsets = [0, 0], sizes = [2, 32], strides = [1, 1]} : vector<4x32xf32> to vector<2x32xf32>
    %787 = vector.extract_strided_slice %756 {offsets = [0, 0], sizes = [2, 32], strides = [1, 1]} : vector<4x32xf32> to vector<2x32xf32>
    %788 = tpu.concatenate %786, %787 in 0 : vector<2x32xf32>, vector<2x32xf32> -> vector<4x32xf32>
    %789 = vector.extract_strided_slice %756 {offsets = [2, 0], sizes = [2, 32], strides = [1, 1]} : vector<4x32xf32> to vector<2x32xf32>
    %790 = vector.extract_strided_slice %636 {offsets = [2, 0], sizes = [2, 32], strides = [1, 1]} : vector<4x32xf32> to vector<2x32xf32>
    %791 = tpu.concatenate %789, %790 in 0 : vector<2x32xf32>, vector<2x32xf32> -> vector<4x32xf32>
    %792 = tpu.concatenate %788, %791 in 1 : vector<4x32xf32>, vector<4x32xf32> -> vector<4x64xf32>
    %793 = vector.extract_strided_slice %660 {offsets = [0, 0], sizes = [2, 32], strides = [1, 1]} : vector<4x32xf32> to vector<2x32xf32>
    %794 = vector.extract_strided_slice %732 {offsets = [0, 0], sizes = [2, 32], strides = [1, 1]} : vector<4x32xf32> to vector<2x32xf32>
    %795 = tpu.concatenate %793, %794 in 0 : vector<2x32xf32>, vector<2x32xf32> -> vector<4x32xf32>
    %796 = vector.extract_strided_slice %732 {offsets = [2, 0], sizes = [2, 32], strides = [1, 1]} : vector<4x32xf32> to vector<2x32xf32>
    %797 = vector.extract_strided_slice %660 {offsets = [2, 0], sizes = [2, 32], strides = [1, 1]} : vector<4x32xf32> to vector<2x32xf32>
    %798 = tpu.concatenate %796, %797 in 0 : vector<2x32xf32>, vector<2x32xf32> -> vector<4x32xf32>
    %799 = tpu.concatenate %795, %798 in 1 : vector<4x32xf32>, vector<4x32xf32> -> vector<4x64xf32>
    %800 = vector.extract_strided_slice %684 {offsets = [0, 0], sizes = [2, 32], strides = [1, 1]} : vector<4x32xf32> to vector<2x32xf32>
    %801 = vector.extract_strided_slice %708 {offsets = [0, 0], sizes = [2, 32], strides = [1, 1]} : vector<4x32xf32> to vector<2x32xf32>
    %802 = tpu.concatenate %800, %801 in 0 : vector<2x32xf32>, vector<2x32xf32> -> vector<4x32xf32>
    %803 = vector.extract_strided_slice %708 {offsets = [2, 0], sizes = [2, 32], strides = [1, 1]} : vector<4x32xf32> to vector<2x32xf32>
    %804 = vector.extract_strided_slice %684 {offsets = [2, 0], sizes = [2, 32], strides = [1, 1]} : vector<4x32xf32> to vector<2x32xf32>
    %805 = tpu.concatenate %803, %804 in 0 : vector<2x32xf32>, vector<2x32xf32> -> vector<4x32xf32>
    %806 = tpu.concatenate %802, %805 in 1 : vector<4x32xf32>, vector<4x32xf32> -> vector<4x64xf32>
    %807 = vector.extract_strided_slice %708 {offsets = [0, 0], sizes = [2, 32], strides = [1, 1]} : vector<4x32xf32> to vector<2x32xf32>
    %808 = vector.extract_strided_slice %684 {offsets = [0, 0], sizes = [2, 32], strides = [1, 1]} : vector<4x32xf32> to vector<2x32xf32>
    %809 = tpu.concatenate %807, %808 in 0 : vector<2x32xf32>, vector<2x32xf32> -> vector<4x32xf32>
    %810 = vector.extract_strided_slice %684 {offsets = [2, 0], sizes = [2, 32], strides = [1, 1]} : vector<4x32xf32> to vector<2x32xf32>
    %811 = vector.extract_strided_slice %708 {offsets = [2, 0], sizes = [2, 32], strides = [1, 1]} : vector<4x32xf32> to vector<2x32xf32>
    %812 = tpu.concatenate %810, %811 in 0 : vector<2x32xf32>, vector<2x32xf32> -> vector<4x32xf32>
    %813 = tpu.concatenate %809, %812 in 1 : vector<4x32xf32>, vector<4x32xf32> -> vector<4x64xf32>
    %814 = vector.extract_strided_slice %732 {offsets = [0, 0], sizes = [2, 32], strides = [1, 1]} : vector<4x32xf32> to vector<2x32xf32>
    %815 = vector.extract_strided_slice %660 {offsets = [0, 0], sizes = [2, 32], strides = [1, 1]} : vector<4x32xf32> to vector<2x32xf32>
    %816 = tpu.concatenate %814, %815 in 0 : vector<2x32xf32>, vector<2x32xf32> -> vector<4x32xf32>
    %817 = vector.extract_strided_slice %660 {offsets = [2, 0], sizes = [2, 32], strides = [1, 1]} : vector<4x32xf32> to vector<2x32xf32>
    %818 = vector.extract_strided_slice %732 {offsets = [2, 0], sizes = [2, 32], strides = [1, 1]} : vector<4x32xf32> to vector<2x32xf32>
    %819 = tpu.concatenate %817, %818 in 0 : vector<2x32xf32>, vector<2x32xf32> -> vector<4x32xf32>
    %820 = tpu.concatenate %816, %819 in 1 : vector<4x32xf32>, vector<4x32xf32> -> vector<4x64xf32>
    %821 = vector.extract_strided_slice %756 {offsets = [0, 0], sizes = [2, 32], strides = [1, 1]} : vector<4x32xf32> to vector<2x32xf32>
    %822 = vector.extract_strided_slice %636 {offsets = [0, 0], sizes = [2, 32], strides = [1, 1]} : vector<4x32xf32> to vector<2x32xf32>
    %823 = tpu.concatenate %821, %822 in 0 : vector<2x32xf32>, vector<2x32xf32> -> vector<4x32xf32>
    %824 = vector.extract_strided_slice %636 {offsets = [2, 0], sizes = [2, 32], strides = [1, 1]} : vector<4x32xf32> to vector<2x32xf32>
    %825 = vector.extract_strided_slice %756 {offsets = [2, 0], sizes = [2, 32], strides = [1, 1]} : vector<4x32xf32> to vector<2x32xf32>
    %826 = tpu.concatenate %824, %825 in 0 : vector<2x32xf32>, vector<2x32xf32> -> vector<4x32xf32>
    %827 = tpu.concatenate %823, %826 in 1 : vector<4x32xf32>, vector<4x32xf32> -> vector<4x64xf32>
    %828 = vector.extract_strided_slice %778 {offsets = [0, 0], sizes = [2, 32], strides = [1, 1]} : vector<4x32xf32> to vector<2x32xf32>
    %829 = vector.extract_strided_slice %612 {offsets = [0, 0], sizes = [2, 32], strides = [1, 1]} : vector<4x32xf32> to vector<2x32xf32>
    %830 = tpu.concatenate %828, %829 in 0 : vector<2x32xf32>, vector<2x32xf32> -> vector<4x32xf32>
    %831 = vector.extract_strided_slice %612 {offsets = [2, 0], sizes = [2, 32], strides = [1, 1]} : vector<4x32xf32> to vector<2x32xf32>
    %832 = vector.extract_strided_slice %778 {offsets = [2, 0], sizes = [2, 32], strides = [1, 1]} : vector<4x32xf32> to vector<2x32xf32>
    %833 = tpu.concatenate %831, %832 in 0 : vector<2x32xf32>, vector<2x32xf32> -> vector<4x32xf32>
    %834 = tpu.concatenate %830, %833 in 1 : vector<4x32xf32>, vector<4x32xf32> -> vector<4x64xf32>
    %c1_142 = arith.constant 1 : index
    %c0_143 = arith.constant 0 : index
    %c0_144 = arith.constant 0 : index
    %835 = vector.load %arg3[%c1_142, %c0_143, %c0_144] : memref<2x128x128xf32, #tpu.memory_space<vmem>>, vector<1x128x128xf32>
    %836 = vector.shape_cast %835 : vector<1x128x128xf32> to vector<128x128xf32>
    %c2 = arith.constant 2 : index
    %c0_145 = arith.constant 0 : index
    %c0_146 = arith.constant 0 : index
    %837 = vector.load %arg4[%c2, %c0_145, %c0_146] : memref<3x64x128xf32, #tpu.memory_space<vmem>>, vector<1x64x128xf32>
    %838 = vector.shape_cast %837 : vector<1x64x128xf32> to vector<64x128xf32>
    %c2_147 = arith.constant 2 : index
    %c0_148 = arith.constant 0 : index
    %c0_149 = arith.constant 0 : index
    %839 = vector.load %arg5[%c2_147, %c0_148, %c0_149] : memref<3x4x128xf32, #tpu.memory_space<vmem>>, vector<1x4x128xf32>
    %840 = vector.shape_cast %839 : vector<1x4x128xf32> to vector<4x128xf32>
    %cst_150 = arith.constant 0.000000e+00 : f32
    %841 = vector.shape_cast %4 : vector<4x1xi1> to vector<4x1xi1>
    %842 = vector.broadcast %841 : vector<4x1xi1> to vector<4x64xi1>
    %843 = vector.broadcast %cst_150 : f32 to vector<4x64xf32>
    %844 = arith.select %842, %785, %843 : vector<4x64xi1>, vector<4x64xf32>
    %cst_151 = arith.constant 0.000000e+00 : f32
    %845 = vector.shape_cast %4 : vector<4x1xi1> to vector<4x1xi1>
    %846 = vector.broadcast %845 : vector<4x1xi1> to vector<4x64xi1>
    %847 = vector.broadcast %cst_151 : f32 to vector<4x64xf32>
    %848 = arith.select %846, %847, %785 : vector<4x64xi1>, vector<4x64xf32>
    %849 = tpu.concatenate %844, %848 in 1 : vector<4x64xf32>, vector<4x64xf32> -> vector<4x128xf32>
    %cst_152 = arith.constant 0.000000e+00 : f32
    %850 = vector.shape_cast %4 : vector<4x1xi1> to vector<4x1xi1>
    %851 = vector.broadcast %850 : vector<4x1xi1> to vector<4x64xi1>
    %852 = vector.broadcast %cst_152 : f32 to vector<4x64xf32>
    %853 = arith.select %851, %792, %852 : vector<4x64xi1>, vector<4x64xf32>
    %cst_153 = arith.constant 0.000000e+00 : f32
    %854 = vector.shape_cast %4 : vector<4x1xi1> to vector<4x1xi1>
    %855 = vector.broadcast %854 : vector<4x1xi1> to vector<4x64xi1>
    %856 = vector.broadcast %cst_153 : f32 to vector<4x64xf32>
    %857 = arith.select %855, %856, %792 : vector<4x64xi1>, vector<4x64xf32>
    %858 = tpu.concatenate %853, %857 in 1 : vector<4x64xf32>, vector<4x64xf32> -> vector<4x128xf32>
    %cst_154 = arith.constant 0.000000e+00 : f32
    %859 = vector.shape_cast %4 : vector<4x1xi1> to vector<4x1xi1>
    %860 = vector.broadcast %859 : vector<4x1xi1> to vector<4x64xi1>
    %861 = vector.broadcast %cst_154 : f32 to vector<4x64xf32>
    %862 = arith.select %860, %799, %861 : vector<4x64xi1>, vector<4x64xf32>
    %cst_155 = arith.constant 0.000000e+00 : f32
    %863 = vector.shape_cast %4 : vector<4x1xi1> to vector<4x1xi1>
    %864 = vector.broadcast %863 : vector<4x1xi1> to vector<4x64xi1>
    %865 = vector.broadcast %cst_155 : f32 to vector<4x64xf32>
    %866 = arith.select %864, %865, %799 : vector<4x64xi1>, vector<4x64xf32>
    %867 = tpu.concatenate %862, %866 in 1 : vector<4x64xf32>, vector<4x64xf32> -> vector<4x128xf32>
    %cst_156 = arith.constant 0.000000e+00 : f32
    %868 = vector.shape_cast %4 : vector<4x1xi1> to vector<4x1xi1>
    %869 = vector.broadcast %868 : vector<4x1xi1> to vector<4x64xi1>
    %870 = vector.broadcast %cst_156 : f32 to vector<4x64xf32>
    %871 = arith.select %869, %806, %870 : vector<4x64xi1>, vector<4x64xf32>
    %cst_157 = arith.constant 0.000000e+00 : f32
    %872 = vector.shape_cast %4 : vector<4x1xi1> to vector<4x1xi1>
    %873 = vector.broadcast %872 : vector<4x1xi1> to vector<4x64xi1>
    %874 = vector.broadcast %cst_157 : f32 to vector<4x64xf32>
    %875 = arith.select %873, %874, %806 : vector<4x64xi1>, vector<4x64xf32>
    %876 = tpu.concatenate %871, %875 in 1 : vector<4x64xf32>, vector<4x64xf32> -> vector<4x128xf32>
    %cst_158 = arith.constant 0.000000e+00 : f32
    %877 = vector.shape_cast %4 : vector<4x1xi1> to vector<4x1xi1>
    %878 = vector.broadcast %877 : vector<4x1xi1> to vector<4x64xi1>
    %879 = vector.broadcast %cst_158 : f32 to vector<4x64xf32>
    %880 = arith.select %878, %813, %879 : vector<4x64xi1>, vector<4x64xf32>
    %cst_159 = arith.constant 0.000000e+00 : f32
    %881 = vector.shape_cast %4 : vector<4x1xi1> to vector<4x1xi1>
    %882 = vector.broadcast %881 : vector<4x1xi1> to vector<4x64xi1>
    %883 = vector.broadcast %cst_159 : f32 to vector<4x64xf32>
    %884 = arith.select %882, %883, %813 : vector<4x64xi1>, vector<4x64xf32>
    %885 = tpu.concatenate %880, %884 in 1 : vector<4x64xf32>, vector<4x64xf32> -> vector<4x128xf32>
    %cst_160 = arith.constant 0.000000e+00 : f32
    %886 = vector.shape_cast %4 : vector<4x1xi1> to vector<4x1xi1>
    %887 = vector.broadcast %886 : vector<4x1xi1> to vector<4x64xi1>
    %888 = vector.broadcast %cst_160 : f32 to vector<4x64xf32>
    %889 = arith.select %887, %820, %888 : vector<4x64xi1>, vector<4x64xf32>
    %cst_161 = arith.constant 0.000000e+00 : f32
    %890 = vector.shape_cast %4 : vector<4x1xi1> to vector<4x1xi1>
    %891 = vector.broadcast %890 : vector<4x1xi1> to vector<4x64xi1>
    %892 = vector.broadcast %cst_161 : f32 to vector<4x64xf32>
    %893 = arith.select %891, %892, %820 : vector<4x64xi1>, vector<4x64xf32>
    %894 = tpu.concatenate %889, %893 in 1 : vector<4x64xf32>, vector<4x64xf32> -> vector<4x128xf32>
    %cst_162 = arith.constant 0.000000e+00 : f32
    %895 = vector.shape_cast %4 : vector<4x1xi1> to vector<4x1xi1>
    %896 = vector.broadcast %895 : vector<4x1xi1> to vector<4x64xi1>
    %897 = vector.broadcast %cst_162 : f32 to vector<4x64xf32>
    %898 = arith.select %896, %827, %897 : vector<4x64xi1>, vector<4x64xf32>
    %cst_163 = arith.constant 0.000000e+00 : f32
    %899 = vector.shape_cast %4 : vector<4x1xi1> to vector<4x1xi1>
    %900 = vector.broadcast %899 : vector<4x1xi1> to vector<4x64xi1>
    %901 = vector.broadcast %cst_163 : f32 to vector<4x64xf32>
    %902 = arith.select %900, %901, %827 : vector<4x64xi1>, vector<4x64xf32>
    %903 = tpu.concatenate %898, %902 in 1 : vector<4x64xf32>, vector<4x64xf32> -> vector<4x128xf32>
    %cst_164 = arith.constant 0.000000e+00 : f32
    %904 = vector.shape_cast %4 : vector<4x1xi1> to vector<4x1xi1>
    %905 = vector.broadcast %904 : vector<4x1xi1> to vector<4x64xi1>
    %906 = vector.broadcast %cst_164 : f32 to vector<4x64xf32>
    %907 = arith.select %905, %834, %906 : vector<4x64xi1>, vector<4x64xf32>
    %cst_165 = arith.constant 0.000000e+00 : f32
    %908 = vector.shape_cast %4 : vector<4x1xi1> to vector<4x1xi1>
    %909 = vector.broadcast %908 : vector<4x1xi1> to vector<4x64xi1>
    %910 = vector.broadcast %cst_165 : f32 to vector<4x64xf32>
    %911 = arith.select %909, %910, %834 : vector<4x64xi1>, vector<4x64xf32>
    %912 = tpu.concatenate %907, %911 in 1 : vector<4x64xf32>, vector<4x64xf32> -> vector<4x128xf32>
    %913 = tpu.concatenate %849, %858, %867, %876, %885, %894, %903, %912 in 0 : vector<4x128xf32>, vector<4x128xf32>, vector<4x128xf32>, vector<4x128xf32>, vector<4x128xf32>, vector<4x128xf32>, vector<4x128xf32>, vector<4x128xf32> -> vector<32x128xf32>
    %cst_166 = arith.constant dense<0.000000e+00> : vector<32x128xf32>
    %914 = tpu.matmul %913, %836, %cst_166 {dimension_numbers = #tpu.dot_dimension_numbers<[1], [0], [0], [1], [0, 0, 1, 1], [], []>} : vector<32x128xf32>, vector<128x128xf32>, vector<32x128xf32> -> vector<32x128xf32>
    %915 = vector.extract_strided_slice %914 {offsets = [0, 0], sizes = [4, 128], strides = [1, 1]} : vector<32x128xf32> to vector<4x128xf32>
    %916 = arith.addf %915, %840 : vector<4x128xf32>
    %917 = vector.extract_strided_slice %914 {offsets = [4, 0], sizes = [4, 128], strides = [1, 1]} : vector<32x128xf32> to vector<4x128xf32>
    %918 = arith.addf %917, %840 : vector<4x128xf32>
    %919 = vector.extract_strided_slice %914 {offsets = [8, 0], sizes = [4, 128], strides = [1, 1]} : vector<32x128xf32> to vector<4x128xf32>
    %920 = arith.addf %919, %840 : vector<4x128xf32>
    %921 = vector.extract_strided_slice %914 {offsets = [12, 0], sizes = [4, 128], strides = [1, 1]} : vector<32x128xf32> to vector<4x128xf32>
    %922 = arith.addf %921, %840 : vector<4x128xf32>
    %923 = vector.extract_strided_slice %914 {offsets = [16, 0], sizes = [4, 128], strides = [1, 1]} : vector<32x128xf32> to vector<4x128xf32>
    %924 = arith.addf %923, %840 : vector<4x128xf32>
    %925 = vector.extract_strided_slice %914 {offsets = [20, 0], sizes = [4, 128], strides = [1, 1]} : vector<32x128xf32> to vector<4x128xf32>
    %926 = arith.addf %925, %840 : vector<4x128xf32>
    %927 = vector.extract_strided_slice %914 {offsets = [24, 0], sizes = [4, 128], strides = [1, 1]} : vector<32x128xf32> to vector<4x128xf32>
    %928 = arith.addf %927, %840 : vector<4x128xf32>
    %929 = vector.extract_strided_slice %914 {offsets = [28, 0], sizes = [4, 128], strides = [1, 1]} : vector<32x128xf32> to vector<4x128xf32>
    %930 = arith.addf %929, %840 : vector<4x128xf32>
    %cst_167 = arith.constant 0.000000e+00 : f32
    %931 = vector.broadcast %cst_167 : f32 to vector<4x32xf32>
    %cst_168 = arith.constant 0.000000e+00 : f32
    %932 = vector.broadcast %cst_168 : f32 to vector<4x32xf32>
    %933 = tpu.concatenate %931, %931 in 1 : vector<4x32xf32>, vector<4x32xf32> -> vector<4x64xf32>
    %cst_169 = arith.constant 0.000000e+00 : f32
    %934 = vector.broadcast %cst_169 : f32 to vector<4x64xf32>
    %935 = arith.select %17, %933, %934 : vector<4x64xi1>, vector<4x64xf32>
    %cst_170 = arith.constant dense<0.000000e+00> : vector<4x128xf32>
    %936 = tpu.matmul %935, %838, %cst_170 {dimension_numbers = #tpu.dot_dimension_numbers<[1], [0], [0], [1], [0, 0, 1, 1], [], []>} : vector<4x64xf32>, vector<64x128xf32>, vector<4x128xf32> -> vector<4x128xf32>
    %937 = arith.addf %936, %916 : vector<4x128xf32>
    %938 = arith.negf %937 : vector<4x128xf32>
    %939 = math.exp %938 : vector<4x128xf32>
    %cst_171 = arith.constant 1.000000e+00 : f32
    %940 = vector.broadcast %cst_171 : f32 to vector<4x128xf32>
    %941 = arith.addf %940, %939 : vector<4x128xf32>
    %942 = arith.divf %940, %941 : vector<4x128xf32>
    %943 = vector.extract_strided_slice %937 {offsets = [0, 64], sizes = [4, 32], strides = [1, 1]} : vector<4x128xf32> to vector<4x32xf32>
    %944 = math.tanh %943 : vector<4x32xf32>
    %945 = vector.extract_strided_slice %942 {offsets = [0, 32], sizes = [4, 32], strides = [1, 1]} : vector<4x128xf32> to vector<4x32xf32>
    %946 = arith.mulf %945, %932 : vector<4x32xf32>
    %947 = vector.extract_strided_slice %942 {offsets = [0, 0], sizes = [4, 32], strides = [1, 1]} : vector<4x128xf32> to vector<4x32xf32>
    %948 = arith.mulf %947, %944 : vector<4x32xf32>
    %949 = arith.addf %946, %948 : vector<4x32xf32>
    %950 = vector.extract_strided_slice %942 {offsets = [0, 96], sizes = [4, 32], strides = [1, 1]} : vector<4x128xf32> to vector<4x32xf32>
    %951 = math.tanh %949 : vector<4x32xf32>
    %952 = arith.mulf %950, %951 : vector<4x32xf32>
    %953 = arith.select %23, %952, %931 : vector<4x32xi1>, vector<4x32xf32>
    %954 = arith.select %23, %949, %932 : vector<4x32xi1>, vector<4x32xf32>
    %955 = arith.select %28, %952, %147 : vector<4x32xi1>, vector<4x32xf32>
    %956 = tpu.concatenate %953, %953 in 1 : vector<4x32xf32>, vector<4x32xf32> -> vector<4x64xf32>
    %cst_172 = arith.constant 0.000000e+00 : f32
    %957 = vector.broadcast %cst_172 : f32 to vector<4x64xf32>
    %958 = arith.select %17, %956, %957 : vector<4x64xi1>, vector<4x64xf32>
    %cst_173 = arith.constant dense<0.000000e+00> : vector<4x128xf32>
    %959 = tpu.matmul %958, %838, %cst_173 {dimension_numbers = #tpu.dot_dimension_numbers<[1], [0], [0], [1], [0, 0, 1, 1], [], []>} : vector<4x64xf32>, vector<64x128xf32>, vector<4x128xf32> -> vector<4x128xf32>
    %960 = arith.addf %959, %918 : vector<4x128xf32>
    %961 = arith.negf %960 : vector<4x128xf32>
    %962 = math.exp %961 : vector<4x128xf32>
    %cst_174 = arith.constant 1.000000e+00 : f32
    %963 = vector.broadcast %cst_174 : f32 to vector<4x128xf32>
    %964 = arith.addf %963, %962 : vector<4x128xf32>
    %965 = arith.divf %963, %964 : vector<4x128xf32>
    %966 = vector.extract_strided_slice %960 {offsets = [0, 64], sizes = [4, 32], strides = [1, 1]} : vector<4x128xf32> to vector<4x32xf32>
    %967 = math.tanh %966 : vector<4x32xf32>
    %968 = vector.extract_strided_slice %965 {offsets = [0, 32], sizes = [4, 32], strides = [1, 1]} : vector<4x128xf32> to vector<4x32xf32>
    %969 = arith.mulf %968, %954 : vector<4x32xf32>
    %970 = vector.extract_strided_slice %965 {offsets = [0, 0], sizes = [4, 32], strides = [1, 1]} : vector<4x128xf32> to vector<4x32xf32>
    %971 = arith.mulf %970, %967 : vector<4x32xf32>
    %972 = arith.addf %969, %971 : vector<4x32xf32>
    %973 = vector.extract_strided_slice %965 {offsets = [0, 96], sizes = [4, 32], strides = [1, 1]} : vector<4x128xf32> to vector<4x32xf32>
    %974 = math.tanh %972 : vector<4x32xf32>
    %975 = arith.mulf %973, %974 : vector<4x32xf32>
    %976 = arith.select %34, %975, %953 : vector<4x32xi1>, vector<4x32xf32>
    %977 = arith.select %34, %972, %954 : vector<4x32xi1>, vector<4x32xf32>
    %978 = arith.select %39, %975, %955 : vector<4x32xi1>, vector<4x32xf32>
    %979 = tpu.concatenate %976, %976 in 1 : vector<4x32xf32>, vector<4x32xf32> -> vector<4x64xf32>
    %cst_175 = arith.constant 0.000000e+00 : f32
    %980 = vector.broadcast %cst_175 : f32 to vector<4x64xf32>
    %981 = arith.select %17, %979, %980 : vector<4x64xi1>, vector<4x64xf32>
    %cst_176 = arith.constant dense<0.000000e+00> : vector<4x128xf32>
    %982 = tpu.matmul %981, %838, %cst_176 {dimension_numbers = #tpu.dot_dimension_numbers<[1], [0], [0], [1], [0, 0, 1, 1], [], []>} : vector<4x64xf32>, vector<64x128xf32>, vector<4x128xf32> -> vector<4x128xf32>
    %983 = arith.addf %982, %920 : vector<4x128xf32>
    %984 = arith.negf %983 : vector<4x128xf32>
    %985 = math.exp %984 : vector<4x128xf32>
    %cst_177 = arith.constant 1.000000e+00 : f32
    %986 = vector.broadcast %cst_177 : f32 to vector<4x128xf32>
    %987 = arith.addf %986, %985 : vector<4x128xf32>
    %988 = arith.divf %986, %987 : vector<4x128xf32>
    %989 = vector.extract_strided_slice %983 {offsets = [0, 64], sizes = [4, 32], strides = [1, 1]} : vector<4x128xf32> to vector<4x32xf32>
    %990 = math.tanh %989 : vector<4x32xf32>
    %991 = vector.extract_strided_slice %988 {offsets = [0, 32], sizes = [4, 32], strides = [1, 1]} : vector<4x128xf32> to vector<4x32xf32>
    %992 = arith.mulf %991, %977 : vector<4x32xf32>
    %993 = vector.extract_strided_slice %988 {offsets = [0, 0], sizes = [4, 32], strides = [1, 1]} : vector<4x128xf32> to vector<4x32xf32>
    %994 = arith.mulf %993, %990 : vector<4x32xf32>
    %995 = arith.addf %992, %994 : vector<4x32xf32>
    %996 = vector.extract_strided_slice %988 {offsets = [0, 96], sizes = [4, 32], strides = [1, 1]} : vector<4x128xf32> to vector<4x32xf32>
    %997 = math.tanh %995 : vector<4x32xf32>
    %998 = arith.mulf %996, %997 : vector<4x32xf32>
    %999 = arith.select %45, %998, %976 : vector<4x32xi1>, vector<4x32xf32>
    %1000 = arith.select %45, %995, %977 : vector<4x32xi1>, vector<4x32xf32>
    %1001 = arith.select %50, %998, %978 : vector<4x32xi1>, vector<4x32xf32>
    %1002 = tpu.concatenate %999, %999 in 1 : vector<4x32xf32>, vector<4x32xf32> -> vector<4x64xf32>
    %cst_178 = arith.constant 0.000000e+00 : f32
    %1003 = vector.broadcast %cst_178 : f32 to vector<4x64xf32>
    %1004 = arith.select %17, %1002, %1003 : vector<4x64xi1>, vector<4x64xf32>
    %cst_179 = arith.constant dense<0.000000e+00> : vector<4x128xf32>
    %1005 = tpu.matmul %1004, %838, %cst_179 {dimension_numbers = #tpu.dot_dimension_numbers<[1], [0], [0], [1], [0, 0, 1, 1], [], []>} : vector<4x64xf32>, vector<64x128xf32>, vector<4x128xf32> -> vector<4x128xf32>
    %1006 = arith.addf %1005, %922 : vector<4x128xf32>
    %1007 = arith.negf %1006 : vector<4x128xf32>
    %1008 = math.exp %1007 : vector<4x128xf32>
    %cst_180 = arith.constant 1.000000e+00 : f32
    %1009 = vector.broadcast %cst_180 : f32 to vector<4x128xf32>
    %1010 = arith.addf %1009, %1008 : vector<4x128xf32>
    %1011 = arith.divf %1009, %1010 : vector<4x128xf32>
    %1012 = vector.extract_strided_slice %1006 {offsets = [0, 64], sizes = [4, 32], strides = [1, 1]} : vector<4x128xf32> to vector<4x32xf32>
    %1013 = math.tanh %1012 : vector<4x32xf32>
    %1014 = vector.extract_strided_slice %1011 {offsets = [0, 32], sizes = [4, 32], strides = [1, 1]} : vector<4x128xf32> to vector<4x32xf32>
    %1015 = arith.mulf %1014, %1000 : vector<4x32xf32>
    %1016 = vector.extract_strided_slice %1011 {offsets = [0, 0], sizes = [4, 32], strides = [1, 1]} : vector<4x128xf32> to vector<4x32xf32>
    %1017 = arith.mulf %1016, %1013 : vector<4x32xf32>
    %1018 = arith.addf %1015, %1017 : vector<4x32xf32>
    %1019 = vector.extract_strided_slice %1011 {offsets = [0, 96], sizes = [4, 32], strides = [1, 1]} : vector<4x128xf32> to vector<4x32xf32>
    %1020 = math.tanh %1018 : vector<4x32xf32>
    %1021 = arith.mulf %1019, %1020 : vector<4x32xf32>
    %1022 = arith.select %56, %1021, %999 : vector<4x32xi1>, vector<4x32xf32>
    %1023 = arith.select %56, %1018, %1000 : vector<4x32xi1>, vector<4x32xf32>
    %1024 = arith.select %61, %1021, %1001 : vector<4x32xi1>, vector<4x32xf32>
    %1025 = tpu.concatenate %1022, %1022 in 1 : vector<4x32xf32>, vector<4x32xf32> -> vector<4x64xf32>
    %cst_181 = arith.constant 0.000000e+00 : f32
    %1026 = vector.broadcast %cst_181 : f32 to vector<4x64xf32>
    %1027 = arith.select %17, %1025, %1026 : vector<4x64xi1>, vector<4x64xf32>
    %cst_182 = arith.constant dense<0.000000e+00> : vector<4x128xf32>
    %1028 = tpu.matmul %1027, %838, %cst_182 {dimension_numbers = #tpu.dot_dimension_numbers<[1], [0], [0], [1], [0, 0, 1, 1], [], []>} : vector<4x64xf32>, vector<64x128xf32>, vector<4x128xf32> -> vector<4x128xf32>
    %1029 = arith.addf %1028, %924 : vector<4x128xf32>
    %1030 = arith.negf %1029 : vector<4x128xf32>
    %1031 = math.exp %1030 : vector<4x128xf32>
    %cst_183 = arith.constant 1.000000e+00 : f32
    %1032 = vector.broadcast %cst_183 : f32 to vector<4x128xf32>
    %1033 = arith.addf %1032, %1031 : vector<4x128xf32>
    %1034 = arith.divf %1032, %1033 : vector<4x128xf32>
    %1035 = vector.extract_strided_slice %1029 {offsets = [0, 64], sizes = [4, 32], strides = [1, 1]} : vector<4x128xf32> to vector<4x32xf32>
    %1036 = math.tanh %1035 : vector<4x32xf32>
    %1037 = vector.extract_strided_slice %1034 {offsets = [0, 32], sizes = [4, 32], strides = [1, 1]} : vector<4x128xf32> to vector<4x32xf32>
    %1038 = arith.mulf %1037, %1023 : vector<4x32xf32>
    %1039 = vector.extract_strided_slice %1034 {offsets = [0, 0], sizes = [4, 32], strides = [1, 1]} : vector<4x128xf32> to vector<4x32xf32>
    %1040 = arith.mulf %1039, %1036 : vector<4x32xf32>
    %1041 = arith.addf %1038, %1040 : vector<4x32xf32>
    %1042 = vector.extract_strided_slice %1034 {offsets = [0, 96], sizes = [4, 32], strides = [1, 1]} : vector<4x128xf32> to vector<4x32xf32>
    %1043 = math.tanh %1041 : vector<4x32xf32>
    %1044 = arith.mulf %1042, %1043 : vector<4x32xf32>
    %1045 = arith.select %67, %1044, %1022 : vector<4x32xi1>, vector<4x32xf32>
    %1046 = arith.select %67, %1041, %1023 : vector<4x32xi1>, vector<4x32xf32>
    %1047 = arith.select %72, %1044, %1024 : vector<4x32xi1>, vector<4x32xf32>
    %1048 = tpu.concatenate %1045, %1045 in 1 : vector<4x32xf32>, vector<4x32xf32> -> vector<4x64xf32>
    %cst_184 = arith.constant 0.000000e+00 : f32
    %1049 = vector.broadcast %cst_184 : f32 to vector<4x64xf32>
    %1050 = arith.select %17, %1048, %1049 : vector<4x64xi1>, vector<4x64xf32>
    %cst_185 = arith.constant dense<0.000000e+00> : vector<4x128xf32>
    %1051 = tpu.matmul %1050, %838, %cst_185 {dimension_numbers = #tpu.dot_dimension_numbers<[1], [0], [0], [1], [0, 0, 1, 1], [], []>} : vector<4x64xf32>, vector<64x128xf32>, vector<4x128xf32> -> vector<4x128xf32>
    %1052 = arith.addf %1051, %926 : vector<4x128xf32>
    %1053 = arith.negf %1052 : vector<4x128xf32>
    %1054 = math.exp %1053 : vector<4x128xf32>
    %cst_186 = arith.constant 1.000000e+00 : f32
    %1055 = vector.broadcast %cst_186 : f32 to vector<4x128xf32>
    %1056 = arith.addf %1055, %1054 : vector<4x128xf32>
    %1057 = arith.divf %1055, %1056 : vector<4x128xf32>
    %1058 = vector.extract_strided_slice %1052 {offsets = [0, 64], sizes = [4, 32], strides = [1, 1]} : vector<4x128xf32> to vector<4x32xf32>
    %1059 = math.tanh %1058 : vector<4x32xf32>
    %1060 = vector.extract_strided_slice %1057 {offsets = [0, 32], sizes = [4, 32], strides = [1, 1]} : vector<4x128xf32> to vector<4x32xf32>
    %1061 = arith.mulf %1060, %1046 : vector<4x32xf32>
    %1062 = vector.extract_strided_slice %1057 {offsets = [0, 0], sizes = [4, 32], strides = [1, 1]} : vector<4x128xf32> to vector<4x32xf32>
    %1063 = arith.mulf %1062, %1059 : vector<4x32xf32>
    %1064 = arith.addf %1061, %1063 : vector<4x32xf32>
    %1065 = vector.extract_strided_slice %1057 {offsets = [0, 96], sizes = [4, 32], strides = [1, 1]} : vector<4x128xf32> to vector<4x32xf32>
    %1066 = math.tanh %1064 : vector<4x32xf32>
    %1067 = arith.mulf %1065, %1066 : vector<4x32xf32>
    %1068 = arith.select %78, %1067, %1045 : vector<4x32xi1>, vector<4x32xf32>
    %1069 = arith.select %78, %1064, %1046 : vector<4x32xi1>, vector<4x32xf32>
    %1070 = arith.select %83, %1067, %1047 : vector<4x32xi1>, vector<4x32xf32>
    %1071 = tpu.concatenate %1068, %1068 in 1 : vector<4x32xf32>, vector<4x32xf32> -> vector<4x64xf32>
    %cst_187 = arith.constant 0.000000e+00 : f32
    %1072 = vector.broadcast %cst_187 : f32 to vector<4x64xf32>
    %1073 = arith.select %17, %1071, %1072 : vector<4x64xi1>, vector<4x64xf32>
    %cst_188 = arith.constant dense<0.000000e+00> : vector<4x128xf32>
    %1074 = tpu.matmul %1073, %838, %cst_188 {dimension_numbers = #tpu.dot_dimension_numbers<[1], [0], [0], [1], [0, 0, 1, 1], [], []>} : vector<4x64xf32>, vector<64x128xf32>, vector<4x128xf32> -> vector<4x128xf32>
    %1075 = arith.addf %1074, %928 : vector<4x128xf32>
    %1076 = arith.negf %1075 : vector<4x128xf32>
    %1077 = math.exp %1076 : vector<4x128xf32>
    %cst_189 = arith.constant 1.000000e+00 : f32
    %1078 = vector.broadcast %cst_189 : f32 to vector<4x128xf32>
    %1079 = arith.addf %1078, %1077 : vector<4x128xf32>
    %1080 = arith.divf %1078, %1079 : vector<4x128xf32>
    %1081 = vector.extract_strided_slice %1075 {offsets = [0, 64], sizes = [4, 32], strides = [1, 1]} : vector<4x128xf32> to vector<4x32xf32>
    %1082 = math.tanh %1081 : vector<4x32xf32>
    %1083 = vector.extract_strided_slice %1080 {offsets = [0, 32], sizes = [4, 32], strides = [1, 1]} : vector<4x128xf32> to vector<4x32xf32>
    %1084 = arith.mulf %1083, %1069 : vector<4x32xf32>
    %1085 = vector.extract_strided_slice %1080 {offsets = [0, 0], sizes = [4, 32], strides = [1, 1]} : vector<4x128xf32> to vector<4x32xf32>
    %1086 = arith.mulf %1085, %1082 : vector<4x32xf32>
    %1087 = arith.addf %1084, %1086 : vector<4x32xf32>
    %1088 = vector.extract_strided_slice %1080 {offsets = [0, 96], sizes = [4, 32], strides = [1, 1]} : vector<4x128xf32> to vector<4x32xf32>
    %1089 = math.tanh %1087 : vector<4x32xf32>
    %1090 = arith.mulf %1088, %1089 : vector<4x32xf32>
    %1091 = arith.select %89, %1090, %1068 : vector<4x32xi1>, vector<4x32xf32>
    %1092 = arith.select %89, %1087, %1069 : vector<4x32xi1>, vector<4x32xf32>
    %1093 = arith.select %94, %1090, %1070 : vector<4x32xi1>, vector<4x32xf32>
    %1094 = tpu.concatenate %1091, %1091 in 1 : vector<4x32xf32>, vector<4x32xf32> -> vector<4x64xf32>
    %cst_190 = arith.constant 0.000000e+00 : f32
    %1095 = vector.broadcast %cst_190 : f32 to vector<4x64xf32>
    %1096 = arith.select %17, %1094, %1095 : vector<4x64xi1>, vector<4x64xf32>
    %cst_191 = arith.constant dense<0.000000e+00> : vector<4x128xf32>
    %1097 = tpu.matmul %1096, %838, %cst_191 {dimension_numbers = #tpu.dot_dimension_numbers<[1], [0], [0], [1], [0, 0, 1, 1], [], []>} : vector<4x64xf32>, vector<64x128xf32>, vector<4x128xf32> -> vector<4x128xf32>
    %1098 = arith.addf %1097, %930 : vector<4x128xf32>
    %1099 = arith.negf %1098 : vector<4x128xf32>
    %1100 = math.exp %1099 : vector<4x128xf32>
    %cst_192 = arith.constant 1.000000e+00 : f32
    %1101 = vector.broadcast %cst_192 : f32 to vector<4x128xf32>
    %1102 = arith.addf %1101, %1100 : vector<4x128xf32>
    %1103 = arith.divf %1101, %1102 : vector<4x128xf32>
    %1104 = vector.extract_strided_slice %1098 {offsets = [0, 64], sizes = [4, 32], strides = [1, 1]} : vector<4x128xf32> to vector<4x32xf32>
    %1105 = math.tanh %1104 : vector<4x32xf32>
    %1106 = vector.extract_strided_slice %1103 {offsets = [0, 32], sizes = [4, 32], strides = [1, 1]} : vector<4x128xf32> to vector<4x32xf32>
    %1107 = arith.mulf %1106, %1092 : vector<4x32xf32>
    %1108 = vector.extract_strided_slice %1103 {offsets = [0, 0], sizes = [4, 32], strides = [1, 1]} : vector<4x128xf32> to vector<4x32xf32>
    %1109 = arith.mulf %1108, %1105 : vector<4x32xf32>
    %1110 = arith.addf %1107, %1109 : vector<4x32xf32>
    %1111 = vector.extract_strided_slice %1103 {offsets = [0, 96], sizes = [4, 32], strides = [1, 1]} : vector<4x128xf32> to vector<4x32xf32>
    %1112 = math.tanh %1110 : vector<4x32xf32>
    %1113 = arith.mulf %1111, %1112 : vector<4x32xf32>
    %1114 = arith.select %105, %1113, %1093 : vector<4x32xi1>, vector<4x32xf32>
    %1115 = vector.extract_strided_slice %1114 {offsets = [0, 0], sizes = [2, 32], strides = [1, 1]} : vector<4x32xf32> to vector<2x32xf32>
    %1116 = vector.extract_strided_slice %1114 {offsets = [2, 0], sizes = [2, 32], strides = [1, 1]} : vector<4x32xf32> to vector<2x32xf32>
    %1117 = tpu.concatenate %1115, %1116 in 1 : vector<2x32xf32>, vector<2x32xf32> -> vector<2x64xf32>
    %c0_193 = arith.constant 0 : index
    %c0_194 = arith.constant 0 : index
    %1118 = vector.load %arg6[%c0_193, %c0_194] : memref<64x32xf32, #tpu.memory_space<vmem>>, vector<64x32xf32>
    %cst_195 = arith.constant dense<0.000000e+00> : vector<2x32xf32>
    %1119 = tpu.matmul %1117, %1118, %cst_195 {dimension_numbers = #tpu.dot_dimension_numbers<[1], [0], [0], [1], [0, 0, 1, 1], [], []>} : vector<2x64xf32>, vector<64x32xf32>, vector<2x32xf32> -> vector<2x32xf32>
    %c0_196 = arith.constant 0 : index
    %c0_197 = arith.constant 0 : index
    %1120 = vector.load %arg7[%c0_196, %c0_197] : memref<1x32xf32, #tpu.memory_space<vmem>>, vector<1x32xf32>
    %1121 = vector.broadcast %1120 : vector<1x32xf32> to vector<2x32xf32>
    %1122 = arith.addf %1119, %1121 : vector<2x32xf32>
    %c0_198 = arith.constant 0 : index
    %c0_199 = arith.constant 0 : index
    %1123 = vector.load %arg8[%c0_198, %c0_199] : memref<2x32xf32, #tpu.memory_space<vmem>>, vector<2x32xf32>
    tpu.vector_store %arg8[%c0_198, %c0_199], %1122 {strides = array<i32>} : memref<2x32xf32, #tpu.memory_space<vmem>>, vector<2x32xf32>,
    return
  }
}

</mosaic_0001>

<bundles_post_ra>
// kernel: phv_embedding_forward.1
= control target key start
LH: loop header
LB: loop body
LE: loop exit
PB: predicated region body
PF: predicated region fallthrough
CT: control target
= control target key end

     0   :  { %13 = vsyncpa [#allocation3], 0  ;;  %s7013_s0 = inlined_call_operand.vmem [shape: s32[2,1], index: 0, kind: input, shape index: {}]   ;;  %s7014_s1 = inlined_call_operand.vmem [shape: f32[2,8,32], index: 1, kind: input, shape index: {}]   ;;  %s7015_s2 = inlined_call_operand.vmem [shape: f32[64,128], index: 2, kind: input, shape index: {}]   ;;  %s7016_s3 = inlined_call_operand.vmem [shape: f32[2,128,128], index: 3, kind: input, shape index: {}]   ;;  %s7017_s4 = inlined_call_operand.hbm [shape: f32[3,64,128], index: 4, kind: input, shape index: {}]   ;;  %s7018_s5 = inlined_call_operand.vmem [shape: f32[3,4,128], index: 5, kind: input, shape index: {}]   ;;  %s7019_s6 = inlined_call_operand.vmem [shape: f32[64,32], index: 6, kind: input, shape index: {}]   ;;  %s7020_s7 = inlined_call_operand.vmem [shape: f32[1,32], index: 7, kind: input, shape index: {}]   ;;  %s7021_s8 = inlined_call_operand.hbm [shape: f32[2,32], index: 8, kind: output, shape index: {}]  }
   0x1   :  { %14 = vsyncpa [#allocation4], 0  ;;  %s5475_s27 = smov [#allocation2]   ;;  %s5427_s9 = scalar_lea.hbm %s7017_s4, 3072 }
   0x2   :  { %s28_s28 = sshll.u32 %s5475_s27, 4  ;;  %p5428_p0 = scmp.ne.s32.totalorder %s7017_s4, %s5427_s9  ;;  %s29_s28 = int_to_ptr.vmem [resolvable:$true] %s28_s28 }
   0x3   :  { %p5431_p1 = scmp.lt.u32.totalorder %s5427_s9, %s7017_s4 }
   0x5   :  { %p5433_p2 = pnand %p5431_p1, %p5428_p0 }
   0x7   :  { %5436 = shalt.err (!%p5433_p2)
}
   0x8   :  { %s5437_s14 = scalar_lea.vmem %s29_s28, 3072  ;;  %p5442_p4 = scmp.lt.s32.totalorder %s29_s28, %s29_s28 }
   0x9   :  { %p5438_p3 = scmp.ne.s32.totalorder %s29_s28, %s5437_s14  ;;  %p5443_p5 = scmp.lt.s32.totalorder %s5437_s14, %s5437_s14 }
   0xb   :  { %p5444_p6 = por %p5443_p5, %p5442_p4 }
   0xd   :  { %p5445_p7 = pnand %p5444_p6, %p5438_p3 }
   0xf   :  { %5448 = shalt.err (!%p5445_p7)
}
  0x10   :  { %s5476_s15 = smov 128   ;;  %s5477_s16 = smov 8  }
  0x11   :  { %34 = dma.hbm_to_vmem [thread:$0]  %s7017_s4, 3072, %s29_s28, [#allocation3], %s5476_s15, %s5476_s15, %s5477_s16  }
  0x12   :  { %5471 = dma.done.wait [#allocation3], 3072  }
  0x13   :  { %5472 = vsyncadd [#allocation3], 4294964224  ;;  %v48_v0 = vlaneseq  ;;  %v5478_v1 = vmov 0.0|0.0   ;;  %vm46_vm0 = vcmask 1041408   ;;  %v5557_v3 = vld [vmem:[%s7014_s1] sm:$0xff]  ;;  %v5562_v4 = vld [vmem:[%s7014_s1 + $0x8] sm:$0xff] }
  0x14   :  { %4732 = vmatprep.subr.bf16.mxu1 %v5478_v1  ;;  %vm169_vm2 = vcmask 1041409   ;;  %vm174_vm3 = vcmask 1043459   ;;  %v178_v5 = vrot.slane %v5557_v3, 1  ;;  %v181_v6 = vrot.slane %v5557_v3, 4  ;;  %v224_v17 = vld [vmem:[%s7015_s2] sm:$0xff]  ;;  %v225_v22 = vld [vmem:[%s7015_s2 + $0x8] sm:$0xff] }
  0x15   :  { %v5551_v2 = vshrl.u32 %v48_v0, 7  ;;  %v182_v7 = vrot.slane %v5562_v4, 3  ;;  %v168_v8 = vrot.slane %v5562_v4, 7  ;;  %v172_v9 = vrot.slane %v5557_v3, 5  ;;  %v232_v23 = vld [vmem:[#allocation2] sm:$0xff]  ;;  %v233_v24 = vld [vmem:[#allocation2 + $0x8] sm:$0xff] }
  0x16   :  { %v173_v10 = vrot.slane %v5562_v4, 4  ;;  %v186_v11 = vrot.slane %v5557_v3, 2  ;;  %v187_v12 = vrot.slane %v5562_v4, 1  ;;  %v179_v13 = vsel %vm169_vm2, %v5562_v4, %v178_v5  ;;  %v226_v28 = vld [vmem:[%s7015_s2 + $0x10] sm:$0xff]  ;;  %s5479_s27 = smov 32   ;;  %v227_v32 = vld [vmem:[%s7015_s2 + $0x18] sm:$0xff] }
  0x17   :  { %vm50_vm1 = vcmp.lt.s32.totalorder %v5551_v2, 2  ;;  %v183_v14 = vsel %vm174_vm3, %v182_v7, %v181_v6  ;;  %v170_v15 = vsel %vm169_vm2, %v168_v8, %v5557_v3  ;;  %v190_v16 = vrot.slane %v5557_v3, 3  ;;  %v234_v33 = vld [vmem:[#allocation2 + $0x10] sm:$0xff]  ;;  %v235_v34 = vld [vmem:[#allocation2 + $0x18] sm:$0xff]  ;;  %v228_v41 = vld [vmem:[%s7015_s2 + $0x20] sm:$0xff]  ;;  %s5484_s19 = smov 64  }
  0x18   :  { %v5590_v18 = vsel %vm46_vm0, %v179_v13, %v183_v14  ;;  %v175_v19 = vsel %vm174_vm3, %v173_v10, %v172_v9  ;;  %v191_v20 = vrot.slane %v5562_v4, 2  ;;  %v197_v21 = vsel %vm174_vm3, %v187_v12, %v186_v11  ;;  %v229_v42 = vld [vmem:[%s7015_s2 + $0x28] sm:$0xff]  ;;  %v236_v45 = vld [vmem:[#allocation2 + $0x20] sm:$0xff]  ;;  %v230_v48 = vld [vmem:[%s7015_s2 + $0x30] sm:$0xff]  ;;  %s5491_s29 = smov [#allocation5]  }
  0x19   :  { %v252_v25 = vsel %vm50_vm1, 0.0, %v5590_v18  ;;  %v5606_v26 = vsel %vm46_vm0, %v170_v15, %v175_v19  ;;  %v188_v27 = vsel %vm169_vm2, %v187_v12, %v186_v11  ;;  %v4716_v37 = vpack.c.bf16 %v225_v22, %v224_v17  ;;  %v237_v46 = vld [vmem:[#allocation2 + $0x28] sm:$0xff]  ;;  %v231_v49 = vld [vmem:[%s7015_s2 + $0x38] sm:$0xff]  ;;  %v238_v52 = vld [vmem:[#allocation2 + $0x30] sm:$0xff]  ;;  %s3787_s30 = sshll.u32 %s5491_s29, 4  ;;  %s3788_s30 = int_to_ptr.vmem [resolvable:$true] %s3787_s30 }
  0x1a   :  { %254 = vrot.lane.b32.xlu0 %v252_v25, %s5479_s27  ;;  %v244_v29 = vsel %vm50_vm1, 0.0, %v5606_v26  ;;  %v195_v30 = vsel %vm169_vm2, %v191_v20, %v190_v16  ;;  %v192_v31 = vsel %vm174_vm3, %v191_v20, %v190_v16  ;;  %v5624_v38 = vpack.c.bf16 %v233_v24, %v232_v23  ;;  %v239_v53 = vld [vmem:[#allocation2 + $0x38] sm:$0xff]  ;;  %v5705_v23 = vld [vmem:[%s7018_s5] sm:$0xf]  ;;  %p5454_p9 = scmp.lt.s32.totalorder %s3788_s30, %s3788_s30 }
  0x1b   :  { %246 = vrot.lane.b32.xlu1 %v244_v29, %s5479_s27  ;;  %v199_v35 = vsel %vm46_vm0, %v195_v30, %v197_v21  ;;  %v194_v36 = vsel %vm46_vm0, %v188_v27, %v192_v31  ;;  %4717 = vmatprep.subr.bf16.mxu0 %v4716_v37  ;;  %v4720_v43 = vpack.c.bf16 %v227_v32, %v226_v28  ;;  %vm5480_vm4 = vmmov 0   ;;  %v44_v27 = vld [vmem:[%s7013_s0] sm:$0x3] }
  0x1c   :  { %v266_v39 = vsel %vm50_vm1, 0.0, %v199_v35  ;;  %v259_v40 = vsel %vm50_vm1, 0.0, %v194_v36  ;;  %4734 = vmatpush3.bf16.msra.mxu1 %v5624_v38  ;;  %v5637_v44 = vpack.c.bf16 %v235_v34, %v234_v33  ;;  %4719 = vmatpush3.bf16.msra.mxu0 %v4716_v37  ;;  %v4724_v47 = vpack.c.bf16 %v229_v42, %v228_v41 }
  0x1d   :  { %4721 = vmatprep.subr.bf16.mxu0 %v4720_v43  ;;  %4735 = vmatprep.subr.bf16.mxu1 %v5478_v1  ;;  %v5481_v50 = vmov 0.0   ;;  %v5651_v51 = vpack.c.bf16 %v237_v46, %v236_v45  ;;  %v4728_v54 = vpack.c.bf16 %v231_v49, %v230_v48  ;;  %v5655_v55 = vpack.c.bf16 %v239_v53, %v238_v52 }
  0x1e   :  { %268 = vrot.lane.b32.xlu0 %v266_v39, %s5479_s27  ;;  %4181 = vmatprep.mubr.msk.f32.mxu1 %vm5480_vm4, %v5481_v50  ;;  %v251_v56 = vsel %vm50_vm1, %v5590_v18, 0.0  ;;  %vm249_vm5 = vcmask 261120   ;;  %v243_v57 = vsel %vm50_vm1, %v5606_v26, 0.0  ;;  %vm312_vm6 = vcmask 1043456  }
  0x1f   :  { %261 = vrot.lane.b32.xlu1 %v259_v40, %s5479_s27  ;;  %v265_v61 = vsel %vm50_vm1, %v199_v35, 0.0  ;;  %vm317_vm7 = vcmask 523264   ;;  %v258_v11 = vsel %vm50_vm1, %v194_v36, 0.0  ;;  %v5482_v19 = vmov 0  }
  0x20   :  { %4737 = vmatpush3.bf16.msra.mxu1 %v5637_v44  ;;  %4723 = vmatpush3.bf16.msra.mxu0 %v4720_v43  ;;  %v45_v28 = vrot.slane %v44_v27, 6  ;;  %v5483_v30 = vmov 7   ;;  %v210_v41 = vrot.slane %v5557_v3, 6  ;;  %v211_v42 = vrot.slane %v5562_v4, 5 }
  0x21   :  { %4738 = vmatprep.subr.bf16.mxu1 %v5478_v1  ;;  %4725 = vmatprep.subr.bf16.mxu0 %v4724_v47  ;;  %v5719_v31 = vsel %vm50_vm1, 0, %v5483_v30  ;;  %v214_v43 = vrot.slane %v5557_v3, 7  ;;  %v215_v45 = vrot.slane %v5562_v4, 6  ;;  %vm55_vm11 = vcmp.ge.s32.totalorder %v5551_v2, 2 }
  0x22   :  { %5113 = vset.pattern.permute.xlu0 %v5482_v19  ;;  %5114 = vset.pattern.permute.xlu1 %v5482_v19  ;;  %v5715_v29 = vsel %vm46_vm0, %v44_v27, %v45_v28  ;;  %v212_v52 = vsel %vm169_vm2, %v211_v42, %v210_v41 }
  0x23   :  { %vm60_vm8 = vcmp.lt.s32.totalorder %v5719_v31, %v5715_v29  ;;  %v219_v46 = vsel %vm169_vm2, %v215_v45, %v214_v43  ;;  %v216_v53 = vsel %vm174_vm3, %v215_v45, %v214_v43 }
  0x24   :  { %4740 = vmatpush3.bf16.msra.mxu1 %v5651_v51  ;;  %4727 = vmatpush3.bf16.msra.mxu0 %v4724_v47  ;;  %v61_v33 = vsel %vm60_vm8, 1, %v5482_v19  ;;  %v221_v47 = vsel %vm174_vm3, %v211_v42, %v210_v41  ;;  %v5828_v42 = vrot.slane %v5705_v23, 4 }
  0x25   :  { %4741 = vmatprep.subr.bf16.mxu1 %v5478_v1  ;;  %4729 = vmatprep.subr.bf16.mxu0 %v4728_v54  ;;  %v223_v48 = vsel %vm46_vm0, %v219_v46, %v221_v47 }
  0x26   :  { %v294_v49 = vsel %vm50_vm1, 0.0, %v223_v48 }
  0x28   :  { %4743 = vmatpush3.bf16.msra.mxu1 %v5655_v55  ;;  %4731 = vmatpush3.bf16.msra.mxu0 %v4728_v54  ;;  %v218_v54 = vsel %vm46_vm0, %v212_v52, %v216_v53 }
  0x29   :  { %4756 = vmatprep.subr.bf16.mxu1 %v5478_v1  ;;  %4744 = vmatprep.subr.bf16.mxu0 %v5478_v1 }
  0x2b   :  { %4182 = vmatmul.mubr.f32.vlgmr.msra.gmra.mrb[0].mxu1 %v5481_v50 }
  0x2c   :  { %4758 = vmatpush3.bf16.msra.mxu1 %v5624_v38  ;;  %4219 = vmatprep.mubr.msk.f32.mxu1 %vm5480_vm4, %v5481_v50 }
  0x2d   :  { %4759 = vmatprep.subr.bf16.mxu1 %v5478_v1 }
  0x30   :  { %4761 = vmatpush3.bf16.msra.mxu1 %v5637_v44 }
  0x31   :  { %4762 = vmatprep.subr.bf16.mxu1 %v5478_v1 }
  0x34   :  { %4764 = vmatpush3.bf16.msra.mxu1 %v5651_v51 }
  0x35   :  { %4765 = vmatprep.subr.bf16.mxu1 %v5478_v1 }
  0x38   :  { %4767 = vmatpush3.bf16.msra.mxu1 %v5655_v55 }
  0x39   :  { %4780 = vmatprep.subr.bf16.mxu1 %v5478_v1 }
  0x8c   :  { %v255_v58 = vpop.permute.xlu0 %254 }
  0x8d   :  { %v257_v59 = vsel %vm249_vm5, %v251_v56, %v255_v58  ;;  %v247_v60 = vpop.permute.xlu1 %246  ;;  %v287_v56 = vsel %vm50_vm1, 0.0, %v218_v54 }
  0x8e   :  { %v301_v62 = vrot.slane %v257_v59, 4  ;;  %v250_v63 = vsel %vm249_vm5, %v243_v57, %v247_v60 }
  0x90   :  { %v269_v12 = vpop.permute.xlu0 %268  ;;  %v313_v13 = vsel %vm312_vm6, %v250_v63, %v301_v62  ;;  %v205_v62 = vsel %vm169_vm2, %v173_v10, %v172_v9  ;;  %v207_v63 = vsel %vm174_vm3, %v168_v8, %v5557_v3  ;;  %v200_v9 = vsel %vm169_vm2, %v182_v7, %v181_v6 }
  0x91   :  { %v271_v14 = vsel %vm249_vm5, %v265_v61, %v269_v12  ;;  %4159 = vmatprep.mubr.msk.f32.mxu0 %vm317_vm7, %v313_v13  ;;  %v262_v15 = vpop.permute.xlu1 %261  ;;  %v293_v61 = vsel %vm50_vm1, %v223_v48, 0.0  ;;  %v286_v13 = vsel %vm50_vm1, %v218_v54, 0.0  ;;  %v202_v8 = vsel %vm174_vm3, %v5562_v4, %v178_v5 }
  0x92   :  { %v304_v16 = vrot.slane %v271_v14, 4  ;;  %v264_v17 = vsel %vm249_vm5, %v258_v11, %v262_v15  ;;  %v209_v15 = vsel %vm46_vm0, %v205_v62, %v207_v63 }
  0x93   :  { %v279_v6 = vsel %vm50_vm1, %v209_v15, 0.0 }
  0x94   :  { %v314_v18 = vsel %vm312_vm6, %v264_v17, %v304_v16 }
  0x95   :  { %4160 = vmatmul.mubr.msk.f32.vlgmr.msra.gmra.mrb[0].mxu0 %vm317_vm7, %v314_v18  ;;  %v280_v18 = vsel %vm50_vm1, 0.0, %v209_v15 }
  0x96   :  { %4746 = vmatpush3.bf16.msra.mxu0 %v5624_v38 }
  0x97   :  { %4747 = vmatprep.subr.bf16.mxu0 %v5478_v1 }
  0x9a   :  { %4749 = vmatpush3.bf16.msra.mxu0 %v5637_v44 }
  0x9b   :  { %4750 = vmatprep.subr.bf16.mxu0 %v5478_v1 }
  0x9e   :  { %4752 = vmatpush3.bf16.msra.mxu0 %v5651_v51 }
  0x9f   :  { %4753 = vmatprep.subr.bf16.mxu0 %v5478_v1 }
  0xa2   :  { %4755 = vmatpush3.bf16.msra.mxu0 %v5655_v55 }
  0xa3   :  { %4768 = vmatprep.subr.bf16.mxu0 %v5478_v1 }
  0xfe   :  { %v495_v20 = vpop.f32.mrb[0].mxu1 }
  0xff   :  { %v4183_v21 = vpop.f32.mrb[1].mxu1 }
 0x100   :  { %v204_v21 = vsel %vm46_vm0, %v200_v9, %v202_v8 }
 0x101   :  { %v273_v3 = vsel %vm50_vm1, 0.0, %v204_v21  ;;  %v272_v27 = vsel %vm50_vm1, %v204_v21, 0.0 }
 0x168   :  { %v5700_v22 = vpop.f32.mrb[0].mxu0 }
 0x169   :  { %v5707_v24 = vpop.f32.mrb[1].mxu0 }
 0x16a   :  { %v415_v25 = vadd.f32 %v5707_v24, %v5705_v23  ;;  %v419_v43 = vadd.f32 %v5828_v42, %v5707_v24 }
 0x16c   :  { %v496_v26 = vadd.f32 %v495_v20, %v415_v25  ;;  %v535_v45 = vrot.slane %v419_v43, 4 }
 0x16e   :  { %5235 = vtanh.f32 %v496_v26  ;;  %v3801_v34 = vmul.f32 -1.442695, %v496_v26 }
 0x170   :  { %5237 = vpow2.f32 %v3801_v34  ;;  %v52_v34 = vand.u32 127, %v48_v0 }
 0x172   :  { %vm53_vm10 = vcmp.lt.s32.totalorder %v52_v34, 32  ;;  %vm56_vm12 = vcmp.ge.s32.totalorder %v52_v34, 32 }
 0x173   :  { %vm54_vm13 = vmand %vm50_vm1, %vm53_vm10 }
 0x174   :  { %vm57_vm14 = vmand %vm55_vm11, %vm56_vm12 }
 0x175   :  { %vm5805_vm15 = vmor %vm54_vm13, %vm57_vm14 }
 0x178   :  { %v5236_v32 = vpop.eup %5235 }
 0x179   :  { %508 = vrot.lane.b32.xlu0 %v5236_v32, %s5484_s19 }
 0x17a   :  { %v5238_v35 = vpop.eup %5237 }
 0x17b   :  { %v502_v36 = vadd.f32 1.0, %v5238_v35 }
 0x17d   :  { %63 = vperm.xlu0 %5113, %v61_v33   ;;  %5239 = vrcp.f32 %v502_v36 }
 0x181   :  { %296 = vrot.lane.b32.xlu0 %v294_v49, %s5479_s27  ;;  %v5485_v49 = vmov 6  }
 0x182   :  { %v5834_v52 = vsel %vm50_vm1, 1, %v5485_v49 }
 0x183   :  { %vm74_vm2 = vcmp.lt.s32.totalorder %v5834_v52, %v5715_v29 }
 0x184   :  { %v75_v54 = vsel %vm74_vm2, 1, %v5482_v19 }
 0x185   :  { %289 = vrot.lane.b32.xlu0 %v287_v56, %s5479_s27 }
 0x187   :  { %v5240_v37 = vpop.eup %5239 }
 0x188   :  { %v506_v57 = vmul.f32 0.0, %v5240_v37 }
 0x1eb   :  { %v509_v39 = vpop.permute.xlu0 %508 }
 0x1ec   :  { %v511_v40 = vmul.f32 %v5240_v37, %v509_v39 }
 0x1ee   :  { %513 = vrot.lane.b32.xlu1 %v511_v40, %s5479_s27 }
 0x1fc   :  { %v5745_v60 = vpop.permute.xlu0 %63 }
 0x1fd   :  { %vm65_vm9 = vcmp.eq.s32.totalorder %v5745_v60, 1 }
 0x200   :  { %v297_v11 = vpop.permute.xlu0 %296 }
 0x201   :  { %v299_v12 = vsel %vm249_vm5, %v293_v61, %v297_v11 }
 0x202   :  { %v310_v14 = vrot.slane %v299_v12, 4 }
 0x204   :  { %v290_v10 = vpop.permute.xlu0 %289 }
 0x205   :  { %v292_v17 = vsel %vm249_vm5, %v286_v13, %v290_v10 }
 0x206   :  { %v316_v20 = vsel %vm312_vm6, %v292_v17, %v310_v14 }
 0x260   :  { %v514_v58 = vpop.permute.xlu1 %513 }
 0x261   :  { %v5742_v59 = vadd.f32 %v514_v58, %v506_v57 }
 0x263   :  { %5241 = vtanh.f32 %v5742_v59  ;;  %v524_v63 = vsel %vm65_vm9, %v5742_v59, 0.0 }
 0x26d   :  { %v5242_v16 = vpop.eup %5241 }
 0x26e   :  { %519 = vrot.lane.b32.xlu1 %v5242_v16, %s5484_s19 }
 0x272   :  { %282 = vrot.lane.b32.xlu1 %v280_v18, %s5479_s27 }
 0x276   :  { %275 = vrot.lane.b32.xlu1 %v273_v3, %s5479_s27 }
 0x2e0   :  { %v520_v4 = vpop.permute.xlu1 %519 }
 0x2e1   :  { %v522_v5 = vmul.f32 %v5240_v37, %v520_v4 }
 0x2e3   :  { %v5786_v7 = vsel %vm65_vm9, %v522_v5, 0.0  ;;  %v5486_v5 = vmov 5  }
 0x2e4   :  { %529 = vrot.lane.b32.xlu0 %v5786_v7, %s5484_s19  ;;  %526 = vrot.lane.b32.xlu1 %v5786_v7, %s5479_s27  ;;  %v283_v25 = vpop.permute.xlu1 %282 }
 0x2e5   :  { %v285_v26 = vsel %vm249_vm5, %v279_v6, %v283_v25  ;;  %v5874_v6 = vsel %vm50_vm1, 2, %v5486_v5 }
 0x2e6   :  { %v307_v28 = vrot.slane %v285_v26, 4  ;;  %vm87_vm8 = vcmp.lt.s32.totalorder %v5874_v6, %v5715_v29 }
 0x2e7   :  { %v88_v26 = vsel %vm87_vm8, 1, %v5482_v19 }
 0x2e8   :  { %v276_v30 = vpop.permute.xlu1 %275 }
 0x2e9   :  { %v278_v32 = vsel %vm249_vm5, %v272_v27, %v276_v30 }
 0x2ea   :  { %v315_v33 = vsel %vm312_vm6, %v278_v32, %v307_v28 }
 0x2eb   :  { %4162 = vmatprep.mubr.msk.f32.mxu0 %vm317_vm7, %v315_v33 }
 0x2ec   :  { %4163 = vmatmul.mubr.msk.f32.gmra.mrb[2].mxu0 %vm317_vm7, %v316_v20  ;;  %v420_v20 = vadd.f32 %v5700_v22, %v5705_v23 }
 0x2ed   :  { %4200 = vmatprep.mubr.msk.f32.mxu0 %vm5480_vm4, %v5481_v50 }
 0x356   :  { %v527_v36 = vpop.permute.xlu1 %526  ;;  %v530_v37 = vpop.permute.xlu0 %529 }
 0x357   :  { %v532_v39 = vsel %vm249_vm5, %v527_v36, %v530_v37 }
 0x358   :  { %v533_v40 = vsel %vm5805_vm15, %v532_v39, 0.0 }
 0x359   :  { %4201 = vmatmul.mubr.msk.f32.vlgmr.msra.gmra.mrb[4].mxu0 %vm317_vm7, %v533_v40 }
 0x35a   :  { %4770 = vmatpush3.bf16.msra.mxu0 %v5624_v38  ;;  %4238 = vmatprep.mubr.msk.f32.mxu0 %vm5480_vm4, %v5481_v50 }
 0x35b   :  { %4771 = vmatprep.subr.bf16.mxu0 %v5478_v1 }
 0x35e   :  { %4773 = vmatpush3.bf16.msra.mxu0 %v5637_v44 }
 0x35f   :  { %4774 = vmatprep.subr.bf16.mxu0 %v5478_v1 }
 0x362   :  { %4776 = vmatpush3.bf16.msra.mxu0 %v5651_v51 }
 0x363   :  { %4777 = vmatprep.subr.bf16.mxu0 %v5478_v1 }
 0x366   :  { %4779 = vmatpush3.bf16.msra.mxu0 %v5655_v55 }
 0x367   :  { %4792 = vmatprep.subr.bf16.mxu0 %v5478_v1 }
 0x3bf   :  { %v5823_v0 = vpop.f32.mrb[2].mxu0 }
 0x3c0   :  { %v5825_v41 = vpop.f32.mrb[3].mxu0 }
 0x42c   :  { %v606_v46 = vpop.f32.mrb[4].mxu0 }
 0x42d   :  { %v607_v47 = vadd.f32 %v606_v46, %v535_v45  ;;  %v4202_v48 = vpop.f32.mrb[5].mxu0 }
 0x42f   :  { %5243 = vtanh.f32 %v607_v47  ;;  %v3803_v24 = vmul.f32 -1.442695, %v607_v47 }
 0x431   :  { %5245 = vpow2.f32 %v3803_v24 }
 0x439   :  { %v5244_v53 = vpop.eup %5243 }
 0x43a   :  { %619 = vrot.lane.b32.xlu1 %v5244_v53, %s5484_s19 }
 0x43b   :  { %v5246_v56 = vpop.eup %5245 }
 0x43c   :  { %v613_v57 = vadd.f32 1.0, %v5246_v56  ;;  %v421_v56 = vadd.f32 %v5700_v22, %v5828_v42 }
 0x43e   :  { %77 = vperm.xlu1 %5114, %v75_v54   ;;  %5247 = vrcp.f32 %v613_v57  ;;  %v756_v57 = vrot.slane %v421_v56, 4 }
 0x448   :  { %v5248_v58 = vpop.eup %5247 }
 0x449   :  { %v617_v11 = vmul.f32 %v5248_v58, %v524_v63 }
 0x4ac   :  { %v620_v61 = vpop.permute.xlu1 %619 }
 0x4ad   :  { %v622_v62 = vmul.f32 %v5248_v58, %v620_v61 }
 0x4af   :  { %624 = vrot.lane.b32.xlu0 %v622_v62, %s5479_s27 }
 0x4bd   :  { %v5845_v15 = vpop.permute.xlu1 %77 }
 0x4be   :  { %vm79_vm3 = vcmp.eq.s32.totalorder %v5845_v15, 1 }
 0x521   :  { %v625_v12 = vpop.permute.xlu0 %624 }
 0x522   :  { %v627_v13 = vadd.f32 %v625_v12, %v617_v11 }
 0x524   :  { %5249 = vtanh.f32 %v627_v13  ;;  %v635_v36 = vsel %vm79_vm3, %v627_v13, %v524_v63  ;;  %v5487_v63 = vmov 4  }
 0x525   :  { %v5912_v11 = vsel %vm50_vm1, 3, %v5487_v63 }
 0x526   :  { %vm100_vm11 = vcmp.lt.s32.totalorder %v5912_v11, %v5715_v29 }
 0x527   :  { %v101_v13 = vsel %vm100_vm11, 1, %v5482_v19 }
 0x52e   :  { %v5250_v14 = vpop.eup %5249 }
 0x52f   :  { %630 = vrot.lane.b32.xlu0 %v5250_v14, %s5484_s19 }
 0x5a1   :  { %v631_v16 = vpop.permute.xlu0 %630 }
 0x5a2   :  { %v5847_v9 = vmul.f32 %v5248_v58, %v631_v16 }
 0x5a4   :  { %v634_v8 = vsel %vm79_vm3, %v5847_v9, %v5786_v7 }
 0x5a5   :  { %641 = vrot.lane.b32.xlu0 %v634_v8, %s5484_s19  ;;  %638 = vrot.lane.b32.xlu1 %v634_v8, %s5479_s27 }
 0x617   :  { %v642_v59 = vpop.permute.xlu0 %641  ;;  %v639_v10 = vpop.permute.xlu1 %638 }
 0x618   :  { %v644_v17 = vsel %vm249_vm5, %v639_v10, %v642_v59 }
 0x619   :  { %v645_v18 = vsel %vm5805_vm15, %v644_v17, 0.0 }
 0x61a   :  { %4220 = vmatmul.mubr.msk.f32.vlgmr.msra.gmra.mrb[2].mxu1 %vm317_vm7, %v645_v18 }
 0x61b   :  { %4782 = vmatpush3.bf16.msra.mxu1 %v5624_v38  ;;  %4257 = vmatprep.mubr.msk.f32.mxu1 %vm5480_vm4, %v5481_v50 }
 0x61c   :  { %4783 = vmatprep.subr.bf16.mxu1 %v5478_v1 }
 0x61f   :  { %4785 = vmatpush3.bf16.msra.mxu1 %v5637_v44 }
 0x620   :  { %4786 = vmatprep.subr.bf16.mxu1 %v5478_v1 }
 0x623   :  { %4788 = vmatpush3.bf16.msra.mxu1 %v5651_v51 }
 0x624   :  { %4789 = vmatprep.subr.bf16.mxu1 %v5478_v1 }
 0x627   :  { %4791 = vmatpush3.bf16.msra.mxu1 %v5655_v55 }
 0x628   :  { %4804 = vmatprep.subr.bf16.mxu1 %v5478_v1 }
 0x6ed   :  { %v715_v21 = vpop.f32.mrb[2].mxu1 }
 0x6ee   :  { %v716_v3 = vadd.f32 %v715_v21, %v420_v20  ;;  %v4221_v4 = vpop.f32.mrb[3].mxu1 }
 0x6f0   :  { %5251 = vtanh.f32 %v716_v3  ;;  %v3805_v27 = vmul.f32 -1.442695, %v716_v3 }
 0x6f2   :  { %5253 = vpow2.f32 %v3805_v27 }
 0x6fa   :  { %v5252_v25 = vpop.eup %5251 }
 0x6fb   :  { %728 = vrot.lane.b32.xlu1 %v5252_v25, %s5484_s19 }
 0x6fc   :  { %v5254_v28 = vpop.eup %5253 }
 0x6fd   :  { %v722_v30 = vadd.f32 1.0, %v5254_v28 }
 0x6ff   :  { %90 = vperm.xlu1 %5114, %v88_v26   ;;  %5255 = vrcp.f32 %v722_v30 }
 0x709   :  { %v5256_v32 = vpop.eup %5255 }
 0x70a   :  { %v726_v37 = vmul.f32 %v5256_v32, %v635_v36 }
 0x76d   :  { %v729_v33 = vpop.permute.xlu1 %728 }
 0x76e   :  { %v731_v34 = vmul.f32 %v5256_v32, %v729_v33  ;;  %v422_v33 = vadd.f32 %v5825_v41, %v5705_v23 }
 0x770   :  { %733 = vrot.lane.b32.xlu0 %v731_v34, %s5479_s27 }
 0x77e   :  { %v5884_v45 = vpop.permute.xlu1 %90 }
 0x77f   :  { %vm92_vm10 = vcmp.eq.s32.totalorder %v5884_v45, 1 }
 0x7e2   :  { %v734_v39 = vpop.permute.xlu0 %733 }
 0x7e3   :  { %v736_v40 = vadd.f32 %v734_v39, %v726_v37  ;;  %v5488_v39 = vmov 3  }
 0x7e5   :  { %5257 = vtanh.f32 %v736_v40  ;;  %v744_v17 = vsel %vm92_vm10, %v736_v40, %v635_v36  ;;  %v5949_v40 = vsel %vm50_vm1, 4, %v5488_v39 }
 0x7e6   :  { %vm113_vm13 = vcmp.lt.s32.totalorder %v5949_v40, %v5715_v29 }
 0x7ef   :  { %v5258_v43 = vpop.eup %5257 }
 0x7f0   :  { %739 = vrot.lane.b32.xlu0 %v5258_v43, %s5484_s19 }
 0x862   :  { %v740_v46 = vpop.permute.xlu0 %739 }
 0x863   :  { %v5886_v47 = vmul.f32 %v5256_v32, %v740_v46  ;;  %v114_v46 = vsel %vm113_vm13, 1, %v5482_v19 }
 0x865   :  { %v743_v48 = vsel %vm92_vm10, %v5886_v47, %v634_v8 }
 0x866   :  { %750 = vrot.lane.b32.xlu0 %v743_v48, %s5484_s19  ;;  %747 = vrot.lane.b32.xlu1 %v743_v48, %s5479_s27 }
 0x8d8   :  { %v751_v49 = vpop.permute.xlu0 %750  ;;  %v748_v53 = vpop.permute.xlu1 %747 }
 0x8d9   :  { %v753_v54 = vsel %vm249_vm5, %v748_v53, %v751_v49 }
 0x8da   :  { %v754_v24 = vsel %vm5805_vm15, %v753_v54, 0.0 }
 0x8db   :  { %4239 = vmatmul.mubr.msk.f32.vlgmr.msra.gmra.mrb[6].mxu0 %vm317_vm7, %v754_v24 }
 0x8dc   :  { %4794 = vmatpush3.bf16.msra.mxu0 %v5624_v38  ;;  %4276 = vmatprep.mubr.msk.f32.mxu0 %vm5480_vm4, %v5481_v50 }
 0x8dd   :  { %4795 = vmatprep.subr.bf16.mxu0 %v5478_v1 }
 0x8e0   :  { %4797 = vmatpush3.bf16.msra.mxu0 %v5637_v44 }
 0x8e1   :  { %4798 = vmatprep.subr.bf16.mxu0 %v5478_v1 }
 0x8e4   :  { %4800 = vmatpush3.bf16.msra.mxu0 %v5651_v51 }
 0x8e5   :  { %4801 = vmatprep.subr.bf16.mxu0 %v5478_v1 }
 0x8e8   :  { %4803 = vmatpush3.bf16.msra.mxu0 %v5655_v55 }
 0x8e9   :  { %4816 = vmatprep.subr.bf16.mxu0 %v5478_v1 }
 0x9ae   :  { %v827_v58 = vpop.f32.mrb[6].mxu0 }
 0x9af   :  { %v828_v61 = vadd.f32 %v827_v58, %v756_v57  ;;  %v4240_v62 = vpop.f32.mrb[7].mxu0 }
 0x9b1   :  { %5259 = vtanh.f32 %v828_v61  ;;  %v3807_v22 = vmul.f32 -1.442695, %v828_v61 }
 0x9b3   :  { %5261 = vpow2.f32 %v3807_v22 }
 0x9bb   :  { %v5260_v12 = vpop.eup %5259 }
 0x9bc   :  { %840 = vrot.lane.b32.xlu1 %v5260_v12, %s5484_s19 }
 0x9bd   :  { %v5262_v14 = vpop.eup %5261 }
 0x9be   :  { %v834_v16 = vadd.f32 1.0, %v5262_v14 }
 0x9c0   :  { %103 = vperm.xlu1 %5114, %v101_v13   ;;  %5263 = vrcp.f32 %v834_v16 }
 0x9ca   :  { %v5264_v8 = vpop.eup %5263 }
 0x9cb   :  { %v838_v18 = vmul.f32 %v5264_v8, %v744_v17 }
 0xa2e   :  { %v841_v59 = vpop.permute.xlu1 %840 }
 0xa2f   :  { %v843_v10 = vmul.f32 %v5264_v8, %v841_v59 }
 0xa31   :  { %845 = vrot.lane.b32.xlu0 %v843_v10, %s5479_s27 }
 0xa3f   :  { %v5922_v4 = vpop.permute.xlu1 %103 }
 0xa40   :  { %vm105_vm12 = vcmp.eq.s32.totalorder %v5922_v4, 1 }
 0xaa3   :  { %v846_v20 = vpop.permute.xlu0 %845 }
 0xaa4   :  { %v848_v21 = vadd.f32 %v846_v20, %v838_v18 }
 0xaa6   :  { %5265 = vtanh.f32 %v848_v21  ;;  %v856_v57 = vsel %vm105_vm12, %v848_v21, %v744_v17 }
 0xab0   :  { %v5266_v3 = vpop.eup %5265 }
 0xab1   :  { %851 = vrot.lane.b32.xlu0 %v5266_v3, %s5484_s19  ;;  %v5489_v3 = vmov 2  }
 0xb23   :  { %v852_v5 = vpop.permute.xlu0 %851 }
 0xb24   :  { %v5924_v25 = vmul.f32 %v5264_v8, %v852_v5 }
 0xb26   :  { %v855_v26 = vsel %vm105_vm12, %v5924_v25, %v743_v48 }
 0xb27   :  { %862 = vrot.lane.b32.xlu0 %v855_v26, %s5484_s19  ;;  %859 = vrot.lane.b32.xlu1 %v855_v26, %s5479_s27 }
 0xb99   :  { %v863_v27 = vpop.permute.xlu0 %862  ;;  %v860_v28 = vpop.permute.xlu1 %859 }
 0xb9a   :  { %v865_v30 = vsel %vm249_vm5, %v860_v28, %v863_v27 }
 0xb9b   :  { %v866_v32 = vsel %vm5805_vm15, %v865_v30, 0.0 }
 0xb9c   :  { %4258 = vmatmul.mubr.msk.f32.vlgmr.msra.gmra.mrb[4].mxu1 %vm317_vm7, %v866_v32 }
 0xb9d   :  { %4806 = vmatpush3.bf16.msra.mxu1 %v5624_v38  ;;  %4295 = vmatprep.mubr.msk.f32.mxu1 %vm5480_vm4, %v5481_v50 }
 0xb9e   :  { %4807 = vmatprep.subr.bf16.mxu1 %v5478_v1 }
 0xba1   :  { %4809 = vmatpush3.bf16.msra.mxu1 %v5637_v44 }
 0xba2   :  { %4810 = vmatprep.subr.bf16.mxu1 %v5478_v1 }
 0xba5   :  { %4812 = vmatpush3.bf16.msra.mxu1 %v5651_v51 }
 0xba6   :  { %4813 = vmatprep.subr.bf16.mxu1 %v5478_v1 }
 0xba9   :  { %4815 = vmatpush3.bf16.msra.mxu1 %v5655_v55 }
 0xc6f   :  { %v936_v34 = vpop.f32.mrb[4].mxu1 }
 0xc70   :  { %v937_v36 = vadd.f32 %v936_v34, %v422_v33  ;;  %v4259_v37 = vpop.f32.mrb[5].mxu1 }
 0xc72   :  { %5267 = vtanh.f32 %v937_v36  ;;  %v3809_v48 = vmul.f32 -1.442695, %v937_v36 }
 0xc74   :  { %5269 = vpow2.f32 %v3809_v48 }
 0xc7c   :  { %v5268_v43 = vpop.eup %5267 }
 0xc7d   :  { %949 = vrot.lane.b32.xlu1 %v5268_v43, %s5484_s19 }
 0xc7e   :  { %v5270_v49 = vpop.eup %5269 }
 0xc7f   :  { %v943_v53 = vadd.f32 1.0, %v5270_v49 }
 0xc81   :  { %116 = vperm.xlu1 %5114, %v114_v46   ;;  %5271 = vrcp.f32 %v943_v53 }
 0xc8b   :  { %v5272_v54 = vpop.eup %5271 }
 0xc8c   :  { %v947_v58 = vmul.f32 %v5272_v54, %v856_v57 }
 0xcef   :  { %v950_v24 = vpop.permute.xlu1 %949 }
 0xcf0   :  { %v952_v56 = vmul.f32 %v5272_v54, %v950_v24 }
 0xcf2   :  { %954 = vrot.lane.b32.xlu0 %v952_v56, %s5479_s27  ;;  %v424_v56 = vadd.f32 %v5823_v0, %v5705_v23 }
 0xd00   :  { %v5959_v12 = vpop.permute.xlu1 %116 }
 0xd01   :  { %vm118_vm14 = vcmp.eq.s32.totalorder %v5959_v12, 1 }
 0xd64   :  { %v955_v61 = vpop.permute.xlu0 %954 }
 0xd65   :  { %v957_v62 = vadd.f32 %v955_v61, %v947_v58 }
 0xd67   :  { %5273 = vtanh.f32 %v957_v62  ;;  %v965_v32 = vsel %vm118_vm14, %v957_v62, %v856_v57  ;;  %v5490_v62 = vmov 1  }
 0xd71   :  { %v5274_v63 = vpop.eup %5273 }
 0xd72   :  { %960 = vrot.lane.b32.xlu0 %v5274_v63, %s5484_s19  ;;  %v6015_v63 = vsel %vm50_vm1, 6, %v5490_v62 }
 0xd73   :  { %vm139_vm11 = vcmp.lt.s32.totalorder %v6015_v63, %v5715_v29 }
 0xde4   :  { %v961_v13 = vpop.permute.xlu0 %960 }
 0xde5   :  { %v5961_v22 = vmul.f32 %v5272_v54, %v961_v13 }
 0xde7   :  { %v964_v14 = vsel %vm118_vm14, %v5961_v22, %v855_v26 }
 0xde8   :  { %971 = vrot.lane.b32.xlu0 %v964_v14, %s5484_s19  ;;  %968 = vrot.lane.b32.xlu1 %v964_v14, %s5479_s27 }
 0xe5a   :  { %v972_v16 = vpop.permute.xlu0 %971  ;;  %v969_v8 = vpop.permute.xlu1 %968 }
 0xe5b   :  { %v974_v59 = vsel %vm249_vm5, %v969_v8, %v972_v16 }
 0xe5c   :  { %v975_v10 = vsel %vm5805_vm15, %v974_v59, 0.0 }
 0xe5d   :  { %4277 = vmatmul.mubr.msk.f32.vlgmr.msra.gmra.mrb[8].mxu0 %vm317_vm7, %v975_v10 }
 0xe5e   :  { %4818 = vmatpush3.bf16.msra.mxu0 %v5624_v38  ;;  %4314 = vmatprep.mubr.msk.f32.mxu0 %vm5480_vm4, %v5481_v50  ;;  %v423_v38 = vadd.f32 %v5828_v42, %v5825_v41 }
 0xe5f   :  { %4819 = vmatprep.subr.bf16.mxu0 %v5478_v1 }
 0xe60   :  { %v977_v17 = vrot.slane %v423_v38, 4 }
 0xe62   :  { %4821 = vmatpush3.bf16.msra.mxu0 %v5637_v44  ;;  %v5987_v44 = vsel %vm50_vm1, 5, %v5489_v3 }
 0xe63   :  { %4822 = vmatprep.subr.bf16.mxu0 %v5478_v1  ;;  %vm126_vm2 = vcmp.lt.s32.totalorder %v5987_v44, %v5715_v29 }
 0xe66   :  { %4824 = vmatpush3.bf16.msra.mxu0 %v5651_v51 }
 0xe67   :  { %4825 = vmatprep.subr.bf16.mxu0 %v5478_v1 }
 0xe6a   :  { %4827 = vmatpush3.bf16.msra.mxu0 %v5655_v55  ;;  %v127_v55 = vsel %vm126_vm2, 1, %v5482_v19 }
 0xe6b   :  { %4860 = vmatprep.subr.bf16.mxu0 %v5478_v1 }
 0xf30   :  { %v1048_v18 = vpop.f32.mrb[8].mxu0 }
 0xf31   :  { %v1049_v20 = vadd.f32 %v1048_v18, %v977_v17  ;;  %v4278_v21 = vpop.f32.mrb[9].mxu0 }
 0xf33   :  { %5275 = vtanh.f32 %v1049_v20  ;;  %v3811_v41 = vmul.f32 -1.442695, %v1049_v20 }
 0xf35   :  { %5277 = vpow2.f32 %v3811_v41  ;;  %v966_v41 = vsel %vm118_vm14, %v5961_v22, 0.0 }
 0xf3d   :  { %v5276_v51 = vpop.eup %5275 }
 0xf3e   :  { %1061 = vrot.lane.b32.xlu1 %v5276_v51, %s5484_s19  ;;  %v636_v51 = vsel %vm79_vm3, %v5847_v9, 0.0 }
 0xf3f   :  { %v5278_v5 = vpop.eup %5277 }
 0xf40   :  { %v1055_v26 = vadd.f32 1.0, %v5278_v5 }
 0xf42   :  { %129 = vperm.xlu1 %5114, %v127_v55   ;;  %5279 = vrcp.f32 %v1055_v26  ;;  %v857_v55 = vsel %vm105_vm12, %v5924_v25, 0.0 }
 0xf4c   :  { %v5280_v27 = vpop.eup %5279 }
 0xf4d   :  { %v1059_v33 = vmul.f32 %v5280_v27, %v965_v32 }
 0xfb0   :  { %v1062_v28 = vpop.permute.xlu1 %1061 }
 0xfb1   :  { %v1064_v30 = vmul.f32 %v5280_v27, %v1062_v28  ;;  %v1363_v28 = vrot.slane %v857_v55, 6 }
 0xfb3   :  { %1066 = vrot.lane.b32.xlu0 %v1064_v30, %s5479_s27  ;;  %v1366_v30 = vrot.slane %v857_v55, 2  ;;  %v6048_v22 = vsel %vm46_vm0, %v966_v41, %v1363_v28 }
 0xfc1   :  { %v5997_v39 = vpop.permute.xlu1 %129 }
 0xfc2   :  { %vm131_vm8 = vcmp.eq.s32.totalorder %v5997_v39, 1 }
0x1025   :  { %v1067_v34 = vpop.permute.xlu0 %1066 }
0x1026   :  { %v1069_v36 = vadd.f32 %v1067_v34, %v1059_v33  ;;  %v1398_v33 = vrot.slane %v636_v51, 2  ;;  %v1347_v34 = vrot.slane %v966_v41, 6 }
0x1028   :  { %5281 = vtanh.f32 %v1069_v36  ;;  %v6024_v17 = vsel %vm131_vm8, %v1069_v36, %v965_v32  ;;  %v1350_v36 = vrot.slane %v966_v41, 2 }
0x1032   :  { %v5282_v37 = vpop.eup %5281 }
0x1033   :  { %1072 = vrot.lane.b32.xlu0 %v5282_v37, %s5484_s19  ;;  %v6051_v37 = vsel %vm46_vm0, %v1366_v30, %v966_v41 }
0x10a5   :  { %v1073_v43 = vpop.permute.xlu0 %1072 }
0x10a6   :  { %v5999_v46 = vmul.f32 %v5280_v27, %v1073_v43  ;;  %v1395_v27 = vrot.slane %v636_v51, 6 }
0x10a8   :  { %v1076_v48 = vsel %vm131_vm8, %v5999_v46, %v964_v14  ;;  %v140_v14 = vsel %vm139_vm11, 1, %v5482_v19 }
0x10a9   :  { %1083 = vrot.lane.b32.xlu0 %v1076_v48, %s5484_s19  ;;  %1080 = vrot.lane.b32.xlu1 %v1076_v48, %s5479_s27 }
0x111b   :  { %v1084_v49 = vpop.permute.xlu0 %1083  ;;  %v1081_v53 = vpop.permute.xlu1 %1080 }
0x111c   :  { %v1086_v54 = vsel %vm249_vm5, %v1081_v53, %v1084_v49 }
0x111d   :  { %v1087_v24 = vsel %vm5805_vm15, %v1086_v54, 0.0 }
0x111e   :  { %4296 = vmatmul.mubr.msk.f32.vlgmr.msra.gmra.mrb[6].mxu1 %vm317_vm7, %v1087_v24 }
0x11f1   :  { %v1157_v57 = vpop.f32.mrb[6].mxu1 }
0x11f2   :  { %v1158_v58 = vadd.f32 %v1157_v57, %v424_v56  ;;  %v4297_v61 = vpop.f32.mrb[7].mxu1  ;;  %v1349_v57 = vsel %vm46_vm0, %v857_v55, %v1347_v34 }
0x11f3   :  { %v1352_v61 = vsel %vm46_vm0, %v1350_v36, %v857_v55 }
0x11f4   :  { %5283 = vtanh.f32 %v1158_v58  ;;  %v3813_v16 = vmul.f32 -1.442695, %v1158_v58 }
0x11f6   :  { %5285 = vpow2.f32 %v3813_v16 }
0x11fe   :  { %v5284_v13 = vpop.eup %5283 }
0x11ff   :  { %1170 = vrot.lane.b32.xlu1 %v5284_v13, %s5484_s19 }
0x1200   :  { %v5286_v23 = vpop.eup %5285 }
0x1201   :  { %v1164_v8 = vadd.f32 1.0, %v5286_v23 }
0x1203   :  { %142 = vperm.xlu1 %5114, %v140_v14   ;;  %5287 = vrcp.f32 %v1164_v8 }
0x120d   :  { %v5288_v59 = vpop.eup %5287 }
0x120e   :  { %v1168_v18 = vmul.f32 %v5288_v59, %v6024_v17 }
0x1271   :  { %v1171_v10 = vpop.permute.xlu1 %1170 }
0x1272   :  { %v1173_v38 = vmul.f32 %v5288_v59, %v1171_v10 }
0x1274   :  { %1175 = vrot.lane.b32.xlu0 %v1173_v38, %s5479_s27 }
0x1282   :  { %v6040_v5 = vpop.permute.xlu1 %142 }
0x1283   :  { %vm144_vm13 = vcmp.eq.s32.totalorder %v6040_v5, 1  ;;  %v3694_v5 = vld [vmem:[%s7019_s6 + $0x18] sm:$0xff] }
0x12e6   :  { %v1176_v20 = vpop.permute.xlu0 %1175 }
0x12e7   :  { %v6027_v21 = vadd.f32 %v1176_v20, %v1168_v18 }
0x12e9   :  { %5289 = vtanh.f32 %v6027_v21  ;;  %v1186_v30 = vsel %vm144_vm13, %v6027_v21, %v6024_v17 }
0x12f3   :  { %v5290_v3 = vpop.eup %5289 }
0x12f4   :  { %1181 = vrot.lane.b32.xlu0 %v5290_v3, %s5484_s19  ;;  %v6080_v3 = vsel %vm50_vm1, 7, %v5482_v19 }
0x12f5   :  { %vm152_vm2 = vcmp.lt.s32.totalorder %v6080_v3, %v5715_v29 }
0x12f6   :  { %v153_v55 = vsel %vm152_vm2, 1, %v5482_v19 }
0x1366   :  { %v1182_v26 = vpop.permute.xlu0 %1181 }
0x1367   :  { %v1184_v32 = vmul.f32 %v5288_v59, %v1182_v26  ;;  %v425_v59 = vadd.f32 %v5823_v0, %v5828_v42 }
0x1369   :  { %v1187_v9 = vsel %vm144_vm13, %v1184_v32, 0.0  ;;  %v1185_v25 = vsel %vm144_vm13, %v1184_v32, %v1076_v48  ;;  %v1198_v10 = vrot.slane %v425_v59, 4  ;;  %v1429_v59 = vld [vmem:[%s7016_s3 + $0x20] sm:$0xff] }
0x136a   :  { %v1315_v43 = vrot.slane %v1187_v9, 6  ;;  %v1318_v49 = vrot.slane %v1187_v9, 2  ;;  %1192 = vrot.lane.b32.xlu0 %v1185_v25, %s5484_s19  ;;  %1189 = vrot.lane.b32.xlu1 %v1185_v25, %s5479_s27  ;;  %v6056_v53 = vsel %vm46_vm0, %v1187_v9, %v1395_v27  ;;  %v6059_v54 = vsel %vm46_vm0, %v1398_v33, %v1187_v9 }
0x136b   :  { %v5155_v48 = vpack.i.bf16 %v6056_v53, %v6048_v22  ;;  %v5160_v24 = vpack.i.bf16 %v6059_v54, %v6051_v37  ;;  %v1078_v25 = vsel %vm131_vm8, %v5999_v46, 0.0  ;;  %v1426_v46 = vld [vmem:[%s7016_s3 + $0x8] sm:$0xff] }
0x136c   :  { %v1317_v56 = vsel %vm46_vm0, %v636_v51, %v1315_v43  ;;  %v1320_v58 = vsel %vm46_vm0, %v1318_v49, %v636_v51  ;;  %v745_v43 = vsel %vm92_vm10, %v5886_v47, 0.0  ;;  %v1331_v17 = vrot.slane %v1078_v25, 6  ;;  %v1427_v47 = vld [vmem:[%s7016_s3 + $0x10] sm:$0xff] }
0x136d   :  { %v5115_v62 = vpack.i.bf16 %v1349_v57, %v1317_v56  ;;  %v5120_v13 = vpack.i.bf16 %v1352_v61, %v1320_v58  ;;  %v1334_v21 = vrot.slane %v1078_v25, 2  ;;  %v1379_v58 = vrot.slane %v745_v43, 6  ;;  %v1425_v61 = vld [vmem:[%s7016_s3] sm:$0xff] }
0x13dc   :  { %v1193_v14 = vpop.permute.xlu0 %1192  ;;  %v1190_v16 = vpop.permute.xlu1 %1189 }
0x13dd   :  { %v1195_v23 = vsel %vm249_vm5, %v1190_v16, %v1193_v14  ;;  %v1336_v14 = vsel %vm46_vm0, %v1334_v21, %v745_v43  ;;  %v1333_v16 = vsel %vm46_vm0, %v745_v43, %v1331_v17 }
0x13de   :  { %v1196_v8 = vsel %vm5805_vm15, %v1195_v23, 0.0  ;;  %v4828_v23 = vpack.c.bf16 %v1426_v46, %v1425_v61  ;;  %v1382_v61 = vrot.slane %v745_v43, 2  ;;  %v1413_v43 = vrot.slane %v5786_v7, 2 }
0x13df   :  { %4315 = vmatmul.mubr.msk.f32.vlgmr.msra.gmra.mrb[10].mxu0 %vm317_vm7, %v1196_v8  ;;  %v1428_v8 = vld [vmem:[%s7016_s3 + $0x18] sm:$0xff] }
0x13e0   :  { %4371 = vmatprep.mubr.msk.f32.mxu0 %vm5480_vm4, %v5481_v50  ;;  %4829 = vmatprep.subr.bf16.mxu1 %v4828_v23 }
0x13e1   :  { %4831 = vmatpush3.bf16.msra.mxu1 %v4828_v23  ;;  %v6160_v23 = vsel %vm46_vm0, %v1078_v25, %v1379_v58  ;;  %v1433_v58 = vld [vmem:[%s7016_s3 + $0x40] sm:$0xff] }
0x14b2   :  { %v1269_v38 = vpop.f32.mrb[10].mxu0 }
0x14b3   :  { %v1270_v18 = vadd.f32 %v1269_v38, %v1198_v10  ;;  %v4316_v20 = vpop.f32.mrb[11].mxu0  ;;  %v1430_v10 = vld [vmem:[%s7016_s3 + $0x28] sm:$0xff] }
0x14b5   :  { %5291 = vtanh.f32 %v1270_v18  ;;  %v3815_v0 = vmul.f32 -1.442695, %v1270_v18 }
0x14b7   :  { %5293 = vpow2.f32 %v3815_v0 }
0x14bf   :  { %v5292_v51 = vpop.eup %5291 }
0x14c0   :  { %1282 = vrot.lane.b32.xlu1 %v5292_v51, %s5484_s19 }
0x14c1   :  { %v5294_v42 = vpop.eup %5293 }
0x14c2   :  { %v1276_v41 = vadd.f32 1.0, %v5294_v42 }
0x14c4   :  { %155 = vperm.xlu1 %5114, %v153_v55   ;;  %5295 = vrcp.f32 %v1276_v41  ;;  %v4832_v55 = vpack.c.bf16 %v1428_v8, %v1427_v47 }
0x14c6   :  { %4833 = vmatprep.subr.bf16.mxu1 %v4832_v55 }
0x14c7   :  { %4835 = vmatpush3.bf16.msra.mxu1 %v4832_v55 }
0x14c8   :  { %5116 = vrot.lane.b32.xlu1 %v5115_v62, %s5479_s27  ;;  %v1410_v62 = vrot.slane %v5786_v7, 6 }
0x14ce   :  { %v5296_v26 = vpop.eup %5295 }
0x14cf   :  { %v1280_v32 = vmul.f32 %v5296_v26, %v1186_v30 }
0x1532   :  { %v1283_v27 = vpop.permute.xlu1 %1282 }
0x1533   :  { %v1285_v28 = vmul.f32 %v5296_v26, %v1283_v27  ;;  %v1442_v27 = vld [vmem:[#allocation2 + $0x40] sm:$0xff] }
0x1535   :  { %1287 = vrot.lane.b32.xlu0 %v1285_v28, %s5479_s27  ;;  %v1443_v28 = vld [vmem:[#allocation2 + $0x48] sm:$0xff] }
0x1543   :  { %v6094_v9 = vpop.permute.xlu1 %155 }
0x1544   :  { %vm157_vm11 = vcmp.eq.s32.totalorder %v6094_v9, 1 }
0x1547   :  { %v5117_v56 = vpop.permute.xlu1 %5116 }
0x1548   :  { %v5119_v38 = vunpack.i.h.bf16 %v5117_v56  ;;  %v5118_v0 = vunpack.i.l.bf16 %v5117_v56 }
0x15a7   :  { %v1288_v33 = vpop.permute.xlu0 %1287 }
0x15a8   :  { %v1290_v34 = vadd.f32 %v1288_v33, %v1280_v32  ;;  %v6130_v33 = vpack.c.bf16 %v1443_v28, %v1442_v27  ;;  %v1447_v27 = vld [vmem:[#allocation2 + $0x68] sm:$0xff] }
0x15aa   :  { %5297 = vtanh.f32 %v1290_v34  ;;  %v1444_v34 = vld [vmem:[#allocation2 + $0x50] sm:$0xff]  ;;  %4862 = vmatpush3.bf16.msra.mxu0 %v6130_v33 }
0x15ab   :  { %4863 = vmatprep.subr.bf16.mxu0 %v5478_v1 }
0x15b4   :  { %v5298_v36 = vpop.eup %5297 }
0x15b5   :  { %1293 = vrot.lane.b32.xlu0 %v5298_v36, %s5484_s19 }
0x15b9   :  { %5121 = vrot.lane.b32.xlu0 %v5120_v13, %s5484_s19 }
0x1627   :  { %v1294_v49 = vpop.permute.xlu0 %1293 }
0x1628   :  { %v1296_v57 = vmul.f32 %v5296_v26, %v1294_v49  ;;  %v4836_v26 = vpack.c.bf16 %v1430_v10, %v1429_v59  ;;  %v6166_v59 = vsel %vm46_vm0, %v1382_v61, %v1078_v25 }
0x162a   :  { %v1297_v13 = vsel %vm157_vm11, %v1296_v57, 0.0  ;;  %v1445_v57 = vld [vmem:[#allocation2 + $0x58] sm:$0xff]  ;;  %4837 = vmatprep.subr.bf16.mxu1 %v4836_v26 }
0x162b   :  { %v1299_v18 = vrot.slane %v1297_v13, 6  ;;  %v1302_v20 = vrot.slane %v1297_v13, 2  ;;  %v5122_v51 = vpop.permute.xlu0 %5121  ;;  %v6133_v36 = vsel %vm46_vm0, %v1297_v13, %v1410_v62  ;;  %v1431_v62 = vld [vmem:[%s7016_s3 + $0x30] sm:$0xff]  ;;  %4839 = vmatpush3.bf16.msra.mxu1 %v4836_v26  ;;  %v1446_v26 = vld [vmem:[#allocation2 + $0x60] sm:$0xff] }
0x162c   :  { %v5124_v42 = vunpack.i.h.bf16 %v5122_v51  ;;  %v5123_v41 = vunpack.i.l.bf16 %v5122_v51  ;;  %v5145_v8 = vpack.i.bf16 %v6133_v36, %v6160_v23  ;;  %v1436_v51 = vld [vmem:[%s7016_s3 + $0x58] sm:$0xff]  ;;  %v6194_v28 = vpack.c.bf16 %v1447_v27, %v1446_v26 }
0x162d   :  { %v1304_v30 = vsel %vm46_vm0, %v1302_v20, %v5786_v7  ;;  %v1301_v32 = vsel %vm46_vm0, %v5786_v7, %v1299_v18  ;;  %v6169_v7 = vsel %vm46_vm0, %v1413_v43, %v1297_v13  ;;  %v1434_v20 = vld [vmem:[%s7016_s3 + $0x48] sm:$0xff]  ;;  %v1435_v13 = vld [vmem:[%s7016_s3 + $0x50] sm:$0xff] }
0x162e   :  { %v5130_v17 = vpack.i.bf16 %v1336_v14, %v1304_v30  ;;  %v5125_v21 = vpack.i.bf16 %v1333_v16, %v1301_v32  ;;  %v6136_v49 = vsel %vm249_vm5, %v5118_v0, %v5123_v41  ;;  %v6139_v56 = vsel %vm249_vm5, %v5119_v38, %v5124_v42  ;;  %v1432_v14 = vld [vmem:[%s7016_s3 + $0x38] sm:$0xff]  ;;  %v1437_v0 = vld [vmem:[%s7016_s3 + $0x60] sm:$0xff]  ;;  %v1438_v42 = vld [vmem:[%s7016_s3 + $0x68] sm:$0xff] }
0x162f   :  { %v1460_v46 = vsel %vm50_vm1, 0.0, %v6136_v49  ;;  %v1474_v47 = vsel %vm50_vm1, 0.0, %v6139_v56  ;;  %v6157_v16 = vpack.c.bf16 %v1445_v57, %v1444_v34  ;;  %v4840_v38 = vpack.c.bf16 %v1432_v14, %v1431_v62  ;;  %v1439_v30 = vld [vmem:[%s7016_s3 + $0x70] sm:$0xff]  ;;  %v1440_v32 = vld [vmem:[%s7016_s3 + $0x78] sm:$0xff] }
0x1630   :  { %5131 = vrot.lane.b32.xlu0 %v5130_v17, %s5484_s19  ;;  %5126 = vrot.lane.b32.xlu1 %v5125_v21, %s5479_s27  ;;  %v5135_v10 = vpack.i.bf16 %v1474_v47, %v1460_v46  ;;  %v5150_v18 = vpack.i.bf16 %v6169_v7, %v6166_v59  ;;  %v4844_v25 = vpack.c.bf16 %v1434_v20, %v1433_v58  ;;  %v1448_v17 = vld [vmem:[#allocation2 + $0x70] sm:$0xff]  ;;  %v1449_v21 = vld [vmem:[#allocation2 + $0x78] sm:$0xff] }
0x1631   :  { %4865 = vmatpush3.bf16.msra.mxu0 %v6157_v16  ;;  %4841 = vmatprep.subr.bf16.mxu1 %v4840_v38  ;;  %v4848_v55 = vpack.c.bf16 %v1436_v51, %v1435_v13  ;;  %v4852_v41 = vpack.c.bf16 %v1438_v42, %v1437_v0  ;;  %v4856_v34 = vpack.c.bf16 %v1440_v32, %v1439_v30  ;;  %v1473_v0 = vsel %vm50_vm1, %v6139_v56, 0.0 }
0x1632   :  { %4866 = vmatprep.subr.bf16.mxu0 %v5478_v1  ;;  %4843 = vmatpush3.bf16.msra.mxu1 %v4840_v38  ;;  %v6204_v57 = vpack.c.bf16 %v1449_v21, %v1448_v17  ;;  %v1459_v42 = vsel %vm50_vm1, %v6136_v49, 0.0 }
0x1633   :  { %4845 = vmatprep.subr.bf16.mxu1 %v4844_v25 }
0x1634   :  { %5136 = vrot.lane.b32.xlu1 %v5135_v10, %s5484_s19 }
0x1635   :  { %4868 = vmatpush3.bf16.msra.mxu0 %v6194_v28 }
0x1636   :  { %4847 = vmatpush3.bf16.msra.mxu1 %v4844_v25  ;;  %4869 = vmatprep.subr.bf16.mxu0 %v5478_v1 }
0x1637   :  { %4849 = vmatprep.subr.bf16.mxu1 %v4848_v55 }
0x1639   :  { %4871 = vmatpush3.bf16.msra.mxu0 %v6204_v57 }
0x163a   :  { %4851 = vmatpush3.bf16.msra.mxu1 %v4848_v55  ;;  %4872 = vmatprep.subr.bf16.mxu0 %v5478_v1 }
0x163b   :  { %4853 = vmatprep.subr.bf16.mxu1 %v4852_v41 }
0x163c   :  { %4372 = vmatmul.mubr.f32.vlgmr.msra.gmra.mrb[12].mxu0 %v5481_v50 }
0x163d   :  { %4874 = vmatpush3.bf16.msra.mxu0 %v6130_v33  ;;  %4390 = vmatprep.mubr.msk.f32.mxu0 %vm5480_vm4, %v5481_v50 }
0x163e   :  { %4855 = vmatpush3.bf16.msra.mxu1 %v4852_v41  ;;  %4875 = vmatprep.subr.bf16.mxu0 %v5478_v1 }
0x163f   :  { %4857 = vmatprep.subr.bf16.mxu1 %v4856_v34 }
0x1641   :  { %4877 = vmatpush3.bf16.msra.mxu0 %v6157_v16 }
0x1642   :  { %4859 = vmatpush3.bf16.msra.mxu1 %v4856_v34  ;;  %4878 = vmatprep.subr.bf16.mxu0 %v5478_v1 }
0x1643   :  { %4884 = vmatprep.subr.bf16.mxu1 %v5478_v1 }
0x1645   :  { %4880 = vmatpush3.bf16.msra.mxu0 %v6194_v28 }
0x1646   :  { %4881 = vmatprep.subr.bf16.mxu0 %v5478_v1 }
0x1649   :  { %4883 = vmatpush3.bf16.msra.mxu0 %v6204_v57 }
0x164a   :  { %4896 = vmatprep.subr.bf16.mxu0 %v5478_v1 }
0x16a2   :  { %v5127_v61 = vpop.permute.xlu1 %5126  ;;  %v5132_v46 = vpop.permute.xlu0 %5131 }
0x16a3   :  { %v5129_v47 = vunpack.i.h.bf16 %v5127_v61  ;;  %v5128_v62 = vunpack.i.l.bf16 %v5127_v61  ;;  %v5134_v14 = vunpack.i.h.bf16 %v5132_v46  ;;  %v5133_v43 = vunpack.i.l.bf16 %v5132_v46 }
0x16a5   :  { %v1313_v10 = vsel %vm249_vm5, %v5128_v62, %v5133_v43  ;;  %v1345_v38 = vsel %vm249_vm5, %v5129_v47, %v5134_v14 }
0x16a6   :  { %v1453_v58 = vsel %vm50_vm1, 0.0, %v1313_v10  ;;  %v1467_v20 = vsel %vm50_vm1, 0.0, %v1345_v38  ;;  %v5137_v13 = vpop.permute.xlu1 %5136  ;;  %v1466_v34 = vsel %vm50_vm1, %v1345_v38, 0.0  ;;  %v1452_v17 = vsel %vm50_vm1, %v1313_v10, 0.0  ;;  %v6256_v10 = vld [vmem:[%s7018_s5 + $0x4] sm:$0xf] }
0x16a7   :  { %v5140_v25 = vpack.i.bf16 %v1467_v20, %v1453_v58  ;;  %v5139_v51 = vunpack.i.h.bf16 %v5137_v13  ;;  %v5138_v55 = vunpack.i.l.bf16 %v5137_v13 }
0x16a9   :  { %5141 = vrot.lane.b32.xlu0 %v5140_v25, %s5484_s19  ;;  %v1479_v41 = vsel %vm317_vm7, %v1473_v0, %v5139_v51  ;;  %v1465_v26 = vsel %vm317_vm7, %v1459_v42, %v5138_v55 }
0x16aa   :  { %v1509_v21 = vrot.slane %v1465_v26, 4  ;;  %v1512_v61 = vrot.slane %v1479_v41, 4 }
0x170f   :  { %v1686_v62 = vpop.f32.mrb[12].mxu0 }
0x1710   :  { %v4373_v14 = vpop.f32.mrb[13].mxu0 }
0x171b   :  { %v5142_v27 = vpop.permute.xlu0 %5141 }
0x171c   :  { %v5144_v30 = vunpack.i.h.bf16 %v5142_v27  ;;  %v5143_v32 = vunpack.i.l.bf16 %v5142_v27 }
0x171e   :  { %v1458_v56 = vsel %vm317_vm7, %v1452_v17, %v5143_v32  ;;  %v1472_v46 = vsel %vm317_vm7, %v1466_v34, %v5144_v30 }
0x171f   :  { %v1520_v49 = vsel %vm312_vm6, %v1458_v56, %v1509_v21  ;;  %v1521_v47 = vsel %vm312_vm6, %v1472_v46, %v1512_v61 }
0x1720   :  { %4349 = vmatprep.mubr.f32.mxu1 %v1520_v49 }
0x1721   :  { %4350 = vmatmul.mubr.f32.vlgmr.msra.gmra.mrb[8].mxu1 %v1521_v47  ;;  %v6285_v47 = vrot.slane %v6256_v10, 4 }
0x1722   :  { %4886 = vmatpush3.bf16.msra.mxu1 %v6130_v33 }
0x1723   :  { %4887 = vmatprep.subr.bf16.mxu1 %v5478_v1 }
0x1726   :  { %4889 = vmatpush3.bf16.msra.mxu1 %v6157_v16 }
0x1727   :  { %4890 = vmatprep.subr.bf16.mxu1 %v5478_v1 }
0x172a   :  { %4892 = vmatpush3.bf16.msra.mxu1 %v6194_v28 }
0x172b   :  { %4893 = vmatprep.subr.bf16.mxu1 %v5478_v1 }
0x172e   :  { %4895 = vmatpush3.bf16.msra.mxu1 %v6204_v57 }
0x172f   :  { %4908 = vmatprep.subr.bf16.mxu1 %v5478_v1 }
0x17f4   :  { %v6251_v43 = vpop.f32.mrb[8].mxu1 }
0x17f5   :  { %v1590_v38 = vpop.f32.mrb[9].mxu1 }
0x17f6   :  { %v1609_v58 = vadd.f32 %v6256_v10, %v1590_v38 }
0x17f8   :  { %v1687_v20 = vadd.f32 %v1686_v62, %v1609_v58  ;;  %v1613_v62 = vadd.f32 %v6285_v47, %v1590_v38 }
0x17fa   :  { %5299 = vtanh.f32 %v1687_v20  ;;  %v3817_v13 = vmul.f32 -1.442695, %v1687_v20  ;;  %v1726_v14 = vrot.slane %v1613_v62, 4 }
0x17fc   :  { %5301 = vpow2.f32 %v3817_v13 }
0x1804   :  { %v5300_v25 = vpop.eup %5299 }
0x1805   :  { %1699 = vrot.lane.b32.xlu1 %v5300_v25, %s5484_s19 }
0x1806   :  { %v5302_v51 = vpop.eup %5301 }
0x1807   :  { %v1693_v55 = vadd.f32 1.0, %v5302_v51 }
0x1809   :  { %5303 = vrcp.f32 %v1693_v55 }
0x1813   :  { %v5304_v0 = vpop.eup %5303 }
0x1814   :  { %v1697_v26 = vmul.f32 0.0, %v5304_v0 }
0x1877   :  { %v1700_v42 = vpop.permute.xlu1 %1699 }
0x1878   :  { %v1702_v41 = vmul.f32 %v5304_v0, %v1700_v42 }
0x187a   :  { %1704 = vrot.lane.b32.xlu0 %v1702_v41, %s5479_s27 }
0x18ec   :  { %v1705_v27 = vpop.permute.xlu0 %1704 }
0x18ed   :  { %v1707_v30 = vadd.f32 %v1705_v27, %v1697_v26 }
0x18ef   :  { %5305 = vtanh.f32 %v1707_v30  ;;  %v6308_v22 = vsel %vm65_vm9, %v1707_v30, 0.0 }
0x18f9   :  { %v5306_v32 = vpop.eup %5305 }
0x18fa   :  { %1710 = vrot.lane.b32.xlu1 %v5306_v32, %s5484_s19 }
0x196c   :  { %v1711_v34 = vpop.permute.xlu1 %1710 }
0x196d   :  { %v1713_v17 = vmul.f32 %v5304_v0, %v1711_v34 }
0x196f   :  { %v6264_v21 = vsel %vm65_vm9, %v1713_v17, 0.0 }
0x1970   :  { %1720 = vrot.lane.b32.xlu1 %v6264_v21, %s5484_s19  ;;  %1717 = vrot.lane.b32.xlu0 %v6264_v21, %s5479_s27 }
0x19e2   :  { %v1721_v61 = vpop.permute.xlu1 %1720  ;;  %v1718_v56 = vpop.permute.xlu0 %1717 }
0x19e3   :  { %v1723_v46 = vsel %vm249_vm5, %v1718_v56, %v1721_v61 }
0x19e4   :  { %v1724_v49 = vsel %vm5805_vm15, %v1723_v46, 0.0 }
0x19e5   :  { %4391 = vmatmul.mubr.msk.f32.vlgmr.msra.gmra.mrb[14].mxu0 %vm317_vm7, %v1724_v49 }
0x19e6   :  { %4898 = vmatpush3.bf16.msra.mxu0 %v6130_v33  ;;  %4428 = vmatprep.mubr.msk.f32.mxu0 %vm5480_vm4, %v5481_v50 }
0x19e7   :  { %4899 = vmatprep.subr.bf16.mxu0 %v5478_v1 }
0x19ea   :  { %4901 = vmatpush3.bf16.msra.mxu0 %v6157_v16 }
0x19eb   :  { %4902 = vmatprep.subr.bf16.mxu0 %v5478_v1 }
0x19ee   :  { %4904 = vmatpush3.bf16.msra.mxu0 %v6194_v28 }
0x19ef   :  { %4905 = vmatprep.subr.bf16.mxu0 %v5478_v1 }
0x19f2   :  { %4907 = vmatpush3.bf16.msra.mxu0 %v6204_v57 }
0x19f3   :  { %4920 = vmatprep.subr.bf16.mxu0 %v5478_v1 }
0x1ab8   :  { %v1797_v58 = vpop.f32.mrb[14].mxu0 }
0x1ab9   :  { %v1798_v20 = vadd.f32 %v1797_v58, %v1726_v14  ;;  %v4392_v25 = vpop.f32.mrb[15].mxu0 }
0x1abb   :  { %5307 = vtanh.f32 %v1798_v20  ;;  %v3819_v51 = vmul.f32 -1.442695, %v1798_v20 }
0x1abd   :  { %5309 = vpow2.f32 %v3819_v51 }
0x1ac5   :  { %v5308_v13 = vpop.eup %5307 }
0x1ac6   :  { %1810 = vrot.lane.b32.xlu0 %v5308_v13, %s5484_s19 }
0x1ac7   :  { %v5310_v38 = vpop.eup %5309 }
0x1ac8   :  { %v1804_v55 = vadd.f32 1.0, %v5310_v38 }
0x1aca   :  { %5146 = vrot.lane.b32.xlu0 %v5145_v8, %s5479_s27  ;;  %5311 = vrcp.f32 %v1804_v55 }
0x1ace   :  { %5156 = vrot.lane.b32.xlu0 %v5155_v48, %s5479_s27 }
0x1ad4   :  { %v5312_v0 = vpop.eup %5311 }
0x1ad5   :  { %v1808_v48 = vmul.f32 %v5312_v0, %v6308_v22 }
0x1b38   :  { %v1811_v42 = vpop.permute.xlu0 %1810 }
0x1b39   :  { %v1813_v41 = vmul.f32 %v5312_v0, %v1811_v42 }
0x1b3b   :  { %1815 = vrot.lane.b32.xlu1 %v1813_v41, %s5479_s27 }
0x1b3c   :  { %v5147_v53 = vpop.permute.xlu0 %5146 }
0x1b3d   :  { %v5149_v59 = vunpack.i.h.bf16 %v5147_v53  ;;  %v5148_v7 = vunpack.i.l.bf16 %v5147_v53 }
0x1b3f   :  { %5151 = vrot.lane.b32.xlu1 %v5150_v18, %s5484_s19 }
0x1b40   :  { %v5157_v18 = vpop.permute.xlu0 %5156 }
0x1b41   :  { %v5158_v17 = vunpack.i.l.bf16 %v5157_v18 }
0x1b43   :  { %5161 = vrot.lane.b32.xlu1 %v5160_v24, %s5484_s19  ;;  %v5159_v24 = vunpack.i.h.bf16 %v5157_v18 }
0x1bad   :  { %v1816_v36 = vpop.permute.xlu1 %1815 }
0x1bae   :  { %v6311_v23 = vadd.f32 %v1816_v36, %v1808_v48 }
0x1bb0   :  { %5313 = vtanh.f32 %v6311_v23 }
0x1bb1   :  { %v5152_v8 = vpop.permute.xlu1 %5151 }
0x1bb2   :  { %v5154_v26 = vunpack.i.h.bf16 %v5152_v8  ;;  %v5153_v27 = vunpack.i.l.bf16 %v5152_v8 }
0x1bb4   :  { %v1393_v37 = vsel %vm249_vm5, %v5148_v7, %v5153_v27  ;;  %v1424_v54 = vsel %vm249_vm5, %v5149_v59, %v5154_v26 }
0x1bb5   :  { %v5162_v30 = vpop.permute.xlu1 %5161  ;;  %v1488_v32 = vsel %vm50_vm1, 0.0, %v1393_v37  ;;  %v1502_v34 = vsel %vm50_vm1, 0.0, %v1424_v54  ;;  %v1501_v41 = vsel %vm50_vm1, %v1424_v54, 0.0  ;;  %v1487_v53 = vsel %vm50_vm1, %v1393_v37, 0.0 }
0x1bb6   :  { %v5164_v61 = vunpack.i.h.bf16 %v5162_v30  ;;  %v5163_v56 = vunpack.i.l.bf16 %v5162_v30  ;;  %v5165_v46 = vpack.i.bf16 %v1502_v34, %v1488_v32 }
0x1bb8   :  { %5166 = vrot.lane.b32.xlu1 %v5165_v46, %s5484_s19  ;;  %v1377_v49 = vsel %vm249_vm5, %v5158_v17, %v5163_v56  ;;  %v1409_v62 = vsel %vm249_vm5, %v5159_v24, %v5164_v61 }
0x1bb9   :  { %v1481_v58 = vsel %vm50_vm1, 0.0, %v1377_v49  ;;  %v1495_v20 = vsel %vm50_vm1, 0.0, %v1409_v62  ;;  %v1480_v18 = vsel %vm50_vm1, %v1377_v49, 0.0  ;;  %v1494_v27 = vsel %vm50_vm1, %v1409_v62, 0.0 }
0x1bba   :  { %v5314_v14 = vpop.eup %5313  ;;  %v5170_v25 = vpack.i.bf16 %v1495_v20, %v1481_v58  ;;  %v1614_v62 = vadd.f32 %v6251_v43, %v6256_v10 }
0x1bbb   :  { %1821 = vrot.lane.b32.xlu0 %v5314_v14, %s5484_s19 }
0x1bbf   :  { %5171 = vrot.lane.b32.xlu0 %v5170_v25, %s5484_s19 }
0x1c2a   :  { %v5167_v13 = vpop.permute.xlu1 %5166 }
0x1c2b   :  { %v5169_v51 = vunpack.i.h.bf16 %v5167_v13  ;;  %v5168_v38 = vunpack.i.l.bf16 %v5167_v13 }
0x1c2d   :  { %v1822_v55 = vpop.permute.xlu0 %1821  ;;  %v1507_v48 = vsel %vm317_vm7, %v1501_v41, %v5169_v51  ;;  %v1493_v36 = vsel %vm317_vm7, %v1487_v53, %v5168_v38 }
0x1c2e   :  { %v6329_v42 = vmul.f32 %v5312_v0, %v1822_v55  ;;  %v1515_v26 = vrot.slane %v1493_v36, 4  ;;  %v1518_v37 = vrot.slane %v1507_v48, 4  ;;  %v1826_v48 = vsel %vm79_vm3, %v6311_v23, %v6308_v22 }
0x1c30   :  { %v1825_v8 = vsel %vm79_vm3, %v6329_v42, %v6264_v21 }
0x1c31   :  { %1832 = vrot.lane.b32.xlu0 %v1825_v8, %s5484_s19  ;;  %1829 = vrot.lane.b32.xlu1 %v1825_v8, %s5479_s27  ;;  %v5172_v0 = vpop.permute.xlu0 %5171 }
0x1c32   :  { %v5174_v59 = vunpack.i.h.bf16 %v5172_v0  ;;  %v5173_v7 = vunpack.i.l.bf16 %v5172_v0 }
0x1c34   :  { %v1486_v54 = vsel %vm317_vm7, %v1480_v18, %v5173_v7  ;;  %v1500_v24 = vsel %vm317_vm7, %v1494_v27, %v5174_v59 }
0x1c35   :  { %v1522_v30 = vsel %vm312_vm6, %v1486_v54, %v1515_v26  ;;  %v1523_v32 = vsel %vm312_vm6, %v1500_v24, %v1518_v37 }
0x1c36   :  { %4352 = vmatprep.mubr.f32.mxu1 %v1522_v30 }
0x1c37   :  { %4353 = vmatmul.mubr.f32.gmra.mrb[10].mxu1 %v1523_v32 }
0x1c38   :  { %4409 = vmatprep.mubr.msk.f32.mxu1 %vm5480_vm4, %v5481_v50 }
0x1ca3   :  { %v1830_v34 = vpop.permute.xlu1 %1829  ;;  %v1833_v17 = vpop.permute.xlu0 %1832 }
0x1ca4   :  { %v1835_v61 = vsel %vm249_vm5, %v1830_v34, %v1833_v17 }
0x1ca5   :  { %v1836_v56 = vsel %vm5805_vm15, %v1835_v61, 0.0 }
0x1ca6   :  { %4410 = vmatmul.mubr.msk.f32.vlgmr.msra.gmra.mrb[12].mxu1 %vm317_vm7, %v1836_v56 }
0x1ca7   :  { %4910 = vmatpush3.bf16.msra.mxu1 %v6130_v33  ;;  %4447 = vmatprep.mubr.msk.f32.mxu1 %vm5480_vm4, %v5481_v50 }
0x1ca8   :  { %4911 = vmatprep.subr.bf16.mxu1 %v5478_v1 }
0x1cab   :  { %4913 = vmatpush3.bf16.msra.mxu1 %v6157_v16 }
0x1cac   :  { %4914 = vmatprep.subr.bf16.mxu1 %v5478_v1 }
0x1caf   :  { %4916 = vmatpush3.bf16.msra.mxu1 %v6194_v28 }
0x1cb0   :  { %4917 = vmatprep.subr.bf16.mxu1 %v5478_v1 }
0x1cb3   :  { %4919 = vmatpush3.bf16.msra.mxu1 %v6204_v57 }
0x1cb4   :  { %4932 = vmatprep.subr.bf16.mxu1 %v5478_v1 }
0x1d0a   :  { %v6367_v46 = vpop.f32.mrb[10].mxu1 }
0x1d0b   :  { %v6369_v49 = vpop.f32.mrb[11].mxu1 }
0x1d79   :  { %v1906_v14 = vpop.f32.mrb[12].mxu1 }
0x1d7a   :  { %v1907_v58 = vadd.f32 %v1906_v14, %v1614_v62  ;;  %v4411_v20 = vpop.f32.mrb[13].mxu1 }
0x1d7c   :  { %5315 = vtanh.f32 %v1907_v58  ;;  %v3821_v13 = vmul.f32 -1.442695, %v1907_v58 }
0x1d7e   :  { %5317 = vpow2.f32 %v3821_v13 }
0x1d86   :  { %v5316_v25 = vpop.eup %5315 }
0x1d87   :  { %1919 = vrot.lane.b32.xlu1 %v5316_v25, %s5484_s19 }
0x1d88   :  { %v5318_v51 = vpop.eup %5317 }
0x1d89   :  { %v1913_v38 = vadd.f32 1.0, %v5318_v51 }
0x1d8b   :  { %5319 = vrcp.f32 %v1913_v38 }
0x1d95   :  { %v5320_v55 = vpop.eup %5319 }
0x1d96   :  { %v1917_v36 = vmul.f32 %v5320_v55, %v1826_v48 }
0x1df9   :  { %v1920_v41 = vpop.permute.xlu1 %1919 }
0x1dfa   :  { %v1922_v53 = vmul.f32 %v5320_v55, %v1920_v41 }
0x1dfc   :  { %1924 = vrot.lane.b32.xlu0 %v1922_v53, %s5479_s27 }
0x1e6e   :  { %v1925_v0 = vpop.permute.xlu0 %1924 }
0x1e6f   :  { %v1927_v59 = vadd.f32 %v1925_v0, %v1917_v36 }
0x1e71   :  { %5321 = vtanh.f32 %v1927_v59 }
0x1e7b   :  { %v5322_v7 = vpop.eup %5321 }
0x1e7c   :  { %1930 = vrot.lane.b32.xlu1 %v5322_v7, %s5484_s19  ;;  %v1616_v7 = vadd.f32 %v6256_v10, %v6369_v49 }
0x1eee   :  { %v1931_v18 = vpop.permute.xlu1 %1930 }
0x1eef   :  { %v6380_v26 = vmul.f32 %v5320_v55, %v1931_v18 }
0x1ef1   :  { %v1934_v27 = vsel %vm92_vm10, %v6380_v26, %v1825_v8  ;;  %v1615_v8 = vadd.f32 %v6251_v43, %v6285_v47  ;;  %v1935_v43 = vsel %vm92_vm10, %v1927_v59, %v1826_v48 }
0x1ef2   :  { %1941 = vrot.lane.b32.xlu1 %v1934_v27, %s5484_s19  ;;  %1938 = vrot.lane.b32.xlu0 %v1934_v27, %s5479_s27 }
0x1ef3   :  { %v1947_v24 = vrot.slane %v1615_v8, 4 }
0x1f64   :  { %v1942_v37 = vpop.permute.xlu1 %1941  ;;  %v1939_v22 = vpop.permute.xlu0 %1938 }
0x1f65   :  { %v1944_v23 = vsel %vm249_vm5, %v1939_v22, %v1942_v37 }
0x1f66   :  { %v1945_v54 = vsel %vm5805_vm15, %v1944_v23, 0.0 }
0x1f67   :  { %4429 = vmatmul.mubr.msk.f32.vlgmr.msra.gmra.mrb[16].mxu0 %vm317_vm7, %v1945_v54 }
0x1f68   :  { %4922 = vmatpush3.bf16.msra.mxu0 %v6130_v33  ;;  %4466 = vmatprep.mubr.msk.f32.mxu0 %vm5480_vm4, %v5481_v50 }
0x1f69   :  { %4923 = vmatprep.subr.bf16.mxu0 %v5478_v1 }
0x1f6c   :  { %4925 = vmatpush3.bf16.msra.mxu0 %v6157_v16 }
0x1f6d   :  { %4926 = vmatprep.subr.bf16.mxu0 %v5478_v1 }
0x1f70   :  { %4928 = vmatpush3.bf16.msra.mxu0 %v6194_v28 }
0x1f71   :  { %4929 = vmatprep.subr.bf16.mxu0 %v5478_v1 }
0x1f74   :  { %4931 = vmatpush3.bf16.msra.mxu0 %v6204_v57 }
0x1f75   :  { %4944 = vmatprep.subr.bf16.mxu0 %v5478_v1 }
0x203a   :  { %v2018_v30 = vpop.f32.mrb[16].mxu0 }
0x203b   :  { %v2019_v32 = vadd.f32 %v2018_v30, %v1947_v24  ;;  %v4430_v34 = vpop.f32.mrb[17].mxu0 }
0x203d   :  { %5323 = vtanh.f32 %v2019_v32  ;;  %v3823_v61 = vmul.f32 -1.442695, %v2019_v32 }
0x203f   :  { %5325 = vpow2.f32 %v3823_v61 }
0x2047   :  { %v5324_v17 = vpop.eup %5323 }
0x2048   :  { %2031 = vrot.lane.b32.xlu0 %v5324_v17, %s5484_s19 }
0x2049   :  { %v5326_v56 = vpop.eup %5325 }
0x204a   :  { %v2025_v62 = vadd.f32 1.0, %v5326_v56 }
0x204c   :  { %5327 = vrcp.f32 %v2025_v62 }
0x2056   :  { %v5328_v14 = vpop.eup %5327 }
0x2057   :  { %v2029_v25 = vmul.f32 %v5328_v14, %v1935_v43 }
0x20ba   :  { %v2032_v58 = vpop.permute.xlu0 %2031 }
0x20bb   :  { %v2034_v20 = vmul.f32 %v5328_v14, %v2032_v58 }
0x20bd   :  { %2036 = vrot.lane.b32.xlu1 %v2034_v20, %s5479_s27 }
0x212f   :  { %v2037_v13 = vpop.permute.xlu1 %2036 }
0x2130   :  { %v2039_v51 = vadd.f32 %v2037_v13, %v2029_v25 }
0x2132   :  { %5329 = vtanh.f32 %v2039_v51  ;;  %v2047_v34 = vsel %vm105_vm12, %v2039_v51, %v1935_v43 }
0x213c   :  { %v5330_v38 = vpop.eup %5329 }
0x213d   :  { %2042 = vrot.lane.b32.xlu0 %v5330_v38, %s5484_s19 }
0x21af   :  { %v2043_v55 = vpop.permute.xlu0 %2042 }
0x21b0   :  { %v6408_v41 = vmul.f32 %v5328_v14, %v2043_v55 }
0x21b2   :  { %v2046_v53 = vsel %vm105_vm12, %v6408_v41, %v1934_v27 }
0x21b3   :  { %2053 = vrot.lane.b32.xlu0 %v2046_v53, %s5484_s19  ;;  %2050 = vrot.lane.b32.xlu1 %v2046_v53, %s5479_s27 }
0x2225   :  { %v2054_v36 = vpop.permute.xlu0 %2053  ;;  %v2051_v48 = vpop.permute.xlu1 %2050 }
0x2226   :  { %v2056_v0 = vsel %vm249_vm5, %v2051_v48, %v2054_v36 }
0x2227   :  { %v2057_v59 = vsel %vm5805_vm15, %v2056_v0, 0.0 }
0x2228   :  { %4448 = vmatmul.mubr.msk.f32.vlgmr.msra.gmra.mrb[14].mxu1 %vm317_vm7, %v2057_v59 }
0x2229   :  { %4934 = vmatpush3.bf16.msra.mxu1 %v6130_v33  ;;  %4485 = vmatprep.mubr.msk.f32.mxu1 %vm5480_vm4, %v5481_v50 }
0x222a   :  { %4935 = vmatprep.subr.bf16.mxu1 %v5478_v1 }
0x222d   :  { %4937 = vmatpush3.bf16.msra.mxu1 %v6157_v16 }
0x222e   :  { %4938 = vmatprep.subr.bf16.mxu1 %v5478_v1 }
0x2231   :  { %4940 = vmatpush3.bf16.msra.mxu1 %v6194_v28 }
0x2232   :  { %4941 = vmatprep.subr.bf16.mxu1 %v5478_v1 }
0x2235   :  { %4943 = vmatpush3.bf16.msra.mxu1 %v6204_v57 }
0x22fb   :  { %v2127_v18 = vpop.f32.mrb[14].mxu1 }
0x22fc   :  { %v2128_v27 = vadd.f32 %v2127_v18, %v1616_v7  ;;  %v4449_v37 = vpop.f32.mrb[15].mxu1 }
0x22fe   :  { %5331 = vtanh.f32 %v2128_v27  ;;  %v3825_v23 = vmul.f32 -1.442695, %v2128_v27 }
0x2300   :  { %5333 = vpow2.f32 %v3825_v23 }
0x2308   :  { %v5332_v22 = vpop.eup %5331 }
0x2309   :  { %2140 = vrot.lane.b32.xlu1 %v5332_v22, %s5484_s19 }
0x230a   :  { %v5334_v54 = vpop.eup %5333 }
0x230b   :  { %v2134_v8 = vadd.f32 1.0, %v5334_v54 }
0x230d   :  { %5335 = vrcp.f32 %v2134_v8 }
0x2317   :  { %v5336_v24 = vpop.eup %5335 }
0x2318   :  { %v2138_v17 = vmul.f32 %v5336_v24, %v2047_v34 }
0x237b   :  { %v2141_v30 = vpop.permute.xlu1 %2140 }
0x237c   :  { %v2143_v32 = vmul.f32 %v5336_v24, %v2141_v30 }
0x237e   :  { %2145 = vrot.lane.b32.xlu0 %v2143_v32, %s5479_s27 }
0x23f0   :  { %v2146_v61 = vpop.permute.xlu0 %2145 }
0x23f1   :  { %v2148_v56 = vadd.f32 %v2146_v61, %v2138_v17  ;;  %v1618_v17 = vadd.f32 %v6367_v46, %v6256_v10 }
0x23f3   :  { %5337 = vtanh.f32 %v2148_v56 }
0x23fd   :  { %v5338_v62 = vpop.eup %5337 }
0x23fe   :  { %2151 = vrot.lane.b32.xlu1 %v5338_v62, %s5484_s19 }
0x2470   :  { %v2152_v14 = vpop.permute.xlu1 %2151 }
0x2471   :  { %v6435_v58 = vmul.f32 %v5336_v24, %v2152_v14 }
0x2473   :  { %v2155_v20 = vsel %vm118_vm14, %v6435_v58, %v2046_v53 }
0x2474   :  { %2162 = vrot.lane.b32.xlu1 %v2155_v20, %s5484_s19  ;;  %2159 = vrot.lane.b32.xlu0 %v2155_v20, %s5479_s27 }
0x24e6   :  { %v2163_v25 = vpop.permute.xlu1 %2162  ;;  %v2160_v43 = vpop.permute.xlu0 %2159 }
0x24e7   :  { %v2165_v13 = vsel %vm249_vm5, %v2160_v43, %v2163_v25 }
0x24e8   :  { %v2166_v51 = vsel %vm5805_vm15, %v2165_v13, 0.0 }
0x24e9   :  { %4467 = vmatmul.mubr.msk.f32.vlgmr.msra.gmra.mrb[18].mxu0 %vm317_vm7, %v2166_v51 }
0x24ea   :  { %4946 = vmatpush3.bf16.msra.mxu0 %v6130_v33  ;;  %4504 = vmatprep.mubr.msk.f32.mxu0 %vm5480_vm4, %v5481_v50  ;;  %v1617_v33 = vadd.f32 %v6285_v47, %v6369_v49  ;;  %v2156_v49 = vsel %vm118_vm14, %v2148_v56, %v2047_v34 }
0x24eb   :  { %4947 = vmatprep.subr.bf16.mxu0 %v5478_v1 }
0x24ec   :  { %v2168_v38 = vrot.slane %v1617_v33, 4 }
0x24ee   :  { %4949 = vmatpush3.bf16.msra.mxu0 %v6157_v16 }
0x24ef   :  { %4950 = vmatprep.subr.bf16.mxu0 %v5478_v1 }
0x24f2   :  { %4952 = vmatpush3.bf16.msra.mxu0 %v6194_v28 }
0x24f3   :  { %4953 = vmatprep.subr.bf16.mxu0 %v5478_v1 }
0x24f6   :  { %4955 = vmatpush3.bf16.msra.mxu0 %v6204_v57 }
0x24f7   :  { %4988 = vmatprep.subr.bf16.mxu0 %v5478_v1 }
0x25bc   :  { %v2239_v55 = vpop.f32.mrb[18].mxu0 }
0x25bd   :  { %v2240_v53 = vadd.f32 %v2239_v55, %v2168_v38  ;;  %v4468_v36 = vpop.f32.mrb[19].mxu0 }
0x25bf   :  { %5339 = vtanh.f32 %v2240_v53  ;;  %v3827_v16 = vmul.f32 -1.442695, %v2240_v53 }
0x25c1   :  { %5341 = vpow2.f32 %v3827_v16  ;;  %v1827_v16 = vsel %vm79_vm3, %v6329_v42, 0.0 }
0x25c9   :  { %v5340_v48 = vpop.eup %5339 }
0x25ca   :  { %2252 = vrot.lane.b32.xlu0 %v5340_v48, %s5484_s19  ;;  %v2048_v48 = vsel %vm105_vm12, %v6408_v41, 0.0 }
0x25cb   :  { %v5342_v28 = vpop.eup %5341 }
0x25cc   :  { %v2246_v0 = vadd.f32 1.0, %v5342_v28  ;;  %v2157_v28 = vsel %vm118_vm14, %v6435_v58, 0.0 }
0x25ce   :  { %5343 = vrcp.f32 %v2246_v0 }
0x25d8   :  { %v5344_v59 = vpop.eup %5343 }
0x25d9   :  { %v2250_v18 = vmul.f32 %v5344_v59, %v2156_v49 }
0x263c   :  { %v2253_v57 = vpop.permute.xlu0 %2252 }
0x263d   :  { %v2255_v7 = vmul.f32 %v5344_v59, %v2253_v57  ;;  %v2557_v57 = vrot.slane %v2048_v48, 2 }
0x263f   :  { %2257 = vrot.lane.b32.xlu1 %v2255_v7, %s5479_s27  ;;  %v6494_v41 = vsel %vm46_vm0, %v2557_v57, %v2157_v28 }
0x26b1   :  { %v2258_v27 = vpop.permute.xlu1 %2257 }
0x26b2   :  { %v2260_v37 = vadd.f32 %v2258_v27, %v2250_v18  ;;  %v2589_v18 = vrot.slane %v1827_v16, 2  ;;  %v2538_v27 = vrot.slane %v2157_v28, 6 }
0x26b4   :  { %5345 = vtanh.f32 %v2260_v37  ;;  %v2268_v10 = vsel %vm131_vm8, %v2260_v37, %v2156_v49  ;;  %v2586_v49 = vrot.slane %v1827_v16, 6  ;;  %v2541_v37 = vrot.slane %v2157_v28, 2 }
0x26be   :  { %v5346_v22 = vpop.eup %5345 }
0x26bf   :  { %2263 = vrot.lane.b32.xlu0 %v5346_v22, %s5484_s19 }
0x2731   :  { %v2264_v23 = vpop.permute.xlu0 %2263 }
0x2732   :  { %v6463_v54 = vmul.f32 %v5344_v59, %v2264_v23  ;;  %v2554_v59 = vrot.slane %v2048_v48, 6 }
0x2734   :  { %v2267_v8 = vsel %vm131_vm8, %v6463_v54, %v2155_v20  ;;  %v6491_v22 = vsel %vm46_vm0, %v2157_v28, %v2554_v59 }
0x2735   :  { %2274 = vrot.lane.b32.xlu0 %v2267_v8, %s5484_s19  ;;  %2271 = vrot.lane.b32.xlu1 %v2267_v8, %s5479_s27 }
0x27a7   :  { %v2275_v24 = vpop.permute.xlu0 %2274  ;;  %v2272_v30 = vpop.permute.xlu1 %2271 }
0x27a8   :  { %v2277_v32 = vsel %vm249_vm5, %v2272_v30, %v2275_v24 }
0x27a9   :  { %v2278_v34 = vsel %vm5805_vm15, %v2277_v32, 0.0 }
0x27aa   :  { %4486 = vmatmul.mubr.msk.f32.vlgmr.msra.gmra.mrb[16].mxu1 %vm317_vm7, %v2278_v34 }
0x287d   :  { %v2348_v61 = vpop.f32.mrb[16].mxu1 }
0x287e   :  { %v2349_v56 = vadd.f32 %v2348_v61, %v1618_v17  ;;  %v4487_v62 = vpop.f32.mrb[17].mxu1  ;;  %v2540_v61 = vsel %vm46_vm0, %v2048_v48, %v2538_v27 }
0x287f   :  { %v2543_v62 = vsel %vm46_vm0, %v2541_v37, %v2048_v48 }
0x2880   :  { %5347 = vtanh.f32 %v2349_v56  ;;  %v3829_v20 = vmul.f32 -1.442695, %v2349_v56 }
0x2882   :  { %5349 = vpow2.f32 %v3829_v20 }
0x288a   :  { %v5348_v14 = vpop.eup %5347 }
0x288b   :  { %2361 = vrot.lane.b32.xlu1 %v5348_v14, %s5484_s19 }
0x288c   :  { %v5350_v25 = vpop.eup %5349 }
0x288d   :  { %v2355_v43 = vadd.f32 1.0, %v5350_v25 }
0x288f   :  { %5351 = vrcp.f32 %v2355_v43 }
0x2899   :  { %v5352_v13 = vpop.eup %5351 }
0x289a   :  { %v2359_v38 = vmul.f32 %v5352_v13, %v2268_v10 }
0x28fd   :  { %v2362_v51 = vpop.permute.xlu1 %2361 }
0x28fe   :  { %v2364_v33 = vmul.f32 %v5352_v13, %v2362_v51 }
0x2900   :  { %2366 = vrot.lane.b32.xlu0 %v2364_v33, %s5479_s27  ;;  %v1619_v33 = vadd.f32 %v6367_v46, %v6285_v47 }
0x2972   :  { %v2367_v55 = vpop.permute.xlu0 %2366 }
0x2973   :  { %v2369_v53 = vadd.f32 %v2367_v55, %v2359_v38  ;;  %v2389_v38 = vrot.slane %v1619_v33, 4 }
0x2975   :  { %5353 = vtanh.f32 %v2369_v53  ;;  %v2377_v47 = vsel %vm144_vm13, %v2369_v53, %v2268_v10 }
0x297f   :  { %v5354_v36 = vpop.eup %5353 }
0x2980   :  { %2372 = vrot.lane.b32.xlu1 %v5354_v36, %s5484_s19 }
0x29f2   :  { %v2373_v0 = vpop.permute.xlu1 %2372 }
0x29f3   :  { %v2375_v7 = vmul.f32 %v5352_v13, %v2373_v0 }
0x29f5   :  { %v2378_v42 = vsel %vm144_vm13, %v2375_v7, 0.0  ;;  %v2376_v58 = vsel %vm144_vm13, %v2375_v7, %v2267_v8 }
0x29f6   :  { %v2506_v23 = vrot.slane %v2378_v42, 6  ;;  %v2509_v24 = vrot.slane %v2378_v42, 2  ;;  %v6501_v30 = vsel %vm46_vm0, %v2378_v42, %v2586_v49  ;;  %v6504_v32 = vsel %vm46_vm0, %v2589_v18, %v2378_v42  ;;  %2383 = vrot.lane.b32.xlu1 %v2376_v58, %s5484_s19  ;;  %2380 = vrot.lane.b32.xlu0 %v2376_v58, %s5479_s27 }
0x29f7   :  { %v5215_v34 = vpack.i.bf16 %v6501_v30, %v6491_v22  ;;  %v5220_v17 = vpack.i.bf16 %v6504_v32, %v6494_v41  ;;  %v2269_v42 = vsel %vm131_vm8, %v6463_v54, 0.0  ;;  %v3832_v54 = vld [vmem:[%s7016_s3 + $0x80] sm:$0xff] }
0x29f8   :  { %v2508_v8 = vsel %vm46_vm0, %v1827_v16, %v2506_v23  ;;  %v2511_v56 = vsel %vm46_vm0, %v2509_v24, %v1827_v16  ;;  %v2525_v58 = vrot.slane %v2269_v42, 2  ;;  %v1936_v23 = vsel %vm92_vm10, %v6380_v26, 0.0  ;;  %v3833_v26 = vld [vmem:[%s7016_s3 + $0x88] sm:$0xff] }
0x29f9   :  { %v5175_v14 = vpack.i.bf16 %v2540_v61, %v2508_v8  ;;  %v5180_v20 = vpack.i.bf16 %v2543_v62, %v2511_v56  ;;  %v2522_v24 = vrot.slane %v2269_v42, 6  ;;  %v2601_v61 = vrot.slane %v6264_v21, 6 }
0x29fa   :  { %v2570_v56 = vrot.slane %v1936_v23, 6  ;;  %v2604_v62 = vrot.slane %v6264_v21, 2 }
0x29fb   :  { %v2524_v9 = vsel %vm46_vm0, %v1936_v23, %v2522_v24  ;;  %v2573_v24 = vrot.slane %v1936_v23, 2 }
0x2a68   :  { %v2384_v25 = vpop.permute.xlu1 %2383  ;;  %v2381_v43 = vpop.permute.xlu0 %2380 }
0x2a69   :  { %v2386_v13 = vsel %vm249_vm5, %v2381_v43, %v2384_v25  ;;  %v3834_v25 = vld [vmem:[%s7016_s3 + $0x90] sm:$0xff] }
0x2a6a   :  { %v2387_v51 = vsel %vm5805_vm15, %v2386_v13, 0.0 }
0x2a6b   :  { %4505 = vmatmul.mubr.msk.f32.vlgmr.msra.gmra.mrb[20].mxu0 %vm317_vm7, %v2387_v51 }
0x2a6c   :  { %4561 = vmatprep.mubr.msk.f32.mxu0 %vm5480_vm4, %v5481_v50 }
0x2b3e   :  { %v2460_v55 = vpop.f32.mrb[20].mxu0 }
0x2b3f   :  { %v2461_v36 = vadd.f32 %v2460_v55, %v2389_v38  ;;  %v4506_v48 = vpop.f32.mrb[21].mxu0  ;;  %v3835_v38 = vld [vmem:[%s7016_s3 + $0x98] sm:$0xff] }
0x2b41   :  { %5355 = vtanh.f32 %v2461_v36  ;;  %v3831_v28 = vmul.f32 -1.442695, %v2461_v36 }
0x2b43   :  { %5357 = vpow2.f32 %v3831_v28  ;;  %v3836_v28 = vld [vmem:[%s7016_s3 + $0xa0] sm:$0xff] }
0x2b4b   :  { %v5356_v16 = vpop.eup %5355 }
0x2b4c   :  { %2473 = vrot.lane.b32.xlu0 %v5356_v16, %s5484_s19  ;;  %v4956_v16 = vpack.c.bf16 %v3833_v26, %v3832_v54  ;;  %v6584_v54 = vsel %vm46_vm0, %v2269_v42, %v2570_v56  ;;  %v3839_v56 = vld [vmem:[%s7016_s3 + $0xb8] sm:$0xff] }
0x2b4d   :  { %v5358_v0 = vpop.eup %5357 }
0x2b4e   :  { %v2467_v59 = vadd.f32 1.0, %v5358_v0  ;;  %4957 = vmatprep.subr.bf16.mxu1 %v4956_v16 }
0x2b4f   :  { %4959 = vmatpush3.bf16.msra.mxu1 %v4956_v16  ;;  %v3845_v16 = vld [vmem:[%s7016_s3 + $0xe8] sm:$0xff] }
0x2b50   :  { %5359 = vrcp.f32 %v2467_v59 }
0x2b5a   :  { %v5360_v57 = vpop.eup %5359 }
0x2b5b   :  { %v2471_v46 = vmul.f32 %v5360_v57, %v2377_v47  ;;  %v2634_v47 = vld [vmem:[#allocation2 + $0x80] sm:$0xff] }
0x2bbe   :  { %v2474_v7 = vpop.permute.xlu0 %2473 }
0x2bbf   :  { %v2476_v49 = vmul.f32 %v5360_v57, %v2474_v7  ;;  %v4960_v7 = vpack.c.bf16 %v3835_v38, %v3834_v25  ;;  %v3842_v38 = vld [vmem:[%s7016_s3 + $0xd0] sm:$0xff] }
0x2bc1   :  { %2478 = vrot.lane.b32.xlu1 %v2476_v49, %s5479_s27  ;;  %v3837_v49 = vld [vmem:[%s7016_s3 + $0xa8] sm:$0xff]  ;;  %4961 = vmatprep.subr.bf16.mxu1 %v4960_v7 }
0x2bc2   :  { %4963 = vmatpush3.bf16.msra.mxu1 %v4960_v7  ;;  %v3846_v7 = vld [vmem:[%s7016_s3 + $0xf0] sm:$0xff] }
0x2bc5   :  { %5176 = vrot.lane.b32.xlu1 %v5175_v14, %s5479_s27 }
0x2c33   :  { %v2479_v18 = vpop.permute.xlu1 %2478 }
0x2c34   :  { %v2481_v27 = vadd.f32 %v2479_v18, %v2471_v46  ;;  %v2635_v46 = vld [vmem:[#allocation2 + $0x88] sm:$0xff] }
0x2c36   :  { %5361 = vtanh.f32 %v2481_v27 }
0x2c37   :  { %v5177_v53 = vpop.permute.xlu1 %5176 }
0x2c38   :  { %v5179_v43 = vunpack.i.h.bf16 %v5177_v53  ;;  %v5178_v55 = vunpack.i.l.bf16 %v5177_v53 }
0x2c40   :  { %v5362_v37 = vpop.eup %5361 }
0x2c41   :  { %2484 = vrot.lane.b32.xlu0 %v5362_v37, %s5484_s19 }
0x2c45   :  { %5181 = vrot.lane.b32.xlu0 %v5180_v20, %s5484_s19  ;;  %v2527_v20 = vsel %vm46_vm0, %v2525_v58, %v1936_v23  ;;  %v4964_v23 = vpack.c.bf16 %v3837_v49, %v3836_v28 }
0x2c47   :  { %4965 = vmatprep.subr.bf16.mxu1 %v4964_v23 }
0x2c48   :  { %4967 = vmatpush3.bf16.msra.mxu1 %v4964_v23 }
0x2cb3   :  { %v2485_v10 = vpop.permute.xlu0 %2484 }
0x2cb4   :  { %v2487_v8 = vmul.f32 %v5360_v57, %v2485_v10 }
0x2cb6   :  { %v2488_v14 = vsel %vm157_vm11, %v2487_v8, 0.0  ;;  %v2636_v8 = vld [vmem:[#allocation2 + $0x90] sm:$0xff] }
0x2cb7   :  { %v2490_v13 = vrot.slane %v2488_v14, 6  ;;  %v2493_v51 = vrot.slane %v2488_v14, 2  ;;  %v5182_v33 = vpop.permute.xlu0 %5181  ;;  %v6559_v0 = vsel %vm46_vm0, %v2488_v14, %v2601_v61  ;;  %v6575_v10 = vsel %vm46_vm0, %v2604_v62, %v2488_v14  ;;  %v2637_v61 = vld [vmem:[#allocation2 + $0x98] sm:$0xff] }
0x2cb8   :  { %v5184_v36 = vunpack.i.h.bf16 %v5182_v33  ;;  %v5183_v48 = vunpack.i.l.bf16 %v5182_v33  ;;  %v6588_v62 = vpack.c.bf16 %v2635_v46, %v2634_v47  ;;  %v6591_v14 = vsel %vm46_vm0, %v2573_v24, %v2269_v42  ;;  %v3841_v33 = vld [vmem:[%s7016_s3 + $0xc8] sm:$0xff]  ;;  %v3847_v47 = vld [vmem:[%s7016_s3 + $0xf8] sm:$0xff] }
0x2cb9   :  { %v2495_v59 = vsel %vm46_vm0, %v2493_v51, %v6264_v21  ;;  %v2492_v57 = vsel %vm46_vm0, %v6264_v21, %v2490_v13  ;;  %v5205_v26 = vpack.i.bf16 %v6559_v0, %v6584_v54  ;;  %v5210_v42 = vpack.i.bf16 %v6575_v10, %v6591_v14  ;;  %v3840_v51 = vld [vmem:[%s7016_s3 + $0xc0] sm:$0xff] }
0x2cba   :  { %v6569_v18 = vsel %vm249_vm5, %v5179_v43, %v5184_v36  ;;  %v6572_v27 = vsel %vm249_vm5, %v5178_v55, %v5183_v48  ;;  %v5190_v37 = vpack.i.bf16 %v2527_v20, %v2495_v59  ;;  %v5185_v58 = vpack.i.bf16 %v2524_v9, %v2492_v57  ;;  %v3838_v20 = vld [vmem:[%s7016_s3 + $0xb0] sm:$0xff]  ;;  %4990 = vmatpush3.bf16.msra.mxu0 %v6588_v62  ;;  %v3843_v55 = vld [vmem:[%s7016_s3 + $0xd8] sm:$0xff]  ;;  %v3844_v48 = vld [vmem:[%s7016_s3 + $0xe0] sm:$0xff] }
0x2cbb   :  { %v2666_v21 = vsel %vm50_vm1, 0.0, %v6569_v18  ;;  %v2652_v53 = vsel %vm50_vm1, 0.0, %v6572_v27  ;;  %v6602_v43 = vpack.c.bf16 %v2637_v61, %v2636_v8  ;;  %4991 = vmatprep.subr.bf16.mxu0 %v5478_v1  ;;  %v4968_v13 = vpack.c.bf16 %v3839_v56, %v3838_v20  ;;  %v2638_v59 = vld [vmem:[#allocation2 + $0xa0] sm:$0xff]  ;;  %v2639_v57 = vld [vmem:[#allocation2 + $0xa8] sm:$0xff] }
0x2cbc   :  { %5191 = vrot.lane.b32.xlu0 %v5190_v37, %s5484_s19  ;;  %5186 = vrot.lane.b32.xlu1 %v5185_v58, %s5479_s27  ;;  %v5195_v25 = vpack.i.bf16 %v2666_v21, %v2652_v53  ;;  %v4972_v9 = vpack.c.bf16 %v3841_v33, %v3840_v51  ;;  %v4976_v36 = vpack.c.bf16 %v3843_v55, %v3842_v38  ;;  %v2640_v37 = vld [vmem:[#allocation2 + $0xb0] sm:$0xff]  ;;  %v2641_v58 = vld [vmem:[#allocation2 + $0xb8] sm:$0xff] }
0x2cbd   :  { %4969 = vmatprep.subr.bf16.mxu1 %v4968_v13  ;;  %v4980_v28 = vpack.c.bf16 %v3845_v16, %v3844_v48  ;;  %v6631_v49 = vpack.c.bf16 %v2639_v57, %v2638_v59  ;;  %v4984_v46 = vpack.c.bf16 %v3847_v47, %v3846_v7  ;;  %v6638_v24 = vpack.c.bf16 %v2641_v58, %v2640_v37 }
0x2cbe   :  { %4993 = vmatpush3.bf16.msra.mxu0 %v6602_v43  ;;  %4971 = vmatpush3.bf16.msra.mxu1 %v4968_v13  ;;  %v2651_v48 = vsel %vm50_vm1, %v6572_v27, 0.0 }
0x2cbf   :  { %4994 = vmatprep.subr.bf16.mxu0 %v5478_v1  ;;  %4973 = vmatprep.subr.bf16.mxu1 %v4972_v9 }
0x2cc0   :  { %5196 = vrot.lane.b32.xlu1 %v5195_v25, %s5484_s19 }
0x2cc2   :  { %4975 = vmatpush3.bf16.msra.mxu1 %v4972_v9  ;;  %4996 = vmatpush3.bf16.msra.mxu0 %v6631_v49 }
0x2cc3   :  { %4977 = vmatprep.subr.bf16.mxu1 %v4976_v36  ;;  %4997 = vmatprep.subr.bf16.mxu0 %v5478_v1 }
0x2cc6   :  { %4979 = vmatpush3.bf16.msra.mxu1 %v4976_v36  ;;  %4999 = vmatpush3.bf16.msra.mxu0 %v6638_v24  ;;  %v2665_v36 = vsel %vm50_vm1, %v6569_v18, 0.0 }
0x2cc7   :  { %4981 = vmatprep.subr.bf16.mxu1 %v4980_v28  ;;  %5000 = vmatprep.subr.bf16.mxu0 %v5478_v1 }
0x2cc9   :  { %4562 = vmatmul.mubr.f32.vlgmr.msra.gmra.mrb[22].mxu0 %v5481_v50 }
0x2cca   :  { %4983 = vmatpush3.bf16.msra.mxu1 %v4980_v28  ;;  %5002 = vmatpush3.bf16.msra.mxu0 %v6588_v62 }
0x2ccb   :  { %4985 = vmatprep.subr.bf16.mxu1 %v4984_v46  ;;  %4580 = vmatprep.mubr.msk.f32.mxu0 %vm5480_vm4, %v5481_v50 }
0x2ccc   :  { %5003 = vmatprep.subr.bf16.mxu0 %v5478_v1 }
0x2cce   :  { %4987 = vmatpush3.bf16.msra.mxu1 %v4984_v46  ;;  %5005 = vmatpush3.bf16.msra.mxu0 %v6602_v43 }
0x2ccf   :  { %5012 = vmatprep.subr.bf16.mxu1 %v5478_v1  ;;  %5006 = vmatprep.subr.bf16.mxu0 %v5478_v1 }
0x2cd2   :  { %5008 = vmatpush3.bf16.msra.mxu0 %v6631_v49 }
0x2cd3   :  { %5009 = vmatprep.subr.bf16.mxu0 %v5478_v1 }
0x2cd6   :  { %5011 = vmatpush3.bf16.msra.mxu0 %v6638_v24 }
0x2cd7   :  { %5024 = vmatprep.subr.bf16.mxu0 %v5478_v1 }
0x2d2e   :  { %v5187_v21 = vpop.permute.xlu1 %5186  ;;  %v5192_v53 = vpop.permute.xlu0 %5191 }
0x2d2f   :  { %v5189_v8 = vunpack.i.h.bf16 %v5187_v21  ;;  %v5188_v61 = vunpack.i.l.bf16 %v5187_v21  ;;  %v5194_v23 = vunpack.i.h.bf16 %v5192_v53  ;;  %v5193_v20 = vunpack.i.l.bf16 %v5192_v53 }
0x2d31   :  { %v2536_v56 = vsel %vm249_vm5, %v5189_v8, %v5194_v23  ;;  %v2504_v25 = vsel %vm249_vm5, %v5188_v61, %v5193_v20  ;;  %v6690_v20 = vld [vmem:[%s7018_s5 + $0x8] sm:$0xf] }
0x2d32   :  { %v2659_v13 = vsel %vm50_vm1, 0.0, %v2536_v56  ;;  %v2645_v51 = vsel %vm50_vm1, 0.0, %v2504_v25  ;;  %v5197_v9 = vpop.permute.xlu1 %5196  ;;  %v2658_v47 = vsel %vm50_vm1, %v2536_v56, 0.0  ;;  %v2644_v37 = vsel %vm50_vm1, %v2504_v25, 0.0 }
0x2d33   :  { %v5200_v33 = vpack.i.bf16 %v2659_v13, %v2645_v51  ;;  %v5199_v38 = vunpack.i.h.bf16 %v5197_v9  ;;  %v5198_v55 = vunpack.i.l.bf16 %v5197_v9 }
0x2d35   :  { %5201 = vrot.lane.b32.xlu0 %v5200_v33, %s5484_s19  ;;  %v2671_v16 = vsel %vm317_vm7, %v2665_v36, %v5199_v38  ;;  %v2657_v28 = vsel %vm317_vm7, %v2651_v48, %v5198_v55 }
0x2d36   :  { %v2704_v46 = vrot.slane %v2671_v16, 4  ;;  %v2701_v58 = vrot.slane %v2657_v28, 4 }
0x2d9c   :  { %v2878_v8 = vpop.f32.mrb[22].mxu0 }
0x2d9d   :  { %v4563_v61 = vpop.f32.mrb[23].mxu0 }
0x2da7   :  { %v5202_v59 = vpop.permute.xlu0 %5201 }
0x2da8   :  { %v5204_v57 = vunpack.i.h.bf16 %v5202_v59  ;;  %v5203_v7 = vunpack.i.l.bf16 %v5202_v59 }
0x2daa   :  { %v2650_v18 = vsel %vm317_vm7, %v2644_v37, %v5203_v7  ;;  %v2664_v21 = vsel %vm317_vm7, %v2658_v47, %v5204_v57 }
0x2dab   :  { %v2712_v27 = vsel %vm312_vm6, %v2650_v18, %v2701_v58  ;;  %v2713_v53 = vsel %vm312_vm6, %v2664_v21, %v2704_v46 }
0x2dac   :  { %4539 = vmatprep.mubr.f32.mxu1 %v2712_v27  ;;  %v6722_v27 = vrot.slane %v6690_v20, 4 }
0x2dad   :  { %4540 = vmatmul.mubr.f32.vlgmr.msra.gmra.mrb[18].mxu1 %v2713_v53 }
0x2dae   :  { %5014 = vmatpush3.bf16.msra.mxu1 %v6588_v62 }
0x2daf   :  { %5015 = vmatprep.subr.bf16.mxu1 %v5478_v1 }
0x2db2   :  { %5017 = vmatpush3.bf16.msra.mxu1 %v6602_v43 }
0x2db3   :  { %5018 = vmatprep.subr.bf16.mxu1 %v5478_v1 }
0x2db6   :  { %5020 = vmatpush3.bf16.msra.mxu1 %v6631_v49 }
0x2db7   :  { %5021 = vmatprep.subr.bf16.mxu1 %v5478_v1 }
0x2dba   :  { %5023 = vmatpush3.bf16.msra.mxu1 %v6638_v24 }
0x2dbb   :  { %5036 = vmatprep.subr.bf16.mxu1 %v5478_v1 }
0x2e80   :  { %v6685_v23 = vpop.f32.mrb[18].mxu1 }
0x2e81   :  { %v2782_v56 = vpop.f32.mrb[19].mxu1 }
0x2e82   :  { %v2801_v25 = vadd.f32 %v6690_v20, %v2782_v56  ;;  %v2805_v53 = vadd.f32 %v6722_v27, %v2782_v56 }
0x2e84   :  { %v2879_v13 = vadd.f32 %v2878_v8, %v2801_v25  ;;  %v2919_v8 = vrot.slane %v2805_v53, 4 }
0x2e86   :  { %5363 = vtanh.f32 %v2879_v13  ;;  %v3849_v33 = vmul.f32 -1.442695, %v2879_v13 }
0x2e88   :  { %5365 = vpow2.f32 %v3849_v33 }
0x2e90   :  { %v5364_v51 = vpop.eup %5363 }
0x2e91   :  { %2891 = vrot.lane.b32.xlu1 %v5364_v51, %s5484_s19 }
0x2e92   :  { %v5366_v9 = vpop.eup %5365 }
0x2e93   :  { %v2885_v38 = vadd.f32 1.0, %v5366_v9 }
0x2e95   :  { %5367 = vrcp.f32 %v2885_v38 }
0x2e9f   :  { %v5368_v55 = vpop.eup %5367 }
0x2ea0   :  { %v2889_v16 = vmul.f32 0.0, %v5368_v55 }
0x2f03   :  { %v2892_v36 = vpop.permute.xlu1 %2891 }
0x2f04   :  { %v2894_v48 = vmul.f32 %v5368_v55, %v2892_v36 }
0x2f06   :  { %2896 = vrot.lane.b32.xlu0 %v2894_v48, %s5479_s27 }
0x2f78   :  { %v2897_v28 = vpop.permute.xlu0 %2896 }
0x2f79   :  { %v2899_v59 = vadd.f32 %v2897_v28, %v2889_v16 }
0x2f7b   :  { %5369 = vtanh.f32 %v2899_v59  ;;  %v6745_v22 = vsel %vm65_vm9, %v2899_v59, 0.0 }
0x2f85   :  { %v5370_v57 = vpop.eup %5369 }
0x2f86   :  { %2902 = vrot.lane.b32.xlu1 %v5370_v57, %s5484_s19 }
0x2ff8   :  { %v2903_v7 = vpop.permute.xlu1 %2902 }
0x2ff9   :  { %v6696_v47 = vmul.f32 %v5368_v55, %v2903_v7 }
0x2ffb   :  { %v6701_v46 = vsel %vm65_vm9, %v6696_v47, 0.0 }
0x2ffc   :  { %2913 = vrot.lane.b32.xlu1 %v6701_v46, %s5484_s19  ;;  %2910 = vrot.lane.b32.xlu0 %v6701_v46, %s5479_s27 }
0x306e   :  { %v2914_v37 = vpop.permute.xlu1 %2913  ;;  %v2911_v58 = vpop.permute.xlu0 %2910 }
0x306f   :  { %v2916_v18 = vsel %vm249_vm5, %v2911_v58, %v2914_v37 }
0x3070   :  { %v2917_v21 = vsel %vm5805_vm15, %v2916_v18, 0.0 }
0x3071   :  { %4581 = vmatmul.mubr.msk.f32.vlgmr.msra.gmra.mrb[24].mxu0 %vm317_vm7, %v2917_v21 }
0x3072   :  { %5026 = vmatpush3.bf16.msra.mxu0 %v6588_v62  ;;  %4618 = vmatprep.mubr.msk.f32.mxu0 %vm5480_vm4, %v5481_v50 }
0x3073   :  { %5027 = vmatprep.subr.bf16.mxu0 %v5478_v1 }
0x3076   :  { %5029 = vmatpush3.bf16.msra.mxu0 %v6602_v43 }
0x3077   :  { %5030 = vmatprep.subr.bf16.mxu0 %v5478_v1 }
0x307a   :  { %5032 = vmatpush3.bf16.msra.mxu0 %v6631_v49 }
0x307b   :  { %5033 = vmatprep.subr.bf16.mxu0 %v5478_v1 }
0x307e   :  { %5035 = vmatpush3.bf16.msra.mxu0 %v6638_v24 }
0x307f   :  { %5048 = vmatprep.subr.bf16.mxu0 %v5478_v1 }
0x3144   :  { %v2990_v61 = vpop.f32.mrb[24].mxu0 }
0x3145   :  { %v2991_v25 = vadd.f32 %v2990_v61, %v2919_v8  ;;  %v4582_v13 = vpop.f32.mrb[25].mxu0 }
0x3147   :  { %5371 = vtanh.f32 %v2991_v25  ;;  %v3851_v33 = vmul.f32 -1.442695, %v2991_v25 }
0x3149   :  { %5373 = vpow2.f32 %v3851_v33 }
0x3151   :  { %v5372_v51 = vpop.eup %5371 }
0x3152   :  { %3003 = vrot.lane.b32.xlu0 %v5372_v51, %s5484_s19 }
0x3153   :  { %v5374_v56 = vpop.eup %5373 }
0x3154   :  { %v2997_v9 = vadd.f32 1.0, %v5374_v56 }
0x3156   :  { %5206 = vrot.lane.b32.xlu0 %v5205_v26, %s5479_s27  ;;  %5375 = vrcp.f32 %v2997_v9 }
0x315a   :  { %5216 = vrot.lane.b32.xlu0 %v5215_v34, %s5479_s27 }
0x3160   :  { %v5376_v38 = vpop.eup %5375 }
0x3161   :  { %v3001_v34 = vmul.f32 %v5376_v38, %v6745_v22 }
0x31c4   :  { %v3004_v55 = vpop.permute.xlu0 %3003 }
0x31c5   :  { %v3006_v36 = vmul.f32 %v5376_v38, %v3004_v55 }
0x31c7   :  { %3008 = vrot.lane.b32.xlu1 %v3006_v36, %s5479_s27 }
0x31c8   :  { %v5207_v30 = vpop.permute.xlu0 %5206 }
0x31c9   :  { %v5209_v10 = vunpack.i.h.bf16 %v5207_v30  ;;  %v5208_v14 = vunpack.i.l.bf16 %v5207_v30 }
0x31cb   :  { %5211 = vrot.lane.b32.xlu1 %v5210_v42, %s5484_s19 }
0x31cc   :  { %v5217_v42 = vpop.permute.xlu0 %5216 }
0x31cd   :  { %v5219_v32 = vunpack.i.h.bf16 %v5217_v42  ;;  %v5218_v57 = vunpack.i.l.bf16 %v5217_v42 }
0x31cf   :  { %5221 = vrot.lane.b32.xlu1 %v5220_v17, %s5484_s19 }
0x3239   :  { %v3009_v0 = vpop.permute.xlu1 %3008 }
0x323a   :  { %v6748_v54 = vadd.f32 %v3009_v0, %v3001_v34 }
0x323c   :  { %5377 = vtanh.f32 %v6748_v54 }
0x323d   :  { %v5212_v26 = vpop.permute.xlu1 %5211 }
0x323e   :  { %v5214_v48 = vunpack.i.h.bf16 %v5212_v26  ;;  %v5213_v16 = vunpack.i.l.bf16 %v5212_v26 }
0x3240   :  { %v2615_v41 = vsel %vm249_vm5, %v5209_v10, %v5214_v48  ;;  %v2584_v60 = vsel %vm249_vm5, %v5208_v14, %v5213_v16 }
0x3241   :  { %v2694_v17 = vsel %vm50_vm1, 0.0, %v2615_v41  ;;  %v2680_v28 = vsel %vm50_vm1, 0.0, %v2584_v60  ;;  %v5222_v59 = vpop.permute.xlu1 %5221  ;;  %v2693_v55 = vsel %vm50_vm1, %v2615_v41, 0.0  ;;  %v2679_v36 = vsel %vm50_vm1, %v2584_v60, 0.0 }
0x3242   :  { %v5224_v7 = vunpack.i.h.bf16 %v5222_v59  ;;  %v5223_v37 = vunpack.i.l.bf16 %v5222_v59  ;;  %v5225_v58 = vpack.i.bf16 %v2694_v17, %v2680_v28 }
0x3244   :  { %v2600_v18 = vsel %vm249_vm5, %v5219_v32, %v5224_v7  ;;  %v2568_v21 = vsel %vm249_vm5, %v5218_v57, %v5223_v37  ;;  %5226 = vrot.lane.b32.xlu1 %v5225_v58, %s5484_s19  ;;  %v2806_v37 = vadd.f32 %v6685_v23, %v6690_v20 }
0x3245   :  { %v2687_v8 = vsel %vm50_vm1, 0.0, %v2600_v18  ;;  %v2673_v61 = vsel %vm50_vm1, 0.0, %v2568_v21  ;;  %v2672_v14 = vsel %vm50_vm1, %v2568_v21, 0.0  ;;  %v2686_v48 = vsel %vm50_vm1, %v2600_v18, 0.0 }
0x3246   :  { %v5378_v53 = vpop.eup %5377  ;;  %v5230_v25 = vpack.i.bf16 %v2687_v8, %v2673_v61 }
0x3247   :  { %3014 = vrot.lane.b32.xlu0 %v5378_v53, %s5484_s19 }
0x324b   :  { %5231 = vrot.lane.b32.xlu0 %v5230_v25, %s5484_s19 }
0x32b6   :  { %v5227_v13 = vpop.permute.xlu1 %5226 }
0x32b7   :  { %v5229_v51 = vunpack.i.h.bf16 %v5227_v13  ;;  %v5228_v33 = vunpack.i.l.bf16 %v5227_v13 }
0x32b9   :  { %v3015_v56 = vpop.permute.xlu0 %3014  ;;  %v2699_v30 = vsel %vm317_vm7, %v2693_v55, %v5229_v51  ;;  %v2685_v34 = vsel %vm317_vm7, %v2679_v36, %v5228_v33 }
0x32ba   :  { %v6766_v9 = vmul.f32 %v5376_v38, %v3015_v56  ;;  %v2707_v42 = vrot.slane %v2685_v34, 4  ;;  %v2710_v16 = vrot.slane %v2699_v30, 4  ;;  %v3019_v56 = vsel %vm79_vm3, %v6748_v54, %v6745_v22 }
0x32bc   :  { %v3018_v0 = vsel %vm79_vm3, %v6766_v9, %v6701_v46 }
0x32bd   :  { %3025 = vrot.lane.b32.xlu0 %v3018_v0, %s5484_s19  ;;  %3022 = vrot.lane.b32.xlu1 %v3018_v0, %s5479_s27  ;;  %v5232_v38 = vpop.permute.xlu0 %5231 }
0x32be   :  { %v5234_v26 = vunpack.i.h.bf16 %v5232_v38  ;;  %v5233_v10 = vunpack.i.l.bf16 %v5232_v38 }
0x32c0   :  { %v2678_v41 = vsel %vm317_vm7, %v2672_v14, %v5233_v10  ;;  %v2692_v60 = vsel %vm317_vm7, %v2686_v48, %v5234_v26 }
0x32c1   :  { %v2714_v46 = vsel %vm312_vm6, %v2678_v41, %v2707_v42  ;;  %v2715_v32 = vsel %vm312_vm6, %v2692_v60, %v2710_v16 }
0x32c2   :  { %4542 = vmatprep.mubr.f32.mxu1 %v2714_v46 }
0x32c3   :  { %4543 = vmatmul.mubr.f32.gmra.mrb[20].mxu1 %v2715_v32 }
0x32c4   :  { %4599 = vmatprep.mubr.msk.f32.mxu1 %vm5480_vm4, %v5481_v50 }
0x332f   :  { %v3023_v17 = vpop.permute.xlu1 %3022  ;;  %v3026_v28 = vpop.permute.xlu0 %3025 }
0x3330   :  { %v3028_v59 = vsel %vm249_vm5, %v3023_v17, %v3026_v28 }
0x3331   :  { %v3029_v2 = vsel %vm5805_vm15, %v3028_v59, 0.0 }
0x3332   :  { %4600 = vmatmul.mubr.msk.f32.vlgmr.msra.gmra.mrb[22].mxu1 %vm317_vm7, %v3029_v2 }
0x3333   :  { %5038 = vmatpush3.bf16.msra.mxu1 %v6588_v62  ;;  %4637 = vmatprep.mubr.msk.f32.mxu1 %vm5480_vm4, %v5481_v50 }
0x3334   :  { %5039 = vmatprep.subr.bf16.mxu1 %v5478_v1 }
0x3337   :  { %5041 = vmatpush3.bf16.msra.mxu1 %v6602_v43 }
0x3338   :  { %5042 = vmatprep.subr.bf16.mxu1 %v5478_v1 }
0x333b   :  { %5044 = vmatpush3.bf16.msra.mxu1 %v6631_v49 }
0x333c   :  { %5045 = vmatprep.subr.bf16.mxu1 %v5478_v1 }
0x333f   :  { %5047 = vmatpush3.bf16.msra.mxu1 %v6638_v24 }
0x3340   :  { %5060 = vmatprep.subr.bf16.mxu1 %v5478_v1 }
0x3396   :  { %v6804_v57 = vpop.f32.mrb[20].mxu1 }
0x3397   :  { %v6806_v7 = vpop.f32.mrb[21].mxu1 }
0x3405   :  { %v3099_v58 = vpop.f32.mrb[22].mxu1 }
0x3406   :  { %v3100_v18 = vadd.f32 %v3099_v58, %v2806_v37  ;;  %v4601_v21 = vpop.f32.mrb[23].mxu1 }
0x3408   :  { %5379 = vtanh.f32 %v3100_v18  ;;  %v3853_v8 = vmul.f32 -1.442695, %v3100_v18 }
0x340a   :  { %5381 = vpow2.f32 %v3853_v8 }
0x3412   :  { %v5380_v53 = vpop.eup %5379 }
0x3413   :  { %3112 = vrot.lane.b32.xlu1 %v5380_v53, %s5484_s19 }
0x3414   :  { %v5382_v61 = vpop.eup %5381 }
0x3415   :  { %v3106_v25 = vadd.f32 1.0, %v5382_v61 }
0x3417   :  { %5383 = vrcp.f32 %v3106_v25 }
0x3421   :  { %v5384_v13 = vpop.eup %5383 }
0x3422   :  { %v3110_v55 = vmul.f32 %v5384_v13, %v3019_v56 }
0x3485   :  { %v3113_v51 = vpop.permute.xlu1 %3112 }
0x3486   :  { %v3115_v33 = vmul.f32 %v5384_v13, %v3113_v51 }
0x3488   :  { %3117 = vrot.lane.b32.xlu0 %v3115_v33, %s5479_s27  ;;  %v2808_v33 = vadd.f32 %v6690_v20, %v6806_v7 }
0x34fa   :  { %v3118_v36 = vpop.permute.xlu0 %3117 }
0x34fb   :  { %v3120_v30 = vadd.f32 %v3118_v36, %v3110_v55 }
0x34fd   :  { %5385 = vtanh.f32 %v3120_v30 }
0x3507   :  { %v5386_v34 = vpop.eup %5385 }
0x3508   :  { %3123 = vrot.lane.b32.xlu1 %v5386_v34, %s5484_s19 }
0x357a   :  { %v3124_v38 = vpop.permute.xlu1 %3123 }
0x357b   :  { %v6817_v26 = vmul.f32 %v5384_v13, %v3124_v38 }
0x357d   :  { %v3127_v10 = vsel %vm92_vm10, %v6817_v26, %v3018_v0  ;;  %v2807_v0 = vadd.f32 %v6685_v23, %v6722_v27  ;;  %v3128_v23 = vsel %vm92_vm10, %v3120_v30, %v3019_v56 }
0x357e   :  { %3134 = vrot.lane.b32.xlu1 %v3127_v10, %s5484_s19  ;;  %3131 = vrot.lane.b32.xlu0 %v3127_v10, %s5479_s27 }
0x357f   :  { %v3140_v42 = vrot.slane %v2807_v0, 4 }
0x35f0   :  { %v3135_v15 = vpop.permute.xlu1 %3134  ;;  %v3132_v22 = vpop.permute.xlu0 %3131 }
0x35f1   :  { %v3137_v54 = vsel %vm249_vm5, %v3132_v22, %v3135_v15 }
0x35f2   :  { %v3138_v14 = vsel %vm5805_vm15, %v3137_v54, 0.0 }
0x35f3   :  { %4619 = vmatmul.mubr.msk.f32.vlgmr.msra.gmra.mrb[26].mxu0 %vm317_vm7, %v3138_v14 }
0x35f4   :  { %5050 = vmatpush3.bf16.msra.mxu0 %v6588_v62  ;;  %4656 = vmatprep.mubr.msk.f32.mxu0 %vm5480_vm4, %v5481_v50 }
0x35f5   :  { %5051 = vmatprep.subr.bf16.mxu0 %v5478_v1 }
0x35f8   :  { %5053 = vmatpush3.bf16.msra.mxu0 %v6602_v43 }
0x35f9   :  { %5054 = vmatprep.subr.bf16.mxu0 %v5478_v1 }
0x35fc   :  { %5056 = vmatpush3.bf16.msra.mxu0 %v6631_v49 }
0x35fd   :  { %5057 = vmatprep.subr.bf16.mxu0 %v5478_v1 }
0x3600   :  { %5059 = vmatpush3.bf16.msra.mxu0 %v6638_v24 }
0x3601   :  { %5072 = vmatprep.subr.bf16.mxu0 %v5478_v1 }
0x36c6   :  { %v3211_v48 = vpop.f32.mrb[26].mxu0 }
0x36c7   :  { %v3212_v16 = vadd.f32 %v3211_v48, %v3140_v42  ;;  %v4620_v41 = vpop.f32.mrb[27].mxu0 }
0x36c9   :  { %5387 = vtanh.f32 %v3212_v16  ;;  %v3855_v46 = vmul.f32 -1.442695, %v3212_v16 }
0x36cb   :  { %5389 = vpow2.f32 %v3855_v46 }
0x36d3   :  { %v5388_v60 = vpop.eup %5387 }
0x36d4   :  { %3224 = vrot.lane.b32.xlu0 %v5388_v60, %s5484_s19 }
0x36d5   :  { %v5390_v32 = vpop.eup %5389 }
0x36d6   :  { %v3218_v17 = vadd.f32 1.0, %v5390_v32 }
0x36d8   :  { %5391 = vrcp.f32 %v3218_v17 }
0x36e2   :  { %v5392_v28 = vpop.eup %5391 }
0x36e3   :  { %v3222_v37 = vmul.f32 %v5392_v28, %v3128_v23 }
0x3746   :  { %v3225_v59 = vpop.permute.xlu0 %3224 }
0x3747   :  { %v3227_v2 = vmul.f32 %v5392_v28, %v3225_v59  ;;  %v2809_v59 = vadd.f32 %v6722_v27, %v6806_v7 }
0x3749   :  { %3229 = vrot.lane.b32.xlu1 %v3227_v2, %s5479_s27  ;;  %v3361_v2 = vrot.slane %v2809_v59, 4 }
0x37bb   :  { %v3230_v58 = vpop.permute.xlu1 %3229 }
0x37bc   :  { %v3232_v18 = vadd.f32 %v3230_v58, %v3222_v37 }
0x37be   :  { %5393 = vtanh.f32 %v3232_v18  ;;  %v3240_v14 = vsel %vm105_vm12, %v3232_v18, %v3128_v23 }
0x37c8   :  { %v5394_v21 = vpop.eup %5393 }
0x37c9   :  { %3235 = vrot.lane.b32.xlu0 %v5394_v21, %s5484_s19 }
0x383b   :  { %v3236_v53 = vpop.permute.xlu0 %3235 }
0x383c   :  { %v6845_v8 = vmul.f32 %v5392_v28, %v3236_v53 }
0x383e   :  { %v3239_v61 = vsel %vm105_vm12, %v6845_v8, %v3127_v10 }
0x383f   :  { %3246 = vrot.lane.b32.xlu0 %v3239_v61, %s5484_s19  ;;  %3243 = vrot.lane.b32.xlu1 %v3239_v61, %s5479_s27 }
0x38b1   :  { %v3247_v45 = vpop.permute.xlu0 %3246  ;;  %v3244_v25 = vpop.permute.xlu1 %3243 }
0x38b2   :  { %v3249_v13 = vsel %vm249_vm5, %v3244_v25, %v3247_v45 }
0x38b3   :  { %v3250_v51 = vsel %vm5805_vm15, %v3249_v13, 0.0 }
0x38b4   :  { %4638 = vmatmul.mubr.msk.f32.vlgmr.msra.gmra.mrb[24].mxu1 %vm317_vm7, %v3250_v51 }
0x38b5   :  { %5062 = vmatpush3.bf16.msra.mxu1 %v6588_v62  ;;  %4675 = vmatprep.mubr.msk.f32.mxu1 %vm5480_vm4, %v5481_v50 }
0x38b6   :  { %5063 = vmatprep.subr.bf16.mxu1 %v5478_v1 }
0x38b9   :  { %5065 = vmatpush3.bf16.msra.mxu1 %v6602_v43 }
0x38ba   :  { %5066 = vmatprep.subr.bf16.mxu1 %v5478_v1 }
0x38bd   :  { %5068 = vmatpush3.bf16.msra.mxu1 %v6631_v49 }
0x38be   :  { %5069 = vmatprep.subr.bf16.mxu1 %v5478_v1 }
0x38c1   :  { %5071 = vmatpush3.bf16.msra.mxu1 %v6638_v24 }
0x38c2   :  { %5084 = vmatprep.subr.bf16.mxu1 %v5478_v1 }
0x3987   :  { %v3320_v56 = vpop.f32.mrb[24].mxu1 }
0x3988   :  { %v3321_v55 = vadd.f32 %v3320_v56, %v2808_v33  ;;  %v4639_v36 = vpop.f32.mrb[25].mxu1 }
0x398a   :  { %5395 = vtanh.f32 %v3321_v55  ;;  %v3857_v34 = vmul.f32 -1.442695, %v3321_v55 }
0x398c   :  { %5397 = vpow2.f32 %v3857_v34  ;;  %v2810_v34 = vadd.f32 %v6804_v57, %v6690_v20 }
0x3994   :  { %v5396_v30 = vpop.eup %5395 }
0x3995   :  { %3333 = vrot.lane.b32.xlu1 %v5396_v30, %s5484_s19 }
0x3996   :  { %v5398_v38 = vpop.eup %5397 }
0x3997   :  { %v3327_v10 = vadd.f32 1.0, %v5398_v38 }
0x3999   :  { %5399 = vrcp.f32 %v3327_v10 }
0x39a3   :  { %v5400_v15 = vpop.eup %5399 }
0x39a4   :  { %v3331_v0 = vmul.f32 %v5400_v15, %v3240_v14 }
0x3a07   :  { %v3334_v22 = vpop.permute.xlu1 %3333 }
0x3a08   :  { %v3336_v54 = vmul.f32 %v5400_v15, %v3334_v22 }
0x3a0a   :  { %3338 = vrot.lane.b32.xlu0 %v3336_v54, %s5479_s27 }
0x3a7c   :  { %v3339_v42 = vpop.permute.xlu0 %3338 }
0x3a7d   :  { %v3341_v48 = vadd.f32 %v3339_v42, %v3331_v0 }
0x3a7f   :  { %5401 = vtanh.f32 %v3341_v48 }
0x3a89   :  { %v5402_v16 = vpop.eup %5401 }
0x3a8a   :  { %3344 = vrot.lane.b32.xlu1 %v5402_v16, %s5484_s19 }
0x3afc   :  { %v3345_v41 = vpop.permute.xlu1 %3344 }
0x3afd   :  { %v6873_v60 = vmul.f32 %v5400_v15, %v3345_v41 }
0x3aff   :  { %v3348_v46 = vsel %vm118_vm14, %v6873_v60, %v3239_v61 }
0x3b00   :  { %3355 = vrot.lane.b32.xlu1 %v3348_v46, %s5484_s19  ;;  %3352 = vrot.lane.b32.xlu0 %v3348_v46, %s5479_s27 }
0x3b72   :  { %v3356_v4 = vpop.permute.xlu1 %3355  ;;  %v3353_v32 = vpop.permute.xlu0 %3352 }
0x3b73   :  { %v3358_v17 = vsel %vm249_vm5, %v3353_v32, %v3356_v4 }
0x3b74   :  { %v3359_v28 = vsel %vm5805_vm15, %v3358_v17, 0.0 }
0x3b75   :  { %4657 = vmatmul.mubr.msk.f32.vlgmr.msra.gmra.mrb[28].mxu0 %vm317_vm7, %v3359_v28 }
0x3b76   :  { %5074 = vmatpush3.bf16.msra.mxu0 %v6588_v62  ;;  %4694 = vmatprep.mubr.msk.f32.mxu0 %vm5480_vm4, %v5481_v50 }
0x3b77   :  { %5075 = vmatprep.subr.bf16.mxu0 %v5478_v1 }
0x3b7a   :  { %5077 = vmatpush3.bf16.msra.mxu0 %v6602_v43 }
0x3b7b   :  { %5078 = vmatprep.subr.bf16.mxu0 %v5478_v1 }
0x3b7e   :  { %5080 = vmatpush3.bf16.msra.mxu0 %v6631_v49 }
0x3b7f   :  { %5081 = vmatprep.subr.bf16.mxu0 %v5478_v1 }
0x3b82   :  { %5083 = vmatpush3.bf16.msra.mxu0 %v6638_v24  ;;  %v3349_v24 = vsel %vm118_vm14, %v3341_v48, %v3240_v14 }
0x3c48   :  { %v3432_v62 = vpop.f32.mrb[28].mxu0 }
0x3c49   :  { %v3433_v23 = vadd.f32 %v3432_v62, %v3361_v2  ;;  %v4658_v37 = vpop.f32.mrb[29].mxu0 }
0x3c4b   :  { %5403 = vtanh.f32 %v3433_v23  ;;  %v3859_v43 = vmul.f32 -1.442695, %v3433_v23  ;;  %v2811_v23 = vadd.f32 %v6804_v57, %v6722_v27 }
0x3c4d   :  { %5405 = vpow2.f32 %v3859_v43  ;;  %v3582_v37 = vrot.slane %v2811_v23, 4 }
0x3c55   :  { %v5404_v58 = vpop.eup %5403 }
0x3c56   :  { %3445 = vrot.lane.b32.xlu0 %v5404_v58, %s5484_s19 }
0x3c57   :  { %v5406_v18 = vpop.eup %5405 }
0x3c58   :  { %v3439_v21 = vadd.f32 1.0, %v5406_v18 }
0x3c5a   :  { %5407 = vrcp.f32 %v3439_v21  ;;  %v3796_v21 = vadd.s32 4294967295, %v5715_v29 }
0x3c5c   :  { %vm67_vm0 = vcmp.eq.s32.totalorder %v5719_v31, %v3796_v21  ;;  %vm93_vm1 = vcmp.eq.s32.totalorder %v5874_v6, %v3796_v21  ;;  %vm145_vm6 = vcmp.eq.s32.totalorder %v6015_v63, %v3796_v21  ;;  %vm80_vm9 = vcmp.eq.s32.totalorder %v5834_v52, %v3796_v21 }
0x3c5d   :  { %v68_v35 = vsel %vm67_vm0, 1, %v5482_v19  ;;  %v146_v29 = vsel %vm145_vm6, 1, %v5482_v19  ;;  %vm132_vm3 = vcmp.eq.s32.totalorder %v5987_v44, %v3796_v21  ;;  %vm158_vm10 = vcmp.eq.s32.totalorder %v6080_v3, %v3796_v21  ;;  %v3691_v44 = vld [vmem:[%s7019_s6] sm:$0xff]  ;;  %v3692_v3 = vld [vmem:[%s7019_s6 + $0x8] sm:$0xff] }
0x3c64   :  { %v5408_v49 = vpop.eup %5407 }
0x3c65   :  { %v3443_v7 = vmul.f32 %v5408_v49, %v3349_v24 }
0x3cc8   :  { %v3446_v53 = vpop.permute.xlu0 %3445 }
0x3cc9   :  { %v3448_v61 = vmul.f32 %v5408_v49, %v3446_v53  ;;  %v94_v53 = vsel %vm93_vm1, 1, %v5482_v19 }
0x3ccb   :  { %3450 = vrot.lane.b32.xlu1 %v3448_v61, %s5479_s27 }
0x3d3d   :  { %v3451_v45 = vpop.permute.xlu1 %3450 }
0x3d3e   :  { %v3453_v25 = vadd.f32 %v3451_v45, %v3443_v7  ;;  %v133_v45 = vsel %vm132_vm3, 1, %v5482_v19 }
0x3d40   :  { %5409 = vtanh.f32 %v3453_v25 }
0x3d4a   :  { %v5410_v13 = vpop.eup %5409 }
0x3d4b   :  { %3456 = vrot.lane.b32.xlu0 %v5410_v13, %s5484_s19 }
0x3dbd   :  { %v3457_v51 = vpop.permute.xlu0 %3456 }
0x3dbe   :  { %v6900_v33 = vmul.f32 %v5408_v49, %v3457_v51 }
0x3dc0   :  { %v3460_v56 = vsel %vm131_vm8, %v6900_v33, %v3348_v46 }
0x3dc1   :  { %3467 = vrot.lane.b32.xlu0 %v3460_v56, %s5484_s19  ;;  %3464 = vrot.lane.b32.xlu1 %v3460_v56, %s5479_s27 }
0x3e33   :  { %v3468_v12 = vpop.permute.xlu0 %3467  ;;  %v3465_v55 = vpop.permute.xlu1 %3464 }
0x3e34   :  { %v3470_v36 = vsel %vm249_vm5, %v3465_v55, %v3468_v12  ;;  %v3695_v55 = vld [vmem:[%s7019_s6 + $0x20] sm:$0xff] }
0x3e35   :  { %v3471_v30 = vsel %vm5805_vm15, %v3470_v36, 0.0  ;;  %v3696_v36 = vld [vmem:[%s7019_s6 + $0x28] sm:$0xff] }
0x3e36   :  { %4676 = vmatmul.mubr.msk.f32.vlgmr.msra.gmra.mrb[26].mxu1 %vm317_vm7, %v3471_v30 }
0x3e37   :  { %4713 = vmatprep.mubr.msk.f32.mxu1 %vm5480_vm4, %v5481_v50  ;;  %v3461_v50 = vsel %vm131_vm8, %v3453_v25, %v3349_v24  ;;  %vm119_vm4 = vcmp.eq.s32.totalorder %v5949_v40, %v3796_v21  ;;  %v81_v40 = vsel %vm80_vm9, 1, %v5482_v19  ;;  %v159_v25 = vsel %vm158_vm10, 1, %v5482_v19 }
0x3e38   :  { %v120_v27 = vsel %vm119_vm4, 1, %v5482_v19  ;;  %vm3779_vm4 = vcmask 254976  }
0x3f09   :  { %v3541_v38 = vpop.f32.mrb[26].mxu1 }
0x3f0a   :  { %v3542_v10 = vadd.f32 %v3541_v38, %v2810_v34  ;;  %v4677_v15 = vpop.f32.mrb[27].mxu1  ;;  %v5091_v34 = vpack.c.bf16 %v3696_v36, %v3695_v55 }
0x3f0c   :  { %5411 = vtanh.f32 %v3542_v10  ;;  %v3861_v54 = vmul.f32 -1.442695, %v3542_v10 }
0x3f0e   :  { %5413 = vpow2.f32 %v3861_v54 }
0x3f16   :  { %v5412_v22 = vpop.eup %5411 }
0x3f17   :  { %3554 = vrot.lane.b32.xlu1 %v5412_v22, %s5484_s19 }
0x3f18   :  { %v5414_v14 = vpop.eup %5413 }
0x3f19   :  { %v3548_v0 = vadd.f32 1.0, %v5414_v14 }
0x3f1b   :  { %5415 = vrcp.f32 %v3548_v0  ;;  %v3697_v0 = vld [vmem:[%s7019_s6 + $0x30] sm:$0xff] }
0x3f25   :  { %v5416_v42 = vpop.eup %5415 }
0x3f26   :  { %v3552_v20 = vmul.f32 %v5416_v42, %v3461_v50 }
0x3f89   :  { %v3555_v48 = vpop.permute.xlu1 %3554 }
0x3f8a   :  { %v3557_v16 = vmul.f32 %v5416_v42, %v3555_v48 }
0x3f8c   :  { %3559 = vrot.lane.b32.xlu0 %v3557_v16, %s5479_s27 }
0x3ffe   :  { %v3560_v41 = vpop.permute.xlu0 %3559 }
0x3fff   :  { %v3562_v46 = vadd.f32 %v3560_v41, %v3552_v20 }
0x4001   :  { %5417 = vtanh.f32 %v3562_v46  ;;  %v3570_v52 = vsel %vm144_vm13, %v3562_v46, %v3461_v50 }
0x400b   :  { %v5418_v4 = vpop.eup %5417 }
0x400c   :  { %3565 = vrot.lane.b32.xlu1 %v5418_v4, %s5484_s19 }
0x407e   :  { %v3566_v32 = vpop.permute.xlu1 %3565 }
0x407f   :  { %v6920_v17 = vmul.f32 %v5416_v42, %v3566_v32  ;;  %v3698_v42 = vld [vmem:[%s7019_s6 + $0x38] sm:$0xff] }
0x4081   :  { %v3569_v28 = vsel %vm144_vm13, %v6920_v17, %v3460_v56  ;;  %v5085_v56 = vpack.c.bf16 %v3692_v3, %v3691_v44 }
0x4082   :  { %3576 = vrot.lane.b32.xlu1 %v3569_v28, %s5484_s19  ;;  %3573 = vrot.lane.b32.xlu0 %v3569_v28, %s5479_s27 }
0x4083   :  { %5086 = vmatpush3.bf16.msra.mxu1 %v5085_v56 }
0x4084   :  { %5087 = vmatprep.subr.bf16.mxu1 %v5478_v1 }
0x40f4   :  { %v3577_v39 = vpop.permute.xlu1 %3576  ;;  %v3574_v59 = vpop.permute.xlu0 %3573 }
0x40f5   :  { %v3579_v2 = vsel %vm249_vm5, %v3574_v59, %v3577_v39 }
0x40f6   :  { %v3580_v62 = vsel %vm5805_vm15, %v3579_v2, 0.0  ;;  %vm106_vm15 = vcmp.eq.s32.totalorder %v5912_v11, %v3796_v21 }
0x40f7   :  { %4695 = vmatmul.mubr.msk.f32.vlgmr.msra.gmra.mrb[30].mxu0 %vm317_vm7, %v3580_v62  ;;  %v107_v63 = vsel %vm106_vm15, 1, %v5482_v19  ;;  %v3693_v19 = vld [vmem:[%s7019_s6 + $0x10] sm:$0xff] }
0x40f8   :  { %v5088_v12 = vpack.c.bf16 %v3694_v5, %v3693_v19 }
0x40fa   :  { %5089 = vmatpush3.bf16.msra.mxu1 %v5088_v12 }
0x40fb   :  { %5090 = vmatprep.subr.bf16.mxu1 %v5478_v1 }
0x40fe   :  { %5092 = vmatpush3.bf16.msra.mxu1 %v5091_v34 }
0x40ff   :  { %5093 = vmatprep.subr.bf16.mxu1 %v5478_v1  ;;  %v5094_v1 = vpack.c.bf16 %v3698_v42, %v3697_v0 }
0x4102   :  { %5095 = vmatpush3.bf16.msra.mxu1 %v5094_v1 }
0x41ca   :  { %v3653_v58 = vpop.f32.mrb[30].mxu0 }
0x41cb   :  { %v3654_v43 = vadd.f32 %v3653_v58, %v3582_v37  ;;  %v4696_v18 = vpop.f32.mrb[31].mxu0 }
0x41cd   :  { %5419 = vtanh.f32 %v3654_v43  ;;  %v3863_v31 = vmul.f32 -1.442695, %v3654_v43 }
0x41cf   :  { %5421 = vpow2.f32 %v3863_v31 }
0x41d7   :  { %v5420_v49 = vpop.eup %5419 }
0x41d8   :  { %3666 = vrot.lane.b32.xlu0 %v5420_v49, %s5484_s19 }
0x41d9   :  { %v5422_v57 = vpop.eup %5421 }
0x41da   :  { %v3660_v61 = vadd.f32 1.0, %v5422_v57 }
0x41dc   :  { %70 = vperm.xlu0 %5113, %v68_v35   ;;  %5423 = vrcp.f32 %v3660_v61 }
0x41e0   :  { %96 = vperm.xlu0 %5113, %v94_v53  }
0x41e4   :  { %122 = vperm.xlu0 %5113, %v120_v27  }
0x41e6   :  { %v6943_v6 = vpop.eup %5423 }
0x41e7   :  { %v3664_v13 = vmul.f32 %v6943_v6, %v3570_v52 }
0x41e8   :  { %148 = vperm.xlu0 %5113, %v146_v29  }
0x424a   :  { %v3667_v24 = vpop.permute.xlu0 %3666 }
0x424b   :  { %v3669_v7 = vmul.f32 %v6943_v6, %v3667_v24 }
0x424d   :  { %3671 = vrot.lane.b32.xlu1 %v3669_v7, %s5479_s27 }
0x4251   :  { %83 = vperm.xlu1 %5114, %v81_v40  }
0x4255   :  { %109 = vperm.xlu1 %5114, %v107_v63  }
0x4259   :  { %135 = vperm.xlu1 %5114, %v133_v45  }
0x425b   :  { %v71_v38 = vpop.permute.xlu0 %70 }
0x425c   :  { %vm72_vm12 = vcmp.eq.s32.totalorder %v71_v38, 1 }
0x425d   :  { %161 = vperm.xlu1 %5114, %v159_v25   ;;  %v2908_v54 = vsel %vm72_vm12, %v6696_v47, 0.0 }
0x425f   :  { %v97_v15 = vpop.permute.xlu0 %96 }
0x4260   :  { %vm98_vm13 = vcmp.eq.s32.totalorder %v97_v15, 1 }
0x4263   :  { %v123_v14 = vpop.permute.xlu0 %122 }
0x4264   :  { %vm124_vm11 = vcmp.eq.s32.totalorder %v123_v14, 1 }
0x4267   :  { %v149_v20 = vpop.permute.xlu0 %148 }
0x4268   :  { %vm150_vm0 = vcmp.eq.s32.totalorder %v149_v20, 1 }
0x42bf   :  { %v3672_v11 = vpop.permute.xlu1 %3671 }
0x42c0   :  { %v3674_v51 = vadd.f32 %v3672_v11, %v3664_v13 }
0x42c2   :  { %5425 = vtanh.f32 %v3674_v51 }
0x42cc   :  { %v5426_v30 = vpop.eup %5425 }
0x42cd   :  { %3677 = vrot.lane.b32.xlu0 %v5426_v30, %s5484_s19 }
0x42d0   :  { %v84_v10 = vpop.permute.xlu1 %83 }
0x42d1   :  { %vm85_vm14 = vcmp.eq.s32.totalorder %v84_v10, 1 }
0x42d2   :  { %v3020_v48 = vsel %vm85_vm14, %v6766_v9, %v2908_v54 }
0x42d3   :  { %v3129_v50 = vsel %vm98_vm13, %v6817_v26, %v3020_v48 }
0x42d4   :  { %v110_v22 = vpop.permute.xlu1 %109 }
0x42d5   :  { %vm111_vm8 = vcmp.eq.s32.totalorder %v110_v22, 1 }
0x42d6   :  { %v3241_v47 = vsel %vm111_vm8, %v6845_v8, %v3129_v50 }
0x42d7   :  { %v3350_v41 = vsel %vm124_vm11, %v6873_v60, %v3241_v47 }
0x42d8   :  { %v136_v16 = vpop.permute.xlu1 %135 }
0x42d9   :  { %vm137_vm2 = vcmp.eq.s32.totalorder %v136_v16, 1 }
0x42da   :  { %v3462_v46 = vsel %vm137_vm2, %v6900_v33, %v3350_v41  ;;  %v3864_v33 = vld [vmem:[%s7020_s7] ss:$0 sm:$0xff] }
0x42db   :  { %v3571_v28 = vsel %vm150_vm0, %v6920_v17, %v3462_v46 }
0x42dc   :  { %v162_v4 = vpop.permute.xlu1 %161 }
0x42dd   :  { %vm163_vm1 = vcmp.eq.s32.totalorder %v162_v4, 1 }
0x433f   :  { %v3678_v32 = vpop.permute.xlu0 %3677 }
0x4340   :  { %v3680_v9 = vmul.f32 %v6943_v6, %v3678_v32 }
0x4342   :  { %v3681_v39 = vsel %vm163_vm1, %v3680_v9, %v3571_v28 }
0x4343   :  { %3683 = vrot.lane.b32.xlu1 %v3681_v39, %s5479_s27  ;;  %v3686_v26 = vrot.slane %v3681_v39, 2  ;;  %s5449_s27 = scalar_lea.vmem %s3788_s30, 32 }
0x4344   :  { %p5450_p8 = scmp.ne.s32.totalorder %s3788_s30, %s5449_s27  ;;  %p5455_p10 = scmp.lt.s32.totalorder %s5449_s27, %s5449_s27 }
0x4345   :  { %3687 = vrot.lane.b32.xlu0 %v3686_v26, %s5484_s19 }
0x4346   :  { %p5456_p11 = por %p5455_p10, %p5454_p9 }
0x4348   :  { %p5457_p12 = pnand %p5456_p11, %p5450_p8 }
0x43b5   :  { %v3684_v8 = vpop.permute.xlu1 %3683 }
0x43b7   :  { %v3688_v59 = vpop.permute.xlu0 %3687 }
0x43b8   :  { %v3690_v60 = vsel %vm249_vm5, %v3684_v8, %v3688_v59 }
0x43b9   :  { %4714 = vmatmul.mubr.msk.f32.vlgmr.msra.gmra.mrb[28].mxu1 %vm317_vm7, %v3690_v60 }
0x448c   :  { %v3775_v17 = vpop.f32.mrb[28].mxu1 }
0x448d   :  { %v3776_v2 = vadd.f32 %v3864_v33, %v3775_v17  ;;  %v4715_v62 = vpop.f32.mrb[29].mxu1 }
0x448f   :  { %3780 = vst.msk [vmem:[#allocation5] sm:$0x3] %vm3779_vm4, %v3776_v2 }
0x4490   :  { %5460 = shalt.err (!%p5457_p12)
}
0x4491   :  { %s5461_s10 = scalar_lea.hbm %s7021_s8, 32 }
0x4492   :  { %p5462_p13 = scmp.ne.s32.totalorder %s7021_s8, %s5461_s10  ;;  %p5465_p0 = scmp.lt.u32.totalorder %s5461_s10, %s7021_s8 }
0x4494   :  { %p5467_p1 = pnand %p5465_p0, %p5462_p13 }
0x4496   :  { %5470 = shalt.err (!%p5467_p1)
}
0x4497   :  { %3790 = dma.vmem_to_hbm [thread:$0]  %s3788_s30, 32, %s7021_s8, [#allocation4]  }
0x4498   :  { %5473 = dma.done.wait [#allocation4], 32  }
0x4499   :  { %5474 = vsyncadd [#allocation4], 4294967264 }
0x449a   :  { %3794 = vsyncpa [#allocation3], 1 }
0x449b   :  { %3795 = vsyncpa [#allocation4], 1 }

</bundles_post_ra>
